<compile_context>
chip_gen: v7x
topology: tpu7x:2x2x1
jax: 0.10.0
libtpu: 0.0.40
codegen_flags: <defaults>
</compile_context>

<pallas_src>
import jax
import jax.numpy as jnp
from jax.experimental import pallas as pl
from jax.experimental.pallas import tpu as pltpu

# ----------------------------- geometry (fixed by the module) ----------------
C_IN, H, W = 3, 32, 32            # conv1 input (CIFAR-like)
OC1, OC1P, KS = 6, 8, 5           # conv1 out-channels (padded to 8), 5x5 kernel
OH1 = H - KS + 1                  # 28
L1 = (OH1 - 1) * W + OH1          # 892: row-flattened conv1 output length
PW1 = OH1 // 2                    # 14: spatial width after pool1
NP1 = PW1 * PW1                   # 196
OC2 = 16
OH2 = PW1 - KS + 1                # 10
L2 = (OH2 - 1) * PW1 + OH2        # 136: row-flattened conv2 output length
PW2 = OH2 // 2                    # 5
NFC = 128                         # lane padding for all FC dims / final output


# ----------------------------------------------------------------------------
# Fused Pallas kernel: conv1+relu+pool1+conv2+relu+pool2+fc1+fc2+fc3 (1 image)
# ----------------------------------------------------------------------------
def _convnet2_kernel(x_ref, w1_ref, b1_ref, w2_ref, b2_ref, s1_ref, s2_ref,
                     wfc1_ref, bfc1_ref, wfc2_ref, bfc2_ref, wfc3_ref,
                     bfc3_ref, o_ref):
    f32 = jnp.float32

    # ---- conv1 + bias + ReLU: implicit im2col via 25 shifted taps ----------
    # a1[oc, p] with p = oh*32 + ow (garbage where ow >= 28, discarded later).
    x = x_ref[0]                                             # (3, 1024)
    acc1 = jnp.zeros((OC1P, L1), f32)
    for i in range(KS):
        for j in range(KS):
            d = i * W + j
            acc1 = acc1 + jnp.dot(w1_ref[i * KS + j], x[:, d:d + L1],
                                  preferred_element_type=f32)
    a1 = jnp.maximum(acc1 + b1_ref[...], 0.0)                # (8, 892)

    # ---- pool1 (2x2 / stride 2): shifted maxima + lane-selection matmul ----
    m1 = jnp.maximum(a1[:, :-1], a1[:, 1:])                  # (8, 891)
    m1 = jnp.maximum(m1[:, :-W], m1[:, W:])                  # (8, 859)
    p1 = jnp.dot(m1, s1_ref[...], preferred_element_type=f32)   # (8, 196)

    # ---- conv2 + bias + ReLU (same implicit-GEMM trick, row stride 14) -----
    acc2 = jnp.zeros((OC2, L2), f32)
    for i in range(KS):
        for j in range(KS):
            d = i * PW1 + j
            acc2 = acc2 + jnp.dot(w2_ref[i * KS + j], p1[:, d:d + L2],
                                  preferred_element_type=f32)
    a2 = jnp.maximum(acc2 + b2_ref[...], 0.0)                # (16, 136)

    # ---- pool2 --------------------------------------------------------------
    m2 = jnp.maximum(a2[:, :-1], a2[:, 1:])                  # (16, 135)
    m2 = jnp.maximum(m2[:, :-PW1], m2[:, PW1:])              # (16, 121)
    p2 = jnp.dot(m2, s2_ref[...], preferred_element_type=f32)   # (16, 128)

    # ---- fc1 + ReLU: accumulate per conv2 channel (= PyTorch .view order) ---
    h = bfc1_ref[...]                                        # (1, 128)
    for c in range(OC2):
        h = h + jnp.dot(p2[c:c + 1, :], wfc1_ref[c],
                        preferred_element_type=f32)
    h = jnp.maximum(h, 0.0)

    # ---- fc2 + ReLU ---------------------------------------------------------
    h = jnp.maximum(
        jnp.dot(h, wfc2_ref[...], preferred_element_type=f32) + bfc2_ref[...],
        0.0)

    # ---- fc3 (lane-dense padded output; logits are columns 0..9) ------------
    o_ref[0] = (jnp.dot(h, wfc3_ref[...], preferred_element_type=f32)
                + bfc3_ref[...])


# ----------------------------------------------------------------------------
# One-time parameter re-layout (transpose / pad done once, outside jit)
# ----------------------------------------------------------------------------
def _pool_select(n_rows, pooled_w, src_stride, n_cols):
    """0/1 matrix: column r picks flat source row 2*(r//pw)*stride + 2*(r%pw)."""
    r = jnp.arange(n_cols)
    src = 2 * (r // pooled_w) * src_stride + 2 * (r % pooled_w)
    src = jnp.where(r < pooled_w * pooled_w, src, -1)        # pad cols -> 0
    return (jnp.arange(n_rows)[:, None] == src[None, :]).astype(jnp.float32)


def prepare_params(p):
    kp = {}
    # conv1 weights: (6,3,5,5) -> (25, 8, 3), tap-major (i*5+j), OC padded 6->8
    w1 = jnp.transpose(p["w1"], (2, 3, 0, 1)).reshape(KS * KS, OC1, C_IN)
    kp["w1"] = jnp.pad(w1, ((0, 0), (0, OC1P - OC1), (0, 0)))
    kp["b1"] = jnp.pad(p["b1"], (0, OC1P - OC1)).reshape(OC1P, 1)
    # conv2 weights: (16,6,5,5) -> (25, 16, 8), input channels padded 6->8
    w2 = jnp.transpose(p["w2"], (2, 3, 0, 1)).reshape(KS * KS, OC2, OC1)
    kp["w2"] = jnp.pad(w2, ((0, 0), (0, 0), (0, OC1P - OC1)))
    kp["b2"] = p["b2"].reshape(OC2, 1)
    # fc1: (120,400) -> (16, 128, 128); [c, r, o] = W[o, c*25 + r]
    wfc1 = p["wfc1"].T.reshape(OC2, PW2 * PW2, 120)
    kp["wfc1"] = jnp.pad(wfc1, ((0, 0), (0, NFC - PW2 * PW2), (0, NFC - 120)))
    kp["bfc1"] = jnp.pad(p["bfc1"], (0, NFC - 120)).reshape(1, NFC)
    # fc2: (84,120) -> (128,128)
    kp["wfc2"] = jnp.pad(p["wfc2"].T, ((0, NFC - 120), (0, NFC - 84)))
    kp["bfc2"] = jnp.pad(p["bfc2"], (0, NFC - 84)).reshape(1, NFC)
    # fc3: (10,84) -> (128,128)
    kp["wfc3"] = jnp.pad(p["wfc3"].T, ((0, NFC - 84), (0, NFC - 10)))
    kp["bfc3"] = jnp.pad(p["bfc3"], (0, NFC - 10)).reshape(1, NFC)
    # pooling lane-selection matrices
    kp["s1"] = _pool_select(L1 - 1 - W, PW1, W, NP1)         # (859, 196)
    kp["s2"] = _pool_select(L2 - 1 - PW1, PW2, PW1, NFC)     # (121, 128)
    return kp


# ----------------------------------------------------------------------------
# Forward pass (single pallas_call, grid over batch)
# ----------------------------------------------------------------------------
def convnet2_forward(x, kp):
    B = x.shape[0]
    assert x.shape[1:] == (C_IN, H, W), x.shape
    xf = x.reshape(B, C_IN, H * W)            # free layout reshape (NCHW rows)

    consts = (kp["w1"], kp["b1"], kp["w2"], kp["b2"], kp["s1"], kp["s2"],
              kp["wfc1"], kp["bfc1"], kp["wfc2"], kp["bfc2"], kp["wfc3"],
              kp["bfc3"])

    def _const_spec(a):
        nd = a.ndim
        return pl.BlockSpec(a.shape, lambda b, nd=nd: (0,) * nd)

    out = pl.pallas_call(
        _convnet2_kernel,
        out_shape=jax.ShapeDtypeStruct((B, 1, NFC), jnp.float32),
        grid=(B,),
        in_specs=[pl.BlockSpec((1, C_IN, H * W), lambda b: (b, 0, 0))]
                 + [_const_spec(a) for a in consts],
        out_specs=pl.BlockSpec((1, 1, NFC), lambda b: (b, 0, 0)),
        compiler_params=pltpu.CompilerParams(
            dimension_semantics=("parallel",)),
    )(xf, *consts)
    return out[:, 0, :10]                      # logits (padding cols dropped)


# ----------------------------------------------------------------------------
# Deterministic PyTorch-default-style init (unchanged semantics)
# ----------------------------------------------------------------------------
def init_params(key):
    def uniform(key, shape, fan_in):
        bound = 1.0 / jnp.sqrt(jnp.float32(fan_in))
        return jax.random.uniform(key, shape, jnp.float32, -bound, bound)

    ks = jax.random.split(key, 10)
    p = {}
    p["w1"] = uniform(ks[0], (6, 3, 5, 5), 3 * 5 * 5)
    p["b1"] = uniform(ks[1], (6,), 3 * 5 * 5)
    p["w2"] = uniform(ks[2], (16, 6, 5, 5), 6 * 5 * 5)
    p["b2"] = uniform(ks[3], (16,), 6 * 5 * 5)
    p["wfc1"] = uniform(ks[4], (120, 400), 400)
    p["bfc1"] = uniform(ks[5], (120,), 400)
    p["wfc2"] = uniform(ks[6], (84, 120), 120)
    p["bfc2"] = uniform(ks[7], (84,), 120)
    p["wfc3"] = uniform(ks[8], (10, 84), 84)
    p["bfc3"] = uniform(ks[9], (10,), 84)
    return p


if __name__ == "__main__":
    key = jax.random.PRNGKey(0)
    k_param, k_x = jax.random.split(key)
    params = init_params(k_param)
    kparams = prepare_params(params)          # one-time weight re-layout
    # Conv/pool geometry implies 3x32x32 input (CIFAR-like).
    x = jax.random.normal(k_x, (2, C_IN, H, W), dtype=jnp.float32)

    logits = jax.jit(convnet2_forward)(x, kparams)
    jax.block_until_ready(logits)
    assert logits.shape == (2, 10), logits.shape
    print("KERNEL_OK")
</pallas_src>

<mosaic_0001>
module attributes {stable_mosaic.version = 11 : i64} {
  func.func @_convnet2_kernel(%arg0: i32, %arg1: memref<1x3x1024xf32, #tpu.memory_space<vmem>>, %arg2: memref<25x8x3xf32, #tpu.memory_space<vmem>>, %arg3: memref<8x1xf32, #tpu.memory_space<vmem>>, %arg4: memref<25x16x8xf32, #tpu.memory_space<vmem>>, %arg5: memref<16x1xf32, #tpu.memory_space<vmem>>, %arg6: memref<859x196xf32, #tpu.memory_space<vmem>>, %arg7: memref<121x128xf32, #tpu.memory_space<vmem>>, %arg8: memref<16x128x128xf32, #tpu.memory_space<vmem>>, %arg9: memref<1x128xf32, #tpu.memory_space<vmem>>, %arg10: memref<128x128xf32, #tpu.memory_space<vmem>>, %arg11: memref<1x128xf32, #tpu.memory_space<vmem>>, %arg12: memref<128x128xf32, #tpu.memory_space<vmem>>, %arg13: memref<1x128xf32, #tpu.memory_space<vmem>>, %arg14: memref<1x1x128xf32, #tpu.memory_space<vmem>>) attributes {dimension_semantics = [#tpu.dimension_semantics<parallel>], iteration_bounds = array<i64: 2>, scalar_prefetch = 0 : i64, scratch_operands = 0 : i64, tpu.core_type = #tpu.core_type<tc>, window_params = [{transform_indices = @transform_0, window_bounds = array<i64: 1, 3, 1024>}, {pipeline_mode = #tpu.pipeline_mode<synchronous>, transform_indices = @transform_1, window_bounds = array<i64: 25, 8, 3>}, {pipeline_mode = #tpu.pipeline_mode<synchronous>, transform_indices = @transform_2, window_bounds = array<i64: 8, 1>}, {pipeline_mode = #tpu.pipeline_mode<synchronous>, transform_indices = @transform_3, window_bounds = array<i64: 25, 16, 8>}, {pipeline_mode = #tpu.pipeline_mode<synchronous>, transform_indices = @transform_4, window_bounds = array<i64: 16, 1>}, {pipeline_mode = #tpu.pipeline_mode<synchronous>, transform_indices = @transform_5, window_bounds = array<i64: 859, 196>}, {pipeline_mode = #tpu.pipeline_mode<synchronous>, transform_indices = @transform_6, window_bounds = array<i64: 121, 128>}, {pipeline_mode = #tpu.pipeline_mode<synchronous>, transform_indices = @transform_7, window_bounds = array<i64: 16, 128, 128>}, {pipeline_mode = #tpu.pipeline_mode<synchronous>, transform_indices = @transform_8, window_bounds = array<i64: 1, 128>}, {pipeline_mode = #tpu.pipeline_mode<synchronous>, transform_indices = @transform_9, window_bounds = array<i64: 128, 128>}, {pipeline_mode = #tpu.pipeline_mode<synchronous>, transform_indices = @transform_10, window_bounds = array<i64: 1, 128>}, {pipeline_mode = #tpu.pipeline_mode<synchronous>, transform_indices = @transform_11, window_bounds = array<i64: 128, 128>}, {pipeline_mode = #tpu.pipeline_mode<synchronous>, transform_indices = @transform_12, window_bounds = array<i64: 1, 128>}, {transform_indices = @transform_13, window_bounds = array<i64: 1, 1, 128>}]} {
    %c0 = arith.constant 0 : index
    %c0_0 = arith.constant 0 : index
    %c0_1 = arith.constant 0 : index
    %0 = vector.load %arg1[%c0, %c0_0, %c0_1] : memref<1x3x1024xf32, #tpu.memory_space<vmem>>, vector<1x3x1024xf32>
    %1 = vector.shape_cast %0 : vector<1x3x1024xf32> to vector<3x1024xf32>
    %cst = arith.constant 0.000000e+00 : f32
    %2 = vector.broadcast %cst : f32 to vector<8x892xf32>
    %c0_2 = arith.constant 0 : index
    %c0_3 = arith.constant 0 : index
    %c0_4 = arith.constant 0 : index
    %3 = vector.load %arg2[%c0_2, %c0_3, %c0_4] : memref<25x8x3xf32, #tpu.memory_space<vmem>>, vector<1x8x3xf32>
    %4 = vector.shape_cast %3 : vector<1x8x3xf32> to vector<8x3xf32>
    %5 = vector.extract_strided_slice %1 {offsets = [0, 0], sizes = [3, 892], strides = [1, 1]} : vector<3x1024xf32> to vector<3x892xf32>
    %cst_5 = arith.constant dense<0.000000e+00> : vector<8x892xf32>
    %6 = tpu.matmul %4, %5, %cst_5 {dimension_numbers = #tpu.dot_dimension_numbers<[1], [0], [0], [1], [0, 0, 1, 1], [], []>} : vector<8x3xf32>, vector<3x892xf32>, vector<8x892xf32> -> vector<8x892xf32>
    %7 = arith.addf %2, %6 : vector<8x892xf32>
    %c1 = arith.constant 1 : index
    %c0_6 = arith.constant 0 : index
    %c0_7 = arith.constant 0 : index
    %8 = vector.load %arg2[%c1, %c0_6, %c0_7] : memref<25x8x3xf32, #tpu.memory_space<vmem>>, vector<1x8x3xf32>
    %9 = vector.shape_cast %8 : vector<1x8x3xf32> to vector<8x3xf32>
    %10 = vector.extract_strided_slice %1 {offsets = [0, 1], sizes = [3, 892], strides = [1, 1]} : vector<3x1024xf32> to vector<3x892xf32>
    %cst_8 = arith.constant dense<0.000000e+00> : vector<8x892xf32>
    %11 = tpu.matmul %9, %10, %cst_8 {dimension_numbers = #tpu.dot_dimension_numbers<[1], [0], [0], [1], [0, 0, 1, 1], [], []>} : vector<8x3xf32>, vector<3x892xf32>, vector<8x892xf32> -> vector<8x892xf32>
    %12 = arith.addf %7, %11 : vector<8x892xf32>
    %c2 = arith.constant 2 : index
    %c0_9 = arith.constant 0 : index
    %c0_10 = arith.constant 0 : index
    %13 = vector.load %arg2[%c2, %c0_9, %c0_10] : memref<25x8x3xf32, #tpu.memory_space<vmem>>, vector<1x8x3xf32>
    %14 = vector.shape_cast %13 : vector<1x8x3xf32> to vector<8x3xf32>
    %15 = vector.extract_strided_slice %1 {offsets = [0, 2], sizes = [3, 892], strides = [1, 1]} : vector<3x1024xf32> to vector<3x892xf32>
    %cst_11 = arith.constant dense<0.000000e+00> : vector<8x892xf32>
    %16 = tpu.matmul %14, %15, %cst_11 {dimension_numbers = #tpu.dot_dimension_numbers<[1], [0], [0], [1], [0, 0, 1, 1], [], []>} : vector<8x3xf32>, vector<3x892xf32>, vector<8x892xf32> -> vector<8x892xf32>
    %17 = arith.addf %12, %16 : vector<8x892xf32>
    %c3 = arith.constant 3 : index
    %c0_12 = arith.constant 0 : index
    %c0_13 = arith.constant 0 : index
    %18 = vector.load %arg2[%c3, %c0_12, %c0_13] : memref<25x8x3xf32, #tpu.memory_space<vmem>>, vector<1x8x3xf32>
    %19 = vector.shape_cast %18 : vector<1x8x3xf32> to vector<8x3xf32>
    %20 = vector.extract_strided_slice %1 {offsets = [0, 3], sizes = [3, 892], strides = [1, 1]} : vector<3x1024xf32> to vector<3x892xf32>
    %cst_14 = arith.constant dense<0.000000e+00> : vector<8x892xf32>
    %21 = tpu.matmul %19, %20, %cst_14 {dimension_numbers = #tpu.dot_dimension_numbers<[1], [0], [0], [1], [0, 0, 1, 1], [], []>} : vector<8x3xf32>, vector<3x892xf32>, vector<8x892xf32> -> vector<8x892xf32>
    %22 = arith.addf %17, %21 : vector<8x892xf32>
    %c4 = arith.constant 4 : index
    %c0_15 = arith.constant 0 : index
    %c0_16 = arith.constant 0 : index
    %23 = vector.load %arg2[%c4, %c0_15, %c0_16] : memref<25x8x3xf32, #tpu.memory_space<vmem>>, vector<1x8x3xf32>
    %24 = vector.shape_cast %23 : vector<1x8x3xf32> to vector<8x3xf32>
    %25 = vector.extract_strided_slice %1 {offsets = [0, 4], sizes = [3, 892], strides = [1, 1]} : vector<3x1024xf32> to vector<3x892xf32>
    %cst_17 = arith.constant dense<0.000000e+00> : vector<8x892xf32>
    %26 = tpu.matmul %24, %25, %cst_17 {dimension_numbers = #tpu.dot_dimension_numbers<[1], [0], [0], [1], [0, 0, 1, 1], [], []>} : vector<8x3xf32>, vector<3x892xf32>, vector<8x892xf32> -> vector<8x892xf32>
    %27 = arith.addf %22, %26 : vector<8x892xf32>
    %c5 = arith.constant 5 : index
    %c0_18 = arith.constant 0 : index
    %c0_19 = arith.constant 0 : index
    %28 = vector.load %arg2[%c5, %c0_18, %c0_19] : memref<25x8x3xf32, #tpu.memory_space<vmem>>, vector<1x8x3xf32>
    %29 = vector.shape_cast %28 : vector<1x8x3xf32> to vector<8x3xf32>
    %30 = vector.extract_strided_slice %1 {offsets = [0, 32], sizes = [3, 892], strides = [1, 1]} : vector<3x1024xf32> to vector<3x892xf32>
    %cst_20 = arith.constant dense<0.000000e+00> : vector<8x892xf32>
    %31 = tpu.matmul %29, %30, %cst_20 {dimension_numbers = #tpu.dot_dimension_numbers<[1], [0], [0], [1], [0, 0, 1, 1], [], []>} : vector<8x3xf32>, vector<3x892xf32>, vector<8x892xf32> -> vector<8x892xf32>
    %32 = arith.addf %27, %31 : vector<8x892xf32>
    %c6 = arith.constant 6 : index
    %c0_21 = arith.constant 0 : index
    %c0_22 = arith.constant 0 : index
    %33 = vector.load %arg2[%c6, %c0_21, %c0_22] : memref<25x8x3xf32, #tpu.memory_space<vmem>>, vector<1x8x3xf32>
    %34 = vector.shape_cast %33 : vector<1x8x3xf32> to vector<8x3xf32>
    %35 = vector.extract_strided_slice %1 {offsets = [0, 33], sizes = [3, 892], strides = [1, 1]} : vector<3x1024xf32> to vector<3x892xf32>
    %cst_23 = arith.constant dense<0.000000e+00> : vector<8x892xf32>
    %36 = tpu.matmul %34, %35, %cst_23 {dimension_numbers = #tpu.dot_dimension_numbers<[1], [0], [0], [1], [0, 0, 1, 1], [], []>} : vector<8x3xf32>, vector<3x892xf32>, vector<8x892xf32> -> vector<8x892xf32>
    %37 = arith.addf %32, %36 : vector<8x892xf32>
    %c7 = arith.constant 7 : index
    %c0_24 = arith.constant 0 : index
    %c0_25 = arith.constant 0 : index
    %38 = vector.load %arg2[%c7, %c0_24, %c0_25] : memref<25x8x3xf32, #tpu.memory_space<vmem>>, vector<1x8x3xf32>
    %39 = vector.shape_cast %38 : vector<1x8x3xf32> to vector<8x3xf32>
    %40 = vector.extract_strided_slice %1 {offsets = [0, 34], sizes = [3, 892], strides = [1, 1]} : vector<3x1024xf32> to vector<3x892xf32>
    %cst_26 = arith.constant dense<0.000000e+00> : vector<8x892xf32>
    %41 = tpu.matmul %39, %40, %cst_26 {dimension_numbers = #tpu.dot_dimension_numbers<[1], [0], [0], [1], [0, 0, 1, 1], [], []>} : vector<8x3xf32>, vector<3x892xf32>, vector<8x892xf32> -> vector<8x892xf32>
    %42 = arith.addf %37, %41 : vector<8x892xf32>
    %c8 = arith.constant 8 : index
    %c0_27 = arith.constant 0 : index
    %c0_28 = arith.constant 0 : index
    %43 = vector.load %arg2[%c8, %c0_27, %c0_28] : memref<25x8x3xf32, #tpu.memory_space<vmem>>, vector<1x8x3xf32>
    %44 = vector.shape_cast %43 : vector<1x8x3xf32> to vector<8x3xf32>
    %45 = vector.extract_strided_slice %1 {offsets = [0, 35], sizes = [3, 892], strides = [1, 1]} : vector<3x1024xf32> to vector<3x892xf32>
    %cst_29 = arith.constant dense<0.000000e+00> : vector<8x892xf32>
    %46 = tpu.matmul %44, %45, %cst_29 {dimension_numbers = #tpu.dot_dimension_numbers<[1], [0], [0], [1], [0, 0, 1, 1], [], []>} : vector<8x3xf32>, vector<3x892xf32>, vector<8x892xf32> -> vector<8x892xf32>
    %47 = arith.addf %42, %46 : vector<8x892xf32>
    %c9 = arith.constant 9 : index
    %c0_30 = arith.constant 0 : index
    %c0_31 = arith.constant 0 : index
    %48 = vector.load %arg2[%c9, %c0_30, %c0_31] : memref<25x8x3xf32, #tpu.memory_space<vmem>>, vector<1x8x3xf32>
    %49 = vector.shape_cast %48 : vector<1x8x3xf32> to vector<8x3xf32>
    %50 = vector.extract_strided_slice %1 {offsets = [0, 36], sizes = [3, 892], strides = [1, 1]} : vector<3x1024xf32> to vector<3x892xf32>
    %cst_32 = arith.constant dense<0.000000e+00> : vector<8x892xf32>
    %51 = tpu.matmul %49, %50, %cst_32 {dimension_numbers = #tpu.dot_dimension_numbers<[1], [0], [0], [1], [0, 0, 1, 1], [], []>} : vector<8x3xf32>, vector<3x892xf32>, vector<8x892xf32> -> vector<8x892xf32>
    %52 = arith.addf %47, %51 : vector<8x892xf32>
    %c10 = arith.constant 10 : index
    %c0_33 = arith.constant 0 : index
    %c0_34 = arith.constant 0 : index
    %53 = vector.load %arg2[%c10, %c0_33, %c0_34] : memref<25x8x3xf32, #tpu.memory_space<vmem>>, vector<1x8x3xf32>
    %54 = vector.shape_cast %53 : vector<1x8x3xf32> to vector<8x3xf32>
    %55 = vector.extract_strided_slice %1 {offsets = [0, 64], sizes = [3, 892], strides = [1, 1]} : vector<3x1024xf32> to vector<3x892xf32>
    %cst_35 = arith.constant dense<0.000000e+00> : vector<8x892xf32>
    %56 = tpu.matmul %54, %55, %cst_35 {dimension_numbers = #tpu.dot_dimension_numbers<[1], [0], [0], [1], [0, 0, 1, 1], [], []>} : vector<8x3xf32>, vector<3x892xf32>, vector<8x892xf32> -> vector<8x892xf32>
    %57 = arith.addf %52, %56 : vector<8x892xf32>
    %c11 = arith.constant 11 : index
    %c0_36 = arith.constant 0 : index
    %c0_37 = arith.constant 0 : index
    %58 = vector.load %arg2[%c11, %c0_36, %c0_37] : memref<25x8x3xf32, #tpu.memory_space<vmem>>, vector<1x8x3xf32>
    %59 = vector.shape_cast %58 : vector<1x8x3xf32> to vector<8x3xf32>
    %60 = vector.extract_strided_slice %1 {offsets = [0, 65], sizes = [3, 892], strides = [1, 1]} : vector<3x1024xf32> to vector<3x892xf32>
    %cst_38 = arith.constant dense<0.000000e+00> : vector<8x892xf32>
    %61 = tpu.matmul %59, %60, %cst_38 {dimension_numbers = #tpu.dot_dimension_numbers<[1], [0], [0], [1], [0, 0, 1, 1], [], []>} : vector<8x3xf32>, vector<3x892xf32>, vector<8x892xf32> -> vector<8x892xf32>
    %62 = arith.addf %57, %61 : vector<8x892xf32>
    %c12 = arith.constant 12 : index
    %c0_39 = arith.constant 0 : index
    %c0_40 = arith.constant 0 : index
    %63 = vector.load %arg2[%c12, %c0_39, %c0_40] : memref<25x8x3xf32, #tpu.memory_space<vmem>>, vector<1x8x3xf32>
    %64 = vector.shape_cast %63 : vector<1x8x3xf32> to vector<8x3xf32>
    %65 = vector.extract_strided_slice %1 {offsets = [0, 66], sizes = [3, 892], strides = [1, 1]} : vector<3x1024xf32> to vector<3x892xf32>
    %cst_41 = arith.constant dense<0.000000e+00> : vector<8x892xf32>
    %66 = tpu.matmul %64, %65, %cst_41 {dimension_numbers = #tpu.dot_dimension_numbers<[1], [0], [0], [1], [0, 0, 1, 1], [], []>} : vector<8x3xf32>, vector<3x892xf32>, vector<8x892xf32> -> vector<8x892xf32>
    %67 = arith.addf %62, %66 : vector<8x892xf32>
    %c13 = arith.constant 13 : index
    %c0_42 = arith.constant 0 : index
    %c0_43 = arith.constant 0 : index
    %68 = vector.load %arg2[%c13, %c0_42, %c0_43] : memref<25x8x3xf32, #tpu.memory_space<vmem>>, vector<1x8x3xf32>
    %69 = vector.shape_cast %68 : vector<1x8x3xf32> to vector<8x3xf32>
    %70 = vector.extract_strided_slice %1 {offsets = [0, 67], sizes = [3, 892], strides = [1, 1]} : vector<3x1024xf32> to vector<3x892xf32>
    %cst_44 = arith.constant dense<0.000000e+00> : vector<8x892xf32>
    %71 = tpu.matmul %69, %70, %cst_44 {dimension_numbers = #tpu.dot_dimension_numbers<[1], [0], [0], [1], [0, 0, 1, 1], [], []>} : vector<8x3xf32>, vector<3x892xf32>, vector<8x892xf32> -> vector<8x892xf32>
    %72 = arith.addf %67, %71 : vector<8x892xf32>
    %c14 = arith.constant 14 : index
    %c0_45 = arith.constant 0 : index
    %c0_46 = arith.constant 0 : index
    %73 = vector.load %arg2[%c14, %c0_45, %c0_46] : memref<25x8x3xf32, #tpu.memory_space<vmem>>, vector<1x8x3xf32>
    %74 = vector.shape_cast %73 : vector<1x8x3xf32> to vector<8x3xf32>
    %75 = vector.extract_strided_slice %1 {offsets = [0, 68], sizes = [3, 892], strides = [1, 1]} : vector<3x1024xf32> to vector<3x892xf32>
    %cst_47 = arith.constant dense<0.000000e+00> : vector<8x892xf32>
    %76 = tpu.matmul %74, %75, %cst_47 {dimension_numbers = #tpu.dot_dimension_numbers<[1], [0], [0], [1], [0, 0, 1, 1], [], []>} : vector<8x3xf32>, vector<3x892xf32>, vector<8x892xf32> -> vector<8x892xf32>
    %77 = arith.addf %72, %76 : vector<8x892xf32>
    %c15 = arith.constant 15 : index
    %c0_48 = arith.constant 0 : index
    %c0_49 = arith.constant 0 : index
    %78 = vector.load %arg2[%c15, %c0_48, %c0_49] : memref<25x8x3xf32, #tpu.memory_space<vmem>>, vector<1x8x3xf32>
    %79 = vector.shape_cast %78 : vector<1x8x3xf32> to vector<8x3xf32>
    %80 = vector.extract_strided_slice %1 {offsets = [0, 96], sizes = [3, 892], strides = [1, 1]} : vector<3x1024xf32> to vector<3x892xf32>
    %cst_50 = arith.constant dense<0.000000e+00> : vector<8x892xf32>
    %81 = tpu.matmul %79, %80, %cst_50 {dimension_numbers = #tpu.dot_dimension_numbers<[1], [0], [0], [1], [0, 0, 1, 1], [], []>} : vector<8x3xf32>, vector<3x892xf32>, vector<8x892xf32> -> vector<8x892xf32>
    %82 = arith.addf %77, %81 : vector<8x892xf32>
    %c16 = arith.constant 16 : index
    %c0_51 = arith.constant 0 : index
    %c0_52 = arith.constant 0 : index
    %83 = vector.load %arg2[%c16, %c0_51, %c0_52] : memref<25x8x3xf32, #tpu.memory_space<vmem>>, vector<1x8x3xf32>
    %84 = vector.shape_cast %83 : vector<1x8x3xf32> to vector<8x3xf32>
    %85 = vector.extract_strided_slice %1 {offsets = [0, 97], sizes = [3, 892], strides = [1, 1]} : vector<3x1024xf32> to vector<3x892xf32>
    %cst_53 = arith.constant dense<0.000000e+00> : vector<8x892xf32>
    %86 = tpu.matmul %84, %85, %cst_53 {dimension_numbers = #tpu.dot_dimension_numbers<[1], [0], [0], [1], [0, 0, 1, 1], [], []>} : vector<8x3xf32>, vector<3x892xf32>, vector<8x892xf32> -> vector<8x892xf32>
    %87 = arith.addf %82, %86 : vector<8x892xf32>
    %c17 = arith.constant 17 : index
    %c0_54 = arith.constant 0 : index
    %c0_55 = arith.constant 0 : index
    %88 = vector.load %arg2[%c17, %c0_54, %c0_55] : memref<25x8x3xf32, #tpu.memory_space<vmem>>, vector<1x8x3xf32>
    %89 = vector.shape_cast %88 : vector<1x8x3xf32> to vector<8x3xf32>
    %90 = vector.extract_strided_slice %1 {offsets = [0, 98], sizes = [3, 892], strides = [1, 1]} : vector<3x1024xf32> to vector<3x892xf32>
    %cst_56 = arith.constant dense<0.000000e+00> : vector<8x892xf32>
    %91 = tpu.matmul %89, %90, %cst_56 {dimension_numbers = #tpu.dot_dimension_numbers<[1], [0], [0], [1], [0, 0, 1, 1], [], []>} : vector<8x3xf32>, vector<3x892xf32>, vector<8x892xf32> -> vector<8x892xf32>
    %92 = arith.addf %87, %91 : vector<8x892xf32>
    %c18 = arith.constant 18 : index
    %c0_57 = arith.constant 0 : index
    %c0_58 = arith.constant 0 : index
    %93 = vector.load %arg2[%c18, %c0_57, %c0_58] : memref<25x8x3xf32, #tpu.memory_space<vmem>>, vector<1x8x3xf32>
    %94 = vector.shape_cast %93 : vector<1x8x3xf32> to vector<8x3xf32>
    %95 = vector.extract_strided_slice %1 {offsets = [0, 99], sizes = [3, 892], strides = [1, 1]} : vector<3x1024xf32> to vector<3x892xf32>
    %cst_59 = arith.constant dense<0.000000e+00> : vector<8x892xf32>
    %96 = tpu.matmul %94, %95, %cst_59 {dimension_numbers = #tpu.dot_dimension_numbers<[1], [0], [0], [1], [0, 0, 1, 1], [], []>} : vector<8x3xf32>, vector<3x892xf32>, vector<8x892xf32> -> vector<8x892xf32>
    %97 = arith.addf %92, %96 : vector<8x892xf32>
    %c19 = arith.constant 19 : index
    %c0_60 = arith.constant 0 : index
    %c0_61 = arith.constant 0 : index
    %98 = vector.load %arg2[%c19, %c0_60, %c0_61] : memref<25x8x3xf32, #tpu.memory_space<vmem>>, vector<1x8x3xf32>
    %99 = vector.shape_cast %98 : vector<1x8x3xf32> to vector<8x3xf32>
    %100 = vector.extract_strided_slice %1 {offsets = [0, 100], sizes = [3, 892], strides = [1, 1]} : vector<3x1024xf32> to vector<3x892xf32>
    %cst_62 = arith.constant dense<0.000000e+00> : vector<8x892xf32>
    %101 = tpu.matmul %99, %100, %cst_62 {dimension_numbers = #tpu.dot_dimension_numbers<[1], [0], [0], [1], [0, 0, 1, 1], [], []>} : vector<8x3xf32>, vector<3x892xf32>, vector<8x892xf32> -> vector<8x892xf32>
    %102 = arith.addf %97, %101 : vector<8x892xf32>
    %c20 = arith.constant 20 : index
    %c0_63 = arith.constant 0 : index
    %c0_64 = arith.constant 0 : index
    %103 = vector.load %arg2[%c20, %c0_63, %c0_64] : memref<25x8x3xf32, #tpu.memory_space<vmem>>, vector<1x8x3xf32>
    %104 = vector.shape_cast %103 : vector<1x8x3xf32> to vector<8x3xf32>
    %105 = vector.extract_strided_slice %1 {offsets = [0, 128], sizes = [3, 892], strides = [1, 1]} : vector<3x1024xf32> to vector<3x892xf32>
    %cst_65 = arith.constant dense<0.000000e+00> : vector<8x892xf32>
    %106 = tpu.matmul %104, %105, %cst_65 {dimension_numbers = #tpu.dot_dimension_numbers<[1], [0], [0], [1], [0, 0, 1, 1], [], []>} : vector<8x3xf32>, vector<3x892xf32>, vector<8x892xf32> -> vector<8x892xf32>
    %107 = arith.addf %102, %106 : vector<8x892xf32>
    %c21 = arith.constant 21 : index
    %c0_66 = arith.constant 0 : index
    %c0_67 = arith.constant 0 : index
    %108 = vector.load %arg2[%c21, %c0_66, %c0_67] : memref<25x8x3xf32, #tpu.memory_space<vmem>>, vector<1x8x3xf32>
    %109 = vector.shape_cast %108 : vector<1x8x3xf32> to vector<8x3xf32>
    %110 = vector.extract_strided_slice %1 {offsets = [0, 129], sizes = [3, 892], strides = [1, 1]} : vector<3x1024xf32> to vector<3x892xf32>
    %cst_68 = arith.constant dense<0.000000e+00> : vector<8x892xf32>
    %111 = tpu.matmul %109, %110, %cst_68 {dimension_numbers = #tpu.dot_dimension_numbers<[1], [0], [0], [1], [0, 0, 1, 1], [], []>} : vector<8x3xf32>, vector<3x892xf32>, vector<8x892xf32> -> vector<8x892xf32>
    %112 = arith.addf %107, %111 : vector<8x892xf32>
    %c22 = arith.constant 22 : index
    %c0_69 = arith.constant 0 : index
    %c0_70 = arith.constant 0 : index
    %113 = vector.load %arg2[%c22, %c0_69, %c0_70] : memref<25x8x3xf32, #tpu.memory_space<vmem>>, vector<1x8x3xf32>
    %114 = vector.shape_cast %113 : vector<1x8x3xf32> to vector<8x3xf32>
    %115 = vector.extract_strided_slice %1 {offsets = [0, 130], sizes = [3, 892], strides = [1, 1]} : vector<3x1024xf32> to vector<3x892xf32>
    %cst_71 = arith.constant dense<0.000000e+00> : vector<8x892xf32>
    %116 = tpu.matmul %114, %115, %cst_71 {dimension_numbers = #tpu.dot_dimension_numbers<[1], [0], [0], [1], [0, 0, 1, 1], [], []>} : vector<8x3xf32>, vector<3x892xf32>, vector<8x892xf32> -> vector<8x892xf32>
    %117 = arith.addf %112, %116 : vector<8x892xf32>
    %c23 = arith.constant 23 : index
    %c0_72 = arith.constant 0 : index
    %c0_73 = arith.constant 0 : index
    %118 = vector.load %arg2[%c23, %c0_72, %c0_73] : memref<25x8x3xf32, #tpu.memory_space<vmem>>, vector<1x8x3xf32>
    %119 = vector.shape_cast %118 : vector<1x8x3xf32> to vector<8x3xf32>
    %120 = vector.extract_strided_slice %1 {offsets = [0, 131], sizes = [3, 892], strides = [1, 1]} : vector<3x1024xf32> to vector<3x892xf32>
    %cst_74 = arith.constant dense<0.000000e+00> : vector<8x892xf32>
    %121 = tpu.matmul %119, %120, %cst_74 {dimension_numbers = #tpu.dot_dimension_numbers<[1], [0], [0], [1], [0, 0, 1, 1], [], []>} : vector<8x3xf32>, vector<3x892xf32>, vector<8x892xf32> -> vector<8x892xf32>
    %122 = arith.addf %117, %121 : vector<8x892xf32>
    %c24 = arith.constant 24 : index
    %c0_75 = arith.constant 0 : index
    %c0_76 = arith.constant 0 : index
    %123 = vector.load %arg2[%c24, %c0_75, %c0_76] : memref<25x8x3xf32, #tpu.memory_space<vmem>>, vector<1x8x3xf32>
    %124 = vector.shape_cast %123 : vector<1x8x3xf32> to vector<8x3xf32>
    %125 = vector.extract_strided_slice %1 {offsets = [0, 132], sizes = [3, 892], strides = [1, 1]} : vector<3x1024xf32> to vector<3x892xf32>
    %cst_77 = arith.constant dense<0.000000e+00> : vector<8x892xf32>
    %126 = tpu.matmul %124, %125, %cst_77 {dimension_numbers = #tpu.dot_dimension_numbers<[1], [0], [0], [1], [0, 0, 1, 1], [], []>} : vector<8x3xf32>, vector<3x892xf32>, vector<8x892xf32> -> vector<8x892xf32>
    %127 = arith.addf %122, %126 : vector<8x892xf32>
    %c0_78 = arith.constant 0 : index
    %c0_79 = arith.constant 0 : index
    %128 = vector.load %arg3[%c0_78, %c0_79] : memref<8x1xf32, #tpu.memory_space<vmem>>, vector<8x1xf32>
    %129 = vector.broadcast %128 : vector<8x1xf32> to vector<8x892xf32>
    %130 = arith.addf %127, %129 : vector<8x892xf32>
    %cst_80 = arith.constant 0.000000e+00 : f32
    %131 = vector.broadcast %cst_80 : f32 to vector<8x892xf32>
    %132 = arith.maximumf %130, %131 : vector<8x892xf32>
    %133 = vector.extract_strided_slice %132 {offsets = [0, 0], sizes = [8, 891], strides = [1, 1]} : vector<8x892xf32> to vector<8x891xf32>
    %134 = vector.extract_strided_slice %132 {offsets = [0, 1], sizes = [8, 891], strides = [1, 1]} : vector<8x892xf32> to vector<8x891xf32>
    %135 = arith.maximumf %133, %134 : vector<8x891xf32>
    %136 = vector.extract_strided_slice %135 {offsets = [0, 0], sizes = [8, 859], strides = [1, 1]} : vector<8x891xf32> to vector<8x859xf32>
    %137 = vector.extract_strided_slice %135 {offsets = [0, 32], sizes = [8, 859], strides = [1, 1]} : vector<8x891xf32> to vector<8x859xf32>
    %138 = arith.maximumf %136, %137 : vector<8x859xf32>
    %c0_81 = arith.constant 0 : index
    %c0_82 = arith.constant 0 : index
    %139 = vector.load %arg6[%c0_81, %c0_82] : memref<859x196xf32, #tpu.memory_space<vmem>>, vector<859x196xf32>
    %cst_83 = arith.constant dense<0.000000e+00> : vector<8x196xf32>
    %140 = tpu.matmul %138, %139, %cst_83 {dimension_numbers = #tpu.dot_dimension_numbers<[1], [0], [0], [1], [0, 0, 1, 1], [], []>} : vector<8x859xf32>, vector<859x196xf32>, vector<8x196xf32> -> vector<8x196xf32>
    %cst_84 = arith.constant 0.000000e+00 : f32
    %141 = vector.broadcast %cst_84 : f32 to vector<16x136xf32>
    %c0_85 = arith.constant 0 : index
    %c0_86 = arith.constant 0 : index
    %c0_87 = arith.constant 0 : index
    %142 = vector.load %arg4[%c0_85, %c0_86, %c0_87] : memref<25x16x8xf32, #tpu.memory_space<vmem>>, vector<1x16x8xf32>
    %143 = vector.shape_cast %142 : vector<1x16x8xf32> to vector<16x8xf32>
    %144 = vector.extract_strided_slice %140 {offsets = [0, 0], sizes = [8, 136], strides = [1, 1]} : vector<8x196xf32> to vector<8x136xf32>
    %cst_88 = arith.constant dense<0.000000e+00> : vector<16x136xf32>
    %145 = tpu.matmul %143, %144, %cst_88 {dimension_numbers = #tpu.dot_dimension_numbers<[1], [0], [0], [1], [0, 0, 1, 1], [], []>} : vector<16x8xf32>, vector<8x136xf32>, vector<16x136xf32> -> vector<16x136xf32>
    %146 = arith.addf %141, %145 : vector<16x136xf32>
    %c1_89 = arith.constant 1 : index
    %c0_90 = arith.constant 0 : index
    %c0_91 = arith.constant 0 : index
    %147 = vector.load %arg4[%c1_89, %c0_90, %c0_91] : memref<25x16x8xf32, #tpu.memory_space<vmem>>, vector<1x16x8xf32>
    %148 = vector.shape_cast %147 : vector<1x16x8xf32> to vector<16x8xf32>
    %149 = vector.extract_strided_slice %140 {offsets = [0, 1], sizes = [8, 136], strides = [1, 1]} : vector<8x196xf32> to vector<8x136xf32>
    %cst_92 = arith.constant dense<0.000000e+00> : vector<16x136xf32>
    %150 = tpu.matmul %148, %149, %cst_92 {dimension_numbers = #tpu.dot_dimension_numbers<[1], [0], [0], [1], [0, 0, 1, 1], [], []>} : vector<16x8xf32>, vector<8x136xf32>, vector<16x136xf32> -> vector<16x136xf32>
    %151 = arith.addf %146, %150 : vector<16x136xf32>
    %c2_93 = arith.constant 2 : index
    %c0_94 = arith.constant 0 : index
    %c0_95 = arith.constant 0 : index
    %152 = vector.load %arg4[%c2_93, %c0_94, %c0_95] : memref<25x16x8xf32, #tpu.memory_space<vmem>>, vector<1x16x8xf32>
    %153 = vector.shape_cast %152 : vector<1x16x8xf32> to vector<16x8xf32>
    %154 = vector.extract_strided_slice %140 {offsets = [0, 2], sizes = [8, 136], strides = [1, 1]} : vector<8x196xf32> to vector<8x136xf32>
    %cst_96 = arith.constant dense<0.000000e+00> : vector<16x136xf32>
    %155 = tpu.matmul %153, %154, %cst_96 {dimension_numbers = #tpu.dot_dimension_numbers<[1], [0], [0], [1], [0, 0, 1, 1], [], []>} : vector<16x8xf32>, vector<8x136xf32>, vector<16x136xf32> -> vector<16x136xf32>
    %156 = arith.addf %151, %155 : vector<16x136xf32>
    %c3_97 = arith.constant 3 : index
    %c0_98 = arith.constant 0 : index
    %c0_99 = arith.constant 0 : index
    %157 = vector.load %arg4[%c3_97, %c0_98, %c0_99] : memref<25x16x8xf32, #tpu.memory_space<vmem>>, vector<1x16x8xf32>
    %158 = vector.shape_cast %157 : vector<1x16x8xf32> to vector<16x8xf32>
    %159 = vector.extract_strided_slice %140 {offsets = [0, 3], sizes = [8, 136], strides = [1, 1]} : vector<8x196xf32> to vector<8x136xf32>
    %cst_100 = arith.constant dense<0.000000e+00> : vector<16x136xf32>
    %160 = tpu.matmul %158, %159, %cst_100 {dimension_numbers = #tpu.dot_dimension_numbers<[1], [0], [0], [1], [0, 0, 1, 1], [], []>} : vector<16x8xf32>, vector<8x136xf32>, vector<16x136xf32> -> vector<16x136xf32>
    %161 = arith.addf %156, %160 : vector<16x136xf32>
    %c4_101 = arith.constant 4 : index
    %c0_102 = arith.constant 0 : index
    %c0_103 = arith.constant 0 : index
    %162 = vector.load %arg4[%c4_101, %c0_102, %c0_103] : memref<25x16x8xf32, #tpu.memory_space<vmem>>, vector<1x16x8xf32>
    %163 = vector.shape_cast %162 : vector<1x16x8xf32> to vector<16x8xf32>
    %164 = vector.extract_strided_slice %140 {offsets = [0, 4], sizes = [8, 136], strides = [1, 1]} : vector<8x196xf32> to vector<8x136xf32>
    %cst_104 = arith.constant dense<0.000000e+00> : vector<16x136xf32>
    %165 = tpu.matmul %163, %164, %cst_104 {dimension_numbers = #tpu.dot_dimension_numbers<[1], [0], [0], [1], [0, 0, 1, 1], [], []>} : vector<16x8xf32>, vector<8x136xf32>, vector<16x136xf32> -> vector<16x136xf32>
    %166 = arith.addf %161, %165 : vector<16x136xf32>
    %c5_105 = arith.constant 5 : index
    %c0_106 = arith.constant 0 : index
    %c0_107 = arith.constant 0 : index
    %167 = vector.load %arg4[%c5_105, %c0_106, %c0_107] : memref<25x16x8xf32, #tpu.memory_space<vmem>>, vector<1x16x8xf32>
    %168 = vector.shape_cast %167 : vector<1x16x8xf32> to vector<16x8xf32>
    %169 = vector.extract_strided_slice %140 {offsets = [0, 14], sizes = [8, 136], strides = [1, 1]} : vector<8x196xf32> to vector<8x136xf32>
    %cst_108 = arith.constant dense<0.000000e+00> : vector<16x136xf32>
    %170 = tpu.matmul %168, %169, %cst_108 {dimension_numbers = #tpu.dot_dimension_numbers<[1], [0], [0], [1], [0, 0, 1, 1], [], []>} : vector<16x8xf32>, vector<8x136xf32>, vector<16x136xf32> -> vector<16x136xf32>
    %171 = arith.addf %166, %170 : vector<16x136xf32>
    %c6_109 = arith.constant 6 : index
    %c0_110 = arith.constant 0 : index
    %c0_111 = arith.constant 0 : index
    %172 = vector.load %arg4[%c6_109, %c0_110, %c0_111] : memref<25x16x8xf32, #tpu.memory_space<vmem>>, vector<1x16x8xf32>
    %173 = vector.shape_cast %172 : vector<1x16x8xf32> to vector<16x8xf32>
    %174 = vector.extract_strided_slice %140 {offsets = [0, 15], sizes = [8, 136], strides = [1, 1]} : vector<8x196xf32> to vector<8x136xf32>
    %cst_112 = arith.constant dense<0.000000e+00> : vector<16x136xf32>
    %175 = tpu.matmul %173, %174, %cst_112 {dimension_numbers = #tpu.dot_dimension_numbers<[1], [0], [0], [1], [0, 0, 1, 1], [], []>} : vector<16x8xf32>, vector<8x136xf32>, vector<16x136xf32> -> vector<16x136xf32>
    %176 = arith.addf %171, %175 : vector<16x136xf32>
    %c7_113 = arith.constant 7 : index
    %c0_114 = arith.constant 0 : index
    %c0_115 = arith.constant 0 : index
    %177 = vector.load %arg4[%c7_113, %c0_114, %c0_115] : memref<25x16x8xf32, #tpu.memory_space<vmem>>, vector<1x16x8xf32>
    %178 = vector.shape_cast %177 : vector<1x16x8xf32> to vector<16x8xf32>
    %179 = vector.extract_strided_slice %140 {offsets = [0, 16], sizes = [8, 136], strides = [1, 1]} : vector<8x196xf32> to vector<8x136xf32>
    %cst_116 = arith.constant dense<0.000000e+00> : vector<16x136xf32>
    %180 = tpu.matmul %178, %179, %cst_116 {dimension_numbers = #tpu.dot_dimension_numbers<[1], [0], [0], [1], [0, 0, 1, 1], [], []>} : vector<16x8xf32>, vector<8x136xf32>, vector<16x136xf32> -> vector<16x136xf32>
    %181 = arith.addf %176, %180 : vector<16x136xf32>
    %c8_117 = arith.constant 8 : index
    %c0_118 = arith.constant 0 : index
    %c0_119 = arith.constant 0 : index
    %182 = vector.load %arg4[%c8_117, %c0_118, %c0_119] : memref<25x16x8xf32, #tpu.memory_space<vmem>>, vector<1x16x8xf32>
    %183 = vector.shape_cast %182 : vector<1x16x8xf32> to vector<16x8xf32>
    %184 = vector.extract_strided_slice %140 {offsets = [0, 17], sizes = [8, 136], strides = [1, 1]} : vector<8x196xf32> to vector<8x136xf32>
    %cst_120 = arith.constant dense<0.000000e+00> : vector<16x136xf32>
    %185 = tpu.matmul %183, %184, %cst_120 {dimension_numbers = #tpu.dot_dimension_numbers<[1], [0], [0], [1], [0, 0, 1, 1], [], []>} : vector<16x8xf32>, vector<8x136xf32>, vector<16x136xf32> -> vector<16x136xf32>
    %186 = arith.addf %181, %185 : vector<16x136xf32>
    %c9_121 = arith.constant 9 : index
    %c0_122 = arith.constant 0 : index
    %c0_123 = arith.constant 0 : index
    %187 = vector.load %arg4[%c9_121, %c0_122, %c0_123] : memref<25x16x8xf32, #tpu.memory_space<vmem>>, vector<1x16x8xf32>
    %188 = vector.shape_cast %187 : vector<1x16x8xf32> to vector<16x8xf32>
    %189 = vector.extract_strided_slice %140 {offsets = [0, 18], sizes = [8, 136], strides = [1, 1]} : vector<8x196xf32> to vector<8x136xf32>
    %cst_124 = arith.constant dense<0.000000e+00> : vector<16x136xf32>
    %190 = tpu.matmul %188, %189, %cst_124 {dimension_numbers = #tpu.dot_dimension_numbers<[1], [0], [0], [1], [0, 0, 1, 1], [], []>} : vector<16x8xf32>, vector<8x136xf32>, vector<16x136xf32> -> vector<16x136xf32>
    %191 = arith.addf %186, %190 : vector<16x136xf32>
    %c10_125 = arith.constant 10 : index
    %c0_126 = arith.constant 0 : index
    %c0_127 = arith.constant 0 : index
    %192 = vector.load %arg4[%c10_125, %c0_126, %c0_127] : memref<25x16x8xf32, #tpu.memory_space<vmem>>, vector<1x16x8xf32>
    %193 = vector.shape_cast %192 : vector<1x16x8xf32> to vector<16x8xf32>
    %194 = vector.extract_strided_slice %140 {offsets = [0, 28], sizes = [8, 136], strides = [1, 1]} : vector<8x196xf32> to vector<8x136xf32>
    %cst_128 = arith.constant dense<0.000000e+00> : vector<16x136xf32>
    %195 = tpu.matmul %193, %194, %cst_128 {dimension_numbers = #tpu.dot_dimension_numbers<[1], [0], [0], [1], [0, 0, 1, 1], [], []>} : vector<16x8xf32>, vector<8x136xf32>, vector<16x136xf32> -> vector<16x136xf32>
    %196 = arith.addf %191, %195 : vector<16x136xf32>
    %c11_129 = arith.constant 11 : index
    %c0_130 = arith.constant 0 : index
    %c0_131 = arith.constant 0 : index
    %197 = vector.load %arg4[%c11_129, %c0_130, %c0_131] : memref<25x16x8xf32, #tpu.memory_space<vmem>>, vector<1x16x8xf32>
    %198 = vector.shape_cast %197 : vector<1x16x8xf32> to vector<16x8xf32>
    %199 = vector.extract_strided_slice %140 {offsets = [0, 29], sizes = [8, 136], strides = [1, 1]} : vector<8x196xf32> to vector<8x136xf32>
    %cst_132 = arith.constant dense<0.000000e+00> : vector<16x136xf32>
    %200 = tpu.matmul %198, %199, %cst_132 {dimension_numbers = #tpu.dot_dimension_numbers<[1], [0], [0], [1], [0, 0, 1, 1], [], []>} : vector<16x8xf32>, vector<8x136xf32>, vector<16x136xf32> -> vector<16x136xf32>
    %201 = arith.addf %196, %200 : vector<16x136xf32>
    %c12_133 = arith.constant 12 : index
    %c0_134 = arith.constant 0 : index
    %c0_135 = arith.constant 0 : index
    %202 = vector.load %arg4[%c12_133, %c0_134, %c0_135] : memref<25x16x8xf32, #tpu.memory_space<vmem>>, vector<1x16x8xf32>
    %203 = vector.shape_cast %202 : vector<1x16x8xf32> to vector<16x8xf32>
    %204 = vector.extract_strided_slice %140 {offsets = [0, 30], sizes = [8, 136], strides = [1, 1]} : vector<8x196xf32> to vector<8x136xf32>
    %cst_136 = arith.constant dense<0.000000e+00> : vector<16x136xf32>
    %205 = tpu.matmul %203, %204, %cst_136 {dimension_numbers = #tpu.dot_dimension_numbers<[1], [0], [0], [1], [0, 0, 1, 1], [], []>} : vector<16x8xf32>, vector<8x136xf32>, vector<16x136xf32> -> vector<16x136xf32>
    %206 = arith.addf %201, %205 : vector<16x136xf32>
    %c13_137 = arith.constant 13 : index
    %c0_138 = arith.constant 0 : index
    %c0_139 = arith.constant 0 : index
    %207 = vector.load %arg4[%c13_137, %c0_138, %c0_139] : memref<25x16x8xf32, #tpu.memory_space<vmem>>, vector<1x16x8xf32>
    %208 = vector.shape_cast %207 : vector<1x16x8xf32> to vector<16x8xf32>
    %209 = vector.extract_strided_slice %140 {offsets = [0, 31], sizes = [8, 136], strides = [1, 1]} : vector<8x196xf32> to vector<8x136xf32>
    %cst_140 = arith.constant dense<0.000000e+00> : vector<16x136xf32>
    %210 = tpu.matmul %208, %209, %cst_140 {dimension_numbers = #tpu.dot_dimension_numbers<[1], [0], [0], [1], [0, 0, 1, 1], [], []>} : vector<16x8xf32>, vector<8x136xf32>, vector<16x136xf32> -> vector<16x136xf32>
    %211 = arith.addf %206, %210 : vector<16x136xf32>
    %c14_141 = arith.constant 14 : index
    %c0_142 = arith.constant 0 : index
    %c0_143 = arith.constant 0 : index
    %212 = vector.load %arg4[%c14_141, %c0_142, %c0_143] : memref<25x16x8xf32, #tpu.memory_space<vmem>>, vector<1x16x8xf32>
    %213 = vector.shape_cast %212 : vector<1x16x8xf32> to vector<16x8xf32>
    %214 = vector.extract_strided_slice %140 {offsets = [0, 32], sizes = [8, 136], strides = [1, 1]} : vector<8x196xf32> to vector<8x136xf32>
    %cst_144 = arith.constant dense<0.000000e+00> : vector<16x136xf32>
    %215 = tpu.matmul %213, %214, %cst_144 {dimension_numbers = #tpu.dot_dimension_numbers<[1], [0], [0], [1], [0, 0, 1, 1], [], []>} : vector<16x8xf32>, vector<8x136xf32>, vector<16x136xf32> -> vector<16x136xf32>
    %216 = arith.addf %211, %215 : vector<16x136xf32>
    %c15_145 = arith.constant 15 : index
    %c0_146 = arith.constant 0 : index
    %c0_147 = arith.constant 0 : index
    %217 = vector.load %arg4[%c15_145, %c0_146, %c0_147] : memref<25x16x8xf32, #tpu.memory_space<vmem>>, vector<1x16x8xf32>
    %218 = vector.shape_cast %217 : vector<1x16x8xf32> to vector<16x8xf32>
    %219 = vector.extract_strided_slice %140 {offsets = [0, 42], sizes = [8, 136], strides = [1, 1]} : vector<8x196xf32> to vector<8x136xf32>
    %cst_148 = arith.constant dense<0.000000e+00> : vector<16x136xf32>
    %220 = tpu.matmul %218, %219, %cst_148 {dimension_numbers = #tpu.dot_dimension_numbers<[1], [0], [0], [1], [0, 0, 1, 1], [], []>} : vector<16x8xf32>, vector<8x136xf32>, vector<16x136xf32> -> vector<16x136xf32>
    %221 = arith.addf %216, %220 : vector<16x136xf32>
    %c16_149 = arith.constant 16 : index
    %c0_150 = arith.constant 0 : index
    %c0_151 = arith.constant 0 : index
    %222 = vector.load %arg4[%c16_149, %c0_150, %c0_151] : memref<25x16x8xf32, #tpu.memory_space<vmem>>, vector<1x16x8xf32>
    %223 = vector.shape_cast %222 : vector<1x16x8xf32> to vector<16x8xf32>
    %224 = vector.extract_strided_slice %140 {offsets = [0, 43], sizes = [8, 136], strides = [1, 1]} : vector<8x196xf32> to vector<8x136xf32>
    %cst_152 = arith.constant dense<0.000000e+00> : vector<16x136xf32>
    %225 = tpu.matmul %223, %224, %cst_152 {dimension_numbers = #tpu.dot_dimension_numbers<[1], [0], [0], [1], [0, 0, 1, 1], [], []>} : vector<16x8xf32>, vector<8x136xf32>, vector<16x136xf32> -> vector<16x136xf32>
    %226 = arith.addf %221, %225 : vector<16x136xf32>
    %c17_153 = arith.constant 17 : index
    %c0_154 = arith.constant 0 : index
    %c0_155 = arith.constant 0 : index
    %227 = vector.load %arg4[%c17_153, %c0_154, %c0_155] : memref<25x16x8xf32, #tpu.memory_space<vmem>>, vector<1x16x8xf32>
    %228 = vector.shape_cast %227 : vector<1x16x8xf32> to vector<16x8xf32>
    %229 = vector.extract_strided_slice %140 {offsets = [0, 44], sizes = [8, 136], strides = [1, 1]} : vector<8x196xf32> to vector<8x136xf32>
    %cst_156 = arith.constant dense<0.000000e+00> : vector<16x136xf32>
    %230 = tpu.matmul %228, %229, %cst_156 {dimension_numbers = #tpu.dot_dimension_numbers<[1], [0], [0], [1], [0, 0, 1, 1], [], []>} : vector<16x8xf32>, vector<8x136xf32>, vector<16x136xf32> -> vector<16x136xf32>
    %231 = arith.addf %226, %230 : vector<16x136xf32>
    %c18_157 = arith.constant 18 : index
    %c0_158 = arith.constant 0 : index
    %c0_159 = arith.constant 0 : index
    %232 = vector.load %arg4[%c18_157, %c0_158, %c0_159] : memref<25x16x8xf32, #tpu.memory_space<vmem>>, vector<1x16x8xf32>
    %233 = vector.shape_cast %232 : vector<1x16x8xf32> to vector<16x8xf32>
    %234 = vector.extract_strided_slice %140 {offsets = [0, 45], sizes = [8, 136], strides = [1, 1]} : vector<8x196xf32> to vector<8x136xf32>
    %cst_160 = arith.constant dense<0.000000e+00> : vector<16x136xf32>
    %235 = tpu.matmul %233, %234, %cst_160 {dimension_numbers = #tpu.dot_dimension_numbers<[1], [0], [0], [1], [0, 0, 1, 1], [], []>} : vector<16x8xf32>, vector<8x136xf32>, vector<16x136xf32> -> vector<16x136xf32>
    %236 = arith.addf %231, %235 : vector<16x136xf32>
    %c19_161 = arith.constant 19 : index
    %c0_162 = arith.constant 0 : index
    %c0_163 = arith.constant 0 : index
    %237 = vector.load %arg4[%c19_161, %c0_162, %c0_163] : memref<25x16x8xf32, #tpu.memory_space<vmem>>, vector<1x16x8xf32>
    %238 = vector.shape_cast %237 : vector<1x16x8xf32> to vector<16x8xf32>
    %239 = vector.extract_strided_slice %140 {offsets = [0, 46], sizes = [8, 136], strides = [1, 1]} : vector<8x196xf32> to vector<8x136xf32>
    %cst_164 = arith.constant dense<0.000000e+00> : vector<16x136xf32>
    %240 = tpu.matmul %238, %239, %cst_164 {dimension_numbers = #tpu.dot_dimension_numbers<[1], [0], [0], [1], [0, 0, 1, 1], [], []>} : vector<16x8xf32>, vector<8x136xf32>, vector<16x136xf32> -> vector<16x136xf32>
    %241 = arith.addf %236, %240 : vector<16x136xf32>
    %c20_165 = arith.constant 20 : index
    %c0_166 = arith.constant 0 : index
    %c0_167 = arith.constant 0 : index
    %242 = vector.load %arg4[%c20_165, %c0_166, %c0_167] : memref<25x16x8xf32, #tpu.memory_space<vmem>>, vector<1x16x8xf32>
    %243 = vector.shape_cast %242 : vector<1x16x8xf32> to vector<16x8xf32>
    %244 = vector.extract_strided_slice %140 {offsets = [0, 56], sizes = [8, 136], strides = [1, 1]} : vector<8x196xf32> to vector<8x136xf32>
    %cst_168 = arith.constant dense<0.000000e+00> : vector<16x136xf32>
    %245 = tpu.matmul %243, %244, %cst_168 {dimension_numbers = #tpu.dot_dimension_numbers<[1], [0], [0], [1], [0, 0, 1, 1], [], []>} : vector<16x8xf32>, vector<8x136xf32>, vector<16x136xf32> -> vector<16x136xf32>
    %246 = arith.addf %241, %245 : vector<16x136xf32>
    %c21_169 = arith.constant 21 : index
    %c0_170 = arith.constant 0 : index
    %c0_171 = arith.constant 0 : index
    %247 = vector.load %arg4[%c21_169, %c0_170, %c0_171] : memref<25x16x8xf32, #tpu.memory_space<vmem>>, vector<1x16x8xf32>
    %248 = vector.shape_cast %247 : vector<1x16x8xf32> to vector<16x8xf32>
    %249 = vector.extract_strided_slice %140 {offsets = [0, 57], sizes = [8, 136], strides = [1, 1]} : vector<8x196xf32> to vector<8x136xf32>
    %cst_172 = arith.constant dense<0.000000e+00> : vector<16x136xf32>
    %250 = tpu.matmul %248, %249, %cst_172 {dimension_numbers = #tpu.dot_dimension_numbers<[1], [0], [0], [1], [0, 0, 1, 1], [], []>} : vector<16x8xf32>, vector<8x136xf32>, vector<16x136xf32> -> vector<16x136xf32>
    %251 = arith.addf %246, %250 : vector<16x136xf32>
    %c22_173 = arith.constant 22 : index
    %c0_174 = arith.constant 0 : index
    %c0_175 = arith.constant 0 : index
    %252 = vector.load %arg4[%c22_173, %c0_174, %c0_175] : memref<25x16x8xf32, #tpu.memory_space<vmem>>, vector<1x16x8xf32>
    %253 = vector.shape_cast %252 : vector<1x16x8xf32> to vector<16x8xf32>
    %254 = vector.extract_strided_slice %140 {offsets = [0, 58], sizes = [8, 136], strides = [1, 1]} : vector<8x196xf32> to vector<8x136xf32>
    %cst_176 = arith.constant dense<0.000000e+00> : vector<16x136xf32>
    %255 = tpu.matmul %253, %254, %cst_176 {dimension_numbers = #tpu.dot_dimension_numbers<[1], [0], [0], [1], [0, 0, 1, 1], [], []>} : vector<16x8xf32>, vector<8x136xf32>, vector<16x136xf32> -> vector<16x136xf32>
    %256 = arith.addf %251, %255 : vector<16x136xf32>
    %c23_177 = arith.constant 23 : index
    %c0_178 = arith.constant 0 : index
    %c0_179 = arith.constant 0 : index
    %257 = vector.load %arg4[%c23_177, %c0_178, %c0_179] : memref<25x16x8xf32, #tpu.memory_space<vmem>>, vector<1x16x8xf32>
    %258 = vector.shape_cast %257 : vector<1x16x8xf32> to vector<16x8xf32>
    %259 = vector.extract_strided_slice %140 {offsets = [0, 59], sizes = [8, 136], strides = [1, 1]} : vector<8x196xf32> to vector<8x136xf32>
    %cst_180 = arith.constant dense<0.000000e+00> : vector<16x136xf32>
    %260 = tpu.matmul %258, %259, %cst_180 {dimension_numbers = #tpu.dot_dimension_numbers<[1], [0], [0], [1], [0, 0, 1, 1], [], []>} : vector<16x8xf32>, vector<8x136xf32>, vector<16x136xf32> -> vector<16x136xf32>
    %261 = arith.addf %256, %260 : vector<16x136xf32>
    %c24_181 = arith.constant 24 : index
    %c0_182 = arith.constant 0 : index
    %c0_183 = arith.constant 0 : index
    %262 = vector.load %arg4[%c24_181, %c0_182, %c0_183] : memref<25x16x8xf32, #tpu.memory_space<vmem>>, vector<1x16x8xf32>
    %263 = vector.shape_cast %262 : vector<1x16x8xf32> to vector<16x8xf32>
    %264 = vector.extract_strided_slice %140 {offsets = [0, 60], sizes = [8, 136], strides = [1, 1]} : vector<8x196xf32> to vector<8x136xf32>
    %cst_184 = arith.constant dense<0.000000e+00> : vector<16x136xf32>
    %265 = tpu.matmul %263, %264, %cst_184 {dimension_numbers = #tpu.dot_dimension_numbers<[1], [0], [0], [1], [0, 0, 1, 1], [], []>} : vector<16x8xf32>, vector<8x136xf32>, vector<16x136xf32> -> vector<16x136xf32>
    %266 = arith.addf %261, %265 : vector<16x136xf32>
    %c0_185 = arith.constant 0 : index
    %c0_186 = arith.constant 0 : index
    %267 = vector.load %arg5[%c0_185, %c0_186] : memref<16x1xf32, #tpu.memory_space<vmem>>, vector<16x1xf32>
    %268 = vector.broadcast %267 : vector<16x1xf32> to vector<16x136xf32>
    %269 = arith.addf %266, %268 : vector<16x136xf32>
    %cst_187 = arith.constant 0.000000e+00 : f32
    %270 = vector.broadcast %cst_187 : f32 to vector<16x136xf32>
    %271 = arith.maximumf %269, %270 : vector<16x136xf32>
    %272 = vector.extract_strided_slice %271 {offsets = [0, 0], sizes = [16, 135], strides = [1, 1]} : vector<16x136xf32> to vector<16x135xf32>
    %273 = vector.extract_strided_slice %271 {offsets = [0, 1], sizes = [16, 135], strides = [1, 1]} : vector<16x136xf32> to vector<16x135xf32>
    %274 = arith.maximumf %272, %273 : vector<16x135xf32>
    %275 = vector.extract_strided_slice %274 {offsets = [0, 0], sizes = [16, 121], strides = [1, 1]} : vector<16x135xf32> to vector<16x121xf32>
    %276 = vector.extract_strided_slice %274 {offsets = [0, 14], sizes = [16, 121], strides = [1, 1]} : vector<16x135xf32> to vector<16x121xf32>
    %277 = arith.maximumf %275, %276 : vector<16x121xf32>
    %c0_188 = arith.constant 0 : index
    %c0_189 = arith.constant 0 : index
    %278 = vector.load %arg7[%c0_188, %c0_189] : memref<121x128xf32, #tpu.memory_space<vmem>>, vector<121x128xf32>
    %cst_190 = arith.constant dense<0.000000e+00> : vector<16x128xf32>
    %279 = tpu.matmul %277, %278, %cst_190 {dimension_numbers = #tpu.dot_dimension_numbers<[1], [0], [0], [1], [0, 0, 1, 1], [], []>} : vector<16x121xf32>, vector<121x128xf32>, vector<16x128xf32> -> vector<16x128xf32>
    %c0_191 = arith.constant 0 : index
    %c0_192 = arith.constant 0 : index
    %280 = vector.load %arg9[%c0_191, %c0_192] : memref<1x128xf32, #tpu.memory_space<vmem>>, vector<1x128xf32>
    %281 = vector.extract_strided_slice %279 {offsets = [0, 0], sizes = [1, 128], strides = [1, 1]} : vector<16x128xf32> to vector<1x128xf32>
    %c0_193 = arith.constant 0 : index
    %c0_194 = arith.constant 0 : index
    %c0_195 = arith.constant 0 : index
    %282 = vector.load %arg8[%c0_193, %c0_194, %c0_195] : memref<16x128x128xf32, #tpu.memory_space<vmem>>, vector<1x128x128xf32>
    %283 = vector.shape_cast %282 : vector<1x128x128xf32> to vector<128x128xf32>
    %cst_196 = arith.constant dense<0.000000e+00> : vector<1x128xf32>
    %284 = tpu.matmul %281, %283, %cst_196 {dimension_numbers = #tpu.dot_dimension_numbers<[1], [0], [0], [1], [0, 0, 1, 1], [], []>} : vector<1x128xf32>, vector<128x128xf32>, vector<1x128xf32> -> vector<1x128xf32>
    %285 = arith.addf %280, %284 : vector<1x128xf32>
    %286 = vector.extract_strided_slice %279 {offsets = [1, 0], sizes = [1, 128], strides = [1, 1]} : vector<16x128xf32> to vector<1x128xf32>
    %c1_197 = arith.constant 1 : index
    %c0_198 = arith.constant 0 : index
    %c0_199 = arith.constant 0 : index
    %287 = vector.load %arg8[%c1_197, %c0_198, %c0_199] : memref<16x128x128xf32, #tpu.memory_space<vmem>>, vector<1x128x128xf32>
    %288 = vector.shape_cast %287 : vector<1x128x128xf32> to vector<128x128xf32>
    %cst_200 = arith.constant dense<0.000000e+00> : vector<1x128xf32>
    %289 = tpu.matmul %286, %288, %cst_200 {dimension_numbers = #tpu.dot_dimension_numbers<[1], [0], [0], [1], [0, 0, 1, 1], [], []>} : vector<1x128xf32>, vector<128x128xf32>, vector<1x128xf32> -> vector<1x128xf32>
    %290 = arith.addf %285, %289 : vector<1x128xf32>
    %291 = vector.extract_strided_slice %279 {offsets = [2, 0], sizes = [1, 128], strides = [1, 1]} : vector<16x128xf32> to vector<1x128xf32>
    %c2_201 = arith.constant 2 : index
    %c0_202 = arith.constant 0 : index
    %c0_203 = arith.constant 0 : index
    %292 = vector.load %arg8[%c2_201, %c0_202, %c0_203] : memref<16x128x128xf32, #tpu.memory_space<vmem>>, vector<1x128x128xf32>
    %293 = vector.shape_cast %292 : vector<1x128x128xf32> to vector<128x128xf32>
    %cst_204 = arith.constant dense<0.000000e+00> : vector<1x128xf32>
    %294 = tpu.matmul %291, %293, %cst_204 {dimension_numbers = #tpu.dot_dimension_numbers<[1], [0], [0], [1], [0, 0, 1, 1], [], []>} : vector<1x128xf32>, vector<128x128xf32>, vector<1x128xf32> -> vector<1x128xf32>
    %295 = arith.addf %290, %294 : vector<1x128xf32>
    %296 = vector.extract_strided_slice %279 {offsets = [3, 0], sizes = [1, 128], strides = [1, 1]} : vector<16x128xf32> to vector<1x128xf32>
    %c3_205 = arith.constant 3 : index
    %c0_206 = arith.constant 0 : index
    %c0_207 = arith.constant 0 : index
    %297 = vector.load %arg8[%c3_205, %c0_206, %c0_207] : memref<16x128x128xf32, #tpu.memory_space<vmem>>, vector<1x128x128xf32>
    %298 = vector.shape_cast %297 : vector<1x128x128xf32> to vector<128x128xf32>
    %cst_208 = arith.constant dense<0.000000e+00> : vector<1x128xf32>
    %299 = tpu.matmul %296, %298, %cst_208 {dimension_numbers = #tpu.dot_dimension_numbers<[1], [0], [0], [1], [0, 0, 1, 1], [], []>} : vector<1x128xf32>, vector<128x128xf32>, vector<1x128xf32> -> vector<1x128xf32>
    %300 = arith.addf %295, %299 : vector<1x128xf32>
    %301 = vector.extract_strided_slice %279 {offsets = [4, 0], sizes = [1, 128], strides = [1, 1]} : vector<16x128xf32> to vector<1x128xf32>
    %c4_209 = arith.constant 4 : index
    %c0_210 = arith.constant 0 : index
    %c0_211 = arith.constant 0 : index
    %302 = vector.load %arg8[%c4_209, %c0_210, %c0_211] : memref<16x128x128xf32, #tpu.memory_space<vmem>>, vector<1x128x128xf32>
    %303 = vector.shape_cast %302 : vector<1x128x128xf32> to vector<128x128xf32>
    %cst_212 = arith.constant dense<0.000000e+00> : vector<1x128xf32>
    %304 = tpu.matmul %301, %303, %cst_212 {dimension_numbers = #tpu.dot_dimension_numbers<[1], [0], [0], [1], [0, 0, 1, 1], [], []>} : vector<1x128xf32>, vector<128x128xf32>, vector<1x128xf32> -> vector<1x128xf32>
    %305 = arith.addf %300, %304 : vector<1x128xf32>
    %306 = vector.extract_strided_slice %279 {offsets = [5, 0], sizes = [1, 128], strides = [1, 1]} : vector<16x128xf32> to vector<1x128xf32>
    %c5_213 = arith.constant 5 : index
    %c0_214 = arith.constant 0 : index
    %c0_215 = arith.constant 0 : index
    %307 = vector.load %arg8[%c5_213, %c0_214, %c0_215] : memref<16x128x128xf32, #tpu.memory_space<vmem>>, vector<1x128x128xf32>
    %308 = vector.shape_cast %307 : vector<1x128x128xf32> to vector<128x128xf32>
    %cst_216 = arith.constant dense<0.000000e+00> : vector<1x128xf32>
    %309 = tpu.matmul %306, %308, %cst_216 {dimension_numbers = #tpu.dot_dimension_numbers<[1], [0], [0], [1], [0, 0, 1, 1], [], []>} : vector<1x128xf32>, vector<128x128xf32>, vector<1x128xf32> -> vector<1x128xf32>
    %310 = arith.addf %305, %309 : vector<1x128xf32>
    %311 = vector.extract_strided_slice %279 {offsets = [6, 0], sizes = [1, 128], strides = [1, 1]} : vector<16x128xf32> to vector<1x128xf32>
    %c6_217 = arith.constant 6 : index
    %c0_218 = arith.constant 0 : index
    %c0_219 = arith.constant 0 : index
    %312 = vector.load %arg8[%c6_217, %c0_218, %c0_219] : memref<16x128x128xf32, #tpu.memory_space<vmem>>, vector<1x128x128xf32>
    %313 = vector.shape_cast %312 : vector<1x128x128xf32> to vector<128x128xf32>
    %cst_220 = arith.constant dense<0.000000e+00> : vector<1x128xf32>
    %314 = tpu.matmul %311, %313, %cst_220 {dimension_numbers = #tpu.dot_dimension_numbers<[1], [0], [0], [1], [0, 0, 1, 1], [], []>} : vector<1x128xf32>, vector<128x128xf32>, vector<1x128xf32> -> vector<1x128xf32>
    %315 = arith.addf %310, %314 : vector<1x128xf32>
    %316 = vector.extract_strided_slice %279 {offsets = [7, 0], sizes = [1, 128], strides = [1, 1]} : vector<16x128xf32> to vector<1x128xf32>
    %c7_221 = arith.constant 7 : index
    %c0_222 = arith.constant 0 : index
    %c0_223 = arith.constant 0 : index
    %317 = vector.load %arg8[%c7_221, %c0_222, %c0_223] : memref<16x128x128xf32, #tpu.memory_space<vmem>>, vector<1x128x128xf32>
    %318 = vector.shape_cast %317 : vector<1x128x128xf32> to vector<128x128xf32>
    %cst_224 = arith.constant dense<0.000000e+00> : vector<1x128xf32>
    %319 = tpu.matmul %316, %318, %cst_224 {dimension_numbers = #tpu.dot_dimension_numbers<[1], [0], [0], [1], [0, 0, 1, 1], [], []>} : vector<1x128xf32>, vector<128x128xf32>, vector<1x128xf32> -> vector<1x128xf32>
    %320 = arith.addf %315, %319 : vector<1x128xf32>
    %321 = vector.extract_strided_slice %279 {offsets = [8, 0], sizes = [1, 128], strides = [1, 1]} : vector<16x128xf32> to vector<1x128xf32>
    %c8_225 = arith.constant 8 : index
    %c0_226 = arith.constant 0 : index
    %c0_227 = arith.constant 0 : index
    %322 = vector.load %arg8[%c8_225, %c0_226, %c0_227] : memref<16x128x128xf32, #tpu.memory_space<vmem>>, vector<1x128x128xf32>
    %323 = vector.shape_cast %322 : vector<1x128x128xf32> to vector<128x128xf32>
    %cst_228 = arith.constant dense<0.000000e+00> : vector<1x128xf32>
    %324 = tpu.matmul %321, %323, %cst_228 {dimension_numbers = #tpu.dot_dimension_numbers<[1], [0], [0], [1], [0, 0, 1, 1], [], []>} : vector<1x128xf32>, vector<128x128xf32>, vector<1x128xf32> -> vector<1x128xf32>
    %325 = arith.addf %320, %324 : vector<1x128xf32>
    %326 = vector.extract_strided_slice %279 {offsets = [9, 0], sizes = [1, 128], strides = [1, 1]} : vector<16x128xf32> to vector<1x128xf32>
    %c9_229 = arith.constant 9 : index
    %c0_230 = arith.constant 0 : index
    %c0_231 = arith.constant 0 : index
    %327 = vector.load %arg8[%c9_229, %c0_230, %c0_231] : memref<16x128x128xf32, #tpu.memory_space<vmem>>, vector<1x128x128xf32>
    %328 = vector.shape_cast %327 : vector<1x128x128xf32> to vector<128x128xf32>
    %cst_232 = arith.constant dense<0.000000e+00> : vector<1x128xf32>
    %329 = tpu.matmul %326, %328, %cst_232 {dimension_numbers = #tpu.dot_dimension_numbers<[1], [0], [0], [1], [0, 0, 1, 1], [], []>} : vector<1x128xf32>, vector<128x128xf32>, vector<1x128xf32> -> vector<1x128xf32>
    %330 = arith.addf %325, %329 : vector<1x128xf32>
    %331 = vector.extract_strided_slice %279 {offsets = [10, 0], sizes = [1, 128], strides = [1, 1]} : vector<16x128xf32> to vector<1x128xf32>
    %c10_233 = arith.constant 10 : index
    %c0_234 = arith.constant 0 : index
    %c0_235 = arith.constant 0 : index
    %332 = vector.load %arg8[%c10_233, %c0_234, %c0_235] : memref<16x128x128xf32, #tpu.memory_space<vmem>>, vector<1x128x128xf32>
    %333 = vector.shape_cast %332 : vector<1x128x128xf32> to vector<128x128xf32>
    %cst_236 = arith.constant dense<0.000000e+00> : vector<1x128xf32>
    %334 = tpu.matmul %331, %333, %cst_236 {dimension_numbers = #tpu.dot_dimension_numbers<[1], [0], [0], [1], [0, 0, 1, 1], [], []>} : vector<1x128xf32>, vector<128x128xf32>, vector<1x128xf32> -> vector<1x128xf32>
    %335 = arith.addf %330, %334 : vector<1x128xf32>
    %336 = vector.extract_strided_slice %279 {offsets = [11, 0], sizes = [1, 128], strides = [1, 1]} : vector<16x128xf32> to vector<1x128xf32>
    %c11_237 = arith.constant 11 : index
    %c0_238 = arith.constant 0 : index
    %c0_239 = arith.constant 0 : index
    %337 = vector.load %arg8[%c11_237, %c0_238, %c0_239] : memref<16x128x128xf32, #tpu.memory_space<vmem>>, vector<1x128x128xf32>
    %338 = vector.shape_cast %337 : vector<1x128x128xf32> to vector<128x128xf32>
    %cst_240 = arith.constant dense<0.000000e+00> : vector<1x128xf32>
    %339 = tpu.matmul %336, %338, %cst_240 {dimension_numbers = #tpu.dot_dimension_numbers<[1], [0], [0], [1], [0, 0, 1, 1], [], []>} : vector<1x128xf32>, vector<128x128xf32>, vector<1x128xf32> -> vector<1x128xf32>
    %340 = arith.addf %335, %339 : vector<1x128xf32>
    %341 = vector.extract_strided_slice %279 {offsets = [12, 0], sizes = [1, 128], strides = [1, 1]} : vector<16x128xf32> to vector<1x128xf32>
    %c12_241 = arith.constant 12 : index
    %c0_242 = arith.constant 0 : index
    %c0_243 = arith.constant 0 : index
    %342 = vector.load %arg8[%c12_241, %c0_242, %c0_243] : memref<16x128x128xf32, #tpu.memory_space<vmem>>, vector<1x128x128xf32>
    %343 = vector.shape_cast %342 : vector<1x128x128xf32> to vector<128x128xf32>
    %cst_244 = arith.constant dense<0.000000e+00> : vector<1x128xf32>
    %344 = tpu.matmul %341, %343, %cst_244 {dimension_numbers = #tpu.dot_dimension_numbers<[1], [0], [0], [1], [0, 0, 1, 1], [], []>} : vector<1x128xf32>, vector<128x128xf32>, vector<1x128xf32> -> vector<1x128xf32>
    %345 = arith.addf %340, %344 : vector<1x128xf32>
    %346 = vector.extract_strided_slice %279 {offsets = [13, 0], sizes = [1, 128], strides = [1, 1]} : vector<16x128xf32> to vector<1x128xf32>
    %c13_245 = arith.constant 13 : index
    %c0_246 = arith.constant 0 : index
    %c0_247 = arith.constant 0 : index
    %347 = vector.load %arg8[%c13_245, %c0_246, %c0_247] : memref<16x128x128xf32, #tpu.memory_space<vmem>>, vector<1x128x128xf32>
    %348 = vector.shape_cast %347 : vector<1x128x128xf32> to vector<128x128xf32>
    %cst_248 = arith.constant dense<0.000000e+00> : vector<1x128xf32>
    %349 = tpu.matmul %346, %348, %cst_248 {dimension_numbers = #tpu.dot_dimension_numbers<[1], [0], [0], [1], [0, 0, 1, 1], [], []>} : vector<1x128xf32>, vector<128x128xf32>, vector<1x128xf32> -> vector<1x128xf32>
    %350 = arith.addf %345, %349 : vector<1x128xf32>
    %351 = vector.extract_strided_slice %279 {offsets = [14, 0], sizes = [1, 128], strides = [1, 1]} : vector<16x128xf32> to vector<1x128xf32>
    %c14_249 = arith.constant 14 : index
    %c0_250 = arith.constant 0 : index
    %c0_251 = arith.constant 0 : index
    %352 = vector.load %arg8[%c14_249, %c0_250, %c0_251] : memref<16x128x128xf32, #tpu.memory_space<vmem>>, vector<1x128x128xf32>
    %353 = vector.shape_cast %352 : vector<1x128x128xf32> to vector<128x128xf32>
    %cst_252 = arith.constant dense<0.000000e+00> : vector<1x128xf32>
    %354 = tpu.matmul %351, %353, %cst_252 {dimension_numbers = #tpu.dot_dimension_numbers<[1], [0], [0], [1], [0, 0, 1, 1], [], []>} : vector<1x128xf32>, vector<128x128xf32>, vector<1x128xf32> -> vector<1x128xf32>
    %355 = arith.addf %350, %354 : vector<1x128xf32>
    %356 = vector.extract_strided_slice %279 {offsets = [15, 0], sizes = [1, 128], strides = [1, 1]} : vector<16x128xf32> to vector<1x128xf32>
    %c15_253 = arith.constant 15 : index
    %c0_254 = arith.constant 0 : index
    %c0_255 = arith.constant 0 : index
    %357 = vector.load %arg8[%c15_253, %c0_254, %c0_255] : memref<16x128x128xf32, #tpu.memory_space<vmem>>, vector<1x128x128xf32>
    %358 = vector.shape_cast %357 : vector<1x128x128xf32> to vector<128x128xf32>
    %cst_256 = arith.constant dense<0.000000e+00> : vector<1x128xf32>
    %359 = tpu.matmul %356, %358, %cst_256 {dimension_numbers = #tpu.dot_dimension_numbers<[1], [0], [0], [1], [0, 0, 1, 1], [], []>} : vector<1x128xf32>, vector<128x128xf32>, vector<1x128xf32> -> vector<1x128xf32>
    %360 = arith.addf %355, %359 : vector<1x128xf32>
    %cst_257 = arith.constant 0.000000e+00 : f32
    %361 = vector.broadcast %cst_257 : f32 to vector<1x128xf32>
    %362 = arith.maximumf %360, %361 : vector<1x128xf32>
    %c0_258 = arith.constant 0 : index
    %c0_259 = arith.constant 0 : index
    %363 = vector.load %arg10[%c0_258, %c0_259] : memref<128x128xf32, #tpu.memory_space<vmem>>, vector<128x128xf32>
    %cst_260 = arith.constant dense<0.000000e+00> : vector<1x128xf32>
    %364 = tpu.matmul %362, %363, %cst_260 {dimension_numbers = #tpu.dot_dimension_numbers<[1], [0], [0], [1], [0, 0, 1, 1], [], []>} : vector<1x128xf32>, vector<128x128xf32>, vector<1x128xf32> -> vector<1x128xf32>
    %c0_261 = arith.constant 0 : index
    %c0_262 = arith.constant 0 : index
    %365 = vector.load %arg11[%c0_261, %c0_262] : memref<1x128xf32, #tpu.memory_space<vmem>>, vector<1x128xf32>
    %366 = arith.addf %364, %365 : vector<1x128xf32>
    %cst_263 = arith.constant 0.000000e+00 : f32
    %367 = vector.broadcast %cst_263 : f32 to vector<1x128xf32>
    %368 = arith.maximumf %366, %367 : vector<1x128xf32>
    %c0_264 = arith.constant 0 : index
    %c0_265 = arith.constant 0 : index
    %369 = vector.load %arg12[%c0_264, %c0_265] : memref<128x128xf32, #tpu.memory_space<vmem>>, vector<128x128xf32>
    %cst_266 = arith.constant dense<0.000000e+00> : vector<1x128xf32>
    %370 = tpu.matmul %368, %369, %cst_266 {dimension_numbers = #tpu.dot_dimension_numbers<[1], [0], [0], [1], [0, 0, 1, 1], [], []>} : vector<1x128xf32>, vector<128x128xf32>, vector<1x128xf32> -> vector<1x128xf32>
    %c0_267 = arith.constant 0 : index
    %c0_268 = arith.constant 0 : index
    %371 = vector.load %arg13[%c0_267, %c0_268] : memref<1x128xf32, #tpu.memory_space<vmem>>, vector<1x128xf32>
    %372 = arith.addf %370, %371 : vector<1x128xf32>
    %c0_269 = arith.constant 0 : index
    %c0_270 = arith.constant 0 : index
    %c0_271 = arith.constant 0 : index
    %373 = vector.load %arg14[%c0_269, %c0_270, %c0_271] : memref<1x1x128xf32, #tpu.memory_space<vmem>>, vector<1x1x128xf32>
    %374 = vector.shape_cast %373 : vector<1x1x128xf32> to vector<1x128xf32>
    %375 = vector.shape_cast %372 : vector<1x128xf32> to vector<1x1x128xf32>
    tpu.vector_store %arg14[%c0_269, %c0_270, %c0_271], %375 {strides = array<i32>} : memref<1x1x128xf32, #tpu.memory_space<vmem>>, vector<1x1x128xf32>,
    return
  }
  func.func @transform_0(%arg0: i32) -> (i32, i32, i32) {
    %c0_i32 = arith.constant 0 : i32
    %c0_i32_0 = arith.constant 0 : i32
    %c0_i32_1 = arith.constant 0 : i32
    return %arg0, %c0_i32, %c0_i32_0 : i32, i32, i32
  }
  func.func @transform_1(%arg0: i32) -> (i32, i32, i32) {
    %c0_i32 = arith.constant 0 : i32
    %c0_i32_0 = arith.constant 0 : i32
    %c0_i32_1 = arith.constant 0 : i32
    %c0_i32_2 = arith.constant 0 : i32
    return %c0_i32, %c0_i32_0, %c0_i32_1 : i32, i32, i32
  }
  func.func @transform_2(%arg0: i32) -> (i32, i32) {
    %c0_i32 = arith.constant 0 : i32
    %c0_i32_0 = arith.constant 0 : i32
    %c0_i32_1 = arith.constant 0 : i32
    return %c0_i32, %c0_i32_0 : i32, i32
  }
  func.func @transform_3(%arg0: i32) -> (i32, i32, i32) {
    %c0_i32 = arith.constant 0 : i32
    %c0_i32_0 = arith.constant 0 : i32
    %c0_i32_1 = arith.constant 0 : i32
    %c0_i32_2 = arith.constant 0 : i32
    return %c0_i32, %c0_i32_0, %c0_i32_1 : i32, i32, i32
  }
  func.func @transform_4(%arg0: i32) -> (i32, i32) {
    %c0_i32 = arith.constant 0 : i32
    %c0_i32_0 = arith.constant 0 : i32
    %c0_i32_1 = arith.constant 0 : i32
    return %c0_i32, %c0_i32_0 : i32, i32
  }
  func.func @transform_5(%arg0: i32) -> (i32, i32) {
    %c0_i32 = arith.constant 0 : i32
    %c0_i32_0 = arith.constant 0 : i32
    %c0_i32_1 = arith.constant 0 : i32
    return %c0_i32, %c0_i32_0 : i32, i32
  }
  func.func @transform_6(%arg0: i32) -> (i32, i32) {
    %c0_i32 = arith.constant 0 : i32
    %c0_i32_0 = arith.constant 0 : i32
    %c0_i32_1 = arith.constant 0 : i32
    return %c0_i32, %c0_i32_0 : i32, i32
  }
  func.func @transform_7(%arg0: i32) -> (i32, i32, i32) {
    %c0_i32 = arith.constant 0 : i32
    %c0_i32_0 = arith.constant 0 : i32
    %c0_i32_1 = arith.constant 0 : i32
    %c0_i32_2 = arith.constant 0 : i32
    return %c0_i32, %c0_i32_0, %c0_i32_1 : i32, i32, i32
  }
  func.func @transform_8(%arg0: i32) -> (i32, i32) {
    %c0_i32 = arith.constant 0 : i32
    %c0_i32_0 = arith.constant 0 : i32
    %c0_i32_1 = arith.constant 0 : i32
    return %c0_i32, %c0_i32_0 : i32, i32
  }
  func.func @transform_9(%arg0: i32) -> (i32, i32) {
    %c0_i32 = arith.constant 0 : i32
    %c0_i32_0 = arith.constant 0 : i32
    %c0_i32_1 = arith.constant 0 : i32
    return %c0_i32, %c0_i32_0 : i32, i32
  }
  func.func @transform_10(%arg0: i32) -> (i32, i32) {
    %c0_i32 = arith.constant 0 : i32
    %c0_i32_0 = arith.constant 0 : i32
    %c0_i32_1 = arith.constant 0 : i32
    return %c0_i32, %c0_i32_0 : i32, i32
  }
  func.func @transform_11(%arg0: i32) -> (i32, i32) {
    %c0_i32 = arith.constant 0 : i32
    %c0_i32_0 = arith.constant 0 : i32
    %c0_i32_1 = arith.constant 0 : i32
    return %c0_i32, %c0_i32_0 : i32, i32
  }
  func.func @transform_12(%arg0: i32) -> (i32, i32) {
    %c0_i32 = arith.constant 0 : i32
    %c0_i32_0 = arith.constant 0 : i32
    %c0_i32_1 = arith.constant 0 : i32
    return %c0_i32, %c0_i32_0 : i32, i32
  }
  func.func @transform_13(%arg0: i32) -> (i32, i32, i32) {
    %c0_i32 = arith.constant 0 : i32
    %c0_i32_0 = arith.constant 0 : i32
    %c0_i32_1 = arith.constant 0 : i32
    return %arg0, %c0_i32, %c0_i32_0 : i32, i32, i32
  }
}

</mosaic_0001>

<bundles_post_ra>
// kernel: convnet2_forward.1
= control target key start
LH: loop header
LB: loop body
LE: loop exit
PB: predicated region body
PF: predicated region fallthrough
CT: control target
= control target key end

     0   :  { %s19892_s0 = inlined_call_operand.vmem [shape: f32[2,3,1024], index: 0, kind: input, shape index: {}]   ;;  %s19893_s1 = inlined_call_operand.vmem [shape: f32[25,8,3], index: 1, kind: input, shape index: {}]   ;;  %s19894_s2 = inlined_call_operand.vmem [shape: f32[8,1], index: 2, kind: input, shape index: {}]   ;;  %s19895_s3 = inlined_call_operand.vmem [shape: f32[25,16,8], index: 3, kind: input, shape index: {}]   ;;  %s19896_s4 = inlined_call_operand.vmem [shape: f32[16,1], index: 4, kind: input, shape index: {}]   ;;  %s19897_s5 = inlined_call_operand.vmem [shape: f32[859,196], index: 5, kind: input, shape index: {}]   ;;  %s19898_s6 = inlined_call_operand.vmem [shape: f32[121,128], index: 6, kind: input, shape index: {}]   ;;  %s19899_s7 = inlined_call_operand.vmem [shape: f32[16,128,128], index: 7, kind: input, shape index: {}]   ;;  %s19900_s8 = inlined_call_operand.vmem [shape: f32[1,128], index: 8, kind: input, shape index: {}]   ;;  %s19901_s9 = inlined_call_operand.vmem [shape: f32[128,128], index: 9, kind: input, shape index: {}]   ;;  %s19902_s10 = inlined_call_operand.vmem [shape: f32[1,128], index: 10, kind: input, shape index: {}]   ;;  %s19903_s11 = inlined_call_operand.vmem [shape: f32[128,128], index: 11, kind: input, shape index: {}]   ;;  %s19904_s12 = inlined_call_operand.vmem [shape: f32[1,128], index: 12, kind: input, shape index: {}]   ;;  %s19905_s13 = inlined_call_operand.hbm [shape: f32[2,1,128], index: 13, kind: output, shape index: {}]  }
   0x1   :  { %19917 = sst [smem:[#allocation7_spill]] %s19892_s0 }
   0x2   :  { %19918 = sst [smem:[#allocation8_spill]] %s19893_s1 }
   0x3   :  { %19919 = sst [smem:[#allocation9_spill]] %s19894_s2 }
   0x4   :  { %18 = vsyncpa [#allocation3], 0 }
   0x5   :  { %20 = vsyncpa [#allocation3 + $0x1], 0  ;;  %s16527_s25 = smov 0   ;;  %s16529_s26 = smov 0  }
   0x6   :  { %s16531_s27 = smov 0   ;;  %s16533_s28 = smov 0  }
   0x7 LB: > { %19920 = sst [smem:[#allocation5_spill]] %s16407_s27  ;;  %s16548_s29 = sadd.s32 4294967295, %s16411_s28   ;;  %s16411_s28 = sphi %s16533_s28, %s19936_s28   ;;  %s16407_s27 = sphi %s16531_s27, %s19933_s27   ;;  %s16403_s26 = sphi %s16529_s26, %s19935_s26   ;;  %s16399_s25 = sphi %s16527_s25, %s19934_s25  }
   0x8   : > { %s13454_s30 = sadd.s32 4294967294, %s16411_s28   ;;  %s16552_s14 = sadd.s32 1, %s16411_s28  }
   0x9   : > { %s311_s15 = sadd.s32 1, %s16407_s27  ;;  %s308_s16 = ssub.s32 %s16411_s28, %s16552_s14 }
   0xa   : > { %p321_p0 = scmp.ne.s32.totalorder %s16407_s27, %s16403_s26  ;;  %p309_p1 = scmp.eq.s32.totalorder %s308_s16, 0 }
   0xb   : > { %p322_p2 = scmp.eq.s32.totalorder %s16548_s29, 1  ;;  %p327_p3 = scmp.ne.s32.totalorder %s16403_s26, %s16399_s25 }
   0xc   : > { %p328_p4 = scmp.eq.s32.totalorder %s13454_s30, 1  ;;  %p13457_p7 = scmp.ge.s32.totalorder %s16411_s28, 1 }
   0xd   : > { %s16563_s17 = scalar_select %p309_p1, %s16407_s27, %s311_s15  }
   0xe   : > { %p16565_p5 = por %p322_p2, %p321_p0  ;;  %p16569_p6 = por %p328_p4, %p327_p3 }
   0xf   : > { %19921 = sst [smem:[#allocation6_spill]] %s16563_s17  ;;  %p390_p8 = scmp.lt.s32.totalorder %s16411_s28, 3 }
  0x11   : > { %p391_p9 = pnand %p13457_p7, %p390_p8 }
  0x12   : > { %p433_p10 = scmp.lt.s32.totalorder (!%p391_p9), %s16548_s29, 1  ;;  %v16413_v0 = vmov (!%p391_p9), 0.0   ;;  %s19924_s0 = sld [smem:[#allocation7_spill]] (!%p391_p9)  ;;  %vm466_vm0 = vcmask (!%p391_p9), 1039360   ;;  %vm477_vm1 = vcmask (!%p391_p9), 1042432   ;;  %vm473_vm2 = vcmask (!%p391_p9), 23552  }
  0x13   : > { %394 = sbr.rel (%p391_p9) target bundleno = 3494 (0xda6), region = 72  ;;  %627 = vmatprep.mubr.f32.mxu1 (!%p391_p9), %v16413_v0  ;;  %556 = vmatprep.mubr.f32.mxu0 (!%p391_p9), %v16413_v0  ;;  %s19914_s30 = smov (!%p391_p9), 127   ;;  %vm16423_vm3 = vmmov (!%p391_p9), 0   ;;  %vm1091_vm4 = vcmask (!%p391_p9), 1031168   ;;  %vm1421_vm5 = vcmask (!%p391_p9), 1022976   ;;  %vm1751_vm6 = vcmask (!%p391_p9), 1014784  }
  0x14   : > { %s19912_s15 = smov (!%p391_p9), 126   ;;  %s19908_s16 = smov (!%p391_p9), 125   ;;  %vm2084_vm7 = vcmask (!%p391_p9), 785408   ;;  %vm2417_vm8 = vcmask (!%p391_p9), 777216   ;;  %vm2750_vm9 = vcmask (!%p391_p9), 769024   ;;  %vm3083_vm10 = vcmask (!%p391_p9), 760832  }
  0x15   : > { %s16419_s22 = smov (!%p391_p9), 95   ;;  %s16420_s23 = smov (!%p391_p9), 94   ;;  %vm3416_vm11 = vcmask (!%p391_p9), 752640   ;;  %vm3749_vm12 = vcmask (!%p391_p9), 523264   ;;  %vm4082_vm13 = vcmask (!%p391_p9), 515072   ;;  %vm4415_vm14 = vcmask (!%p391_p9), 506880  }
  0x16   : > { %s19925_s1 = sld [smem:[#allocation8_spill]] (!%p391_p9)  ;;  %vm4748_vm15 = vcmask (!%p391_p9), 498688   ;;  %s19927_s2 = sld [smem:[#allocation9_spill]] (!%p391_p9) }
  0x17   : > { %s19930_s27 = smov (!%p391_p9), 126   ;;  %s16436_s17 = smov (!%p391_p9), 114  }
  0x1a   : > { %s434_s20 = scalar_select %p433_p10, %s16548_s29, 1 }
  0x1c   : > { %s14106_s21 = sshll.u32 %s434_s20, 5  ;;  %s19910_s20 = smov 124   ;;  %v13460_v15 = vld [vmem:[%s19925_s1 + $0x8] sm:$0xff]  ;;  %v442_v26 = vld [vmem:[%s19925_s1] sm:$0xff]  ;;  %v13483_v38 = vld [vmem:[%s19925_s1 + $0x10] sm:$0xff] }
  0x1d   : > { %s16582_s24 = scalar_lea.vmem %s19924_s0, %s14106_s21  ;;  %s19906_s21 = smov 96   ;;  %v13495_v48 = vld [vmem:[%s19925_s1 + $0x18] sm:$0xff]  ;;  %v13507_v60 = vld [vmem:[%s19925_s1 + $0x20] sm:$0xff] }
  0x1e   : > { %v16585_v1 = vld [vmem:[%s16582_s24 + $0x10] sm:$0x77]  ;;  %v16588_v2 = vld [vmem:[%s16582_s24 + $0x8] sm:$0x77]  ;;  %v16599_v4 = vld [vmem:[%s16582_s24] sm:$0x77] }
  0x1f   : > { %460 = vrot.lane.b32.xlu1 %v16585_v1, %s19914_s30  ;;  %456 = vrot.lane.b32.xlu0 %v16588_v2, %s19914_s30  ;;  %v16596_v3 = vcombine.high %v16588_v2, %v16588_v2  ;;  %v16607_v5 = vcombine.high %v16585_v1, %v16585_v1  ;;  %v16611_v6 = vcombine.high %v16599_v4, %v16599_v4  ;;  %v16618_v7 = vld [vmem:[%s16582_s24 + $0x18] sm:$0x77]  ;;  %s16444_s0 = smov 97  }
  0x20   : > { %v16678_v8 = vcombine.high %v16618_v7, %v16618_v7 }
  0x23   : > { %458 = vrot.lane.b32.xlu1 %v16596_v3, %s19914_s30  ;;  %452 = vrot.lane.b32.xlu0 %v16599_v4, %s19914_s30 }
  0x27   : > { %462 = vrot.lane.b32.xlu1 %v16607_v5, %s19914_s30  ;;  %454 = vrot.lane.b32.xlu0 %v16611_v6, %s19914_s30 }
  0x2b   : > { %1079 = vrot.lane.b32.xlu1 %v16611_v6, %s19912_s15  ;;  %464 = vrot.lane.b32.xlu0 %v16618_v7, %s19914_s30 }
  0x2f   : > { %1083 = vrot.lane.b32.xlu1 %v16596_v3, %s19912_s15  ;;  %1081 = vrot.lane.b32.xlu0 %v16588_v2, %s19912_s15 }
  0x33   : > { %1077 = vrot.lane.b32.xlu1 %v16599_v4, %s19912_s15  ;;  %1085 = vrot.lane.b32.xlu0 %v16585_v1, %s19912_s15 }
  0x37   : > { %1089 = vrot.lane.b32.xlu1 %v16618_v7, %s19912_s15  ;;  %1087 = vrot.lane.b32.xlu0 %v16607_v5, %s19912_s15 }
  0x3b   : > { %1411 = vrot.lane.b32.xlu1 %v16588_v2, %s19908_s16  ;;  %1409 = vrot.lane.b32.xlu0 %v16611_v6, %s19908_s16 }
  0x3f   : > { %1415 = vrot.lane.b32.xlu1 %v16585_v1, %s19908_s16  ;;  %1413 = vrot.lane.b32.xlu0 %v16596_v3, %s19908_s16 }
  0x43   : > { %1417 = vrot.lane.b32.xlu1 %v16607_v5, %s19908_s16  ;;  %1407 = vrot.lane.b32.xlu0 %v16599_v4, %s19908_s16 }
  0x47   : > { %1739 = vrot.lane.b32.xlu1 %v16611_v6, %s19910_s20  ;;  %1419 = vrot.lane.b32.xlu0 %v16618_v7, %s19908_s16  ;;  %s16422_s16 = smov 92  }
  0x4b   : > { %1743 = vrot.lane.b32.xlu1 %v16596_v3, %s19910_s20  ;;  %1741 = vrot.lane.b32.xlu0 %v16588_v2, %s19910_s20 }
  0x4f   : > { %1737 = vrot.lane.b32.xlu1 %v16599_v4, %s19910_s20  ;;  %1745 = vrot.lane.b32.xlu0 %v16585_v1, %s19910_s20 }
  0x53   : > { %1749 = vrot.lane.b32.xlu1 %v16618_v7, %s19910_s20  ;;  %1747 = vrot.lane.b32.xlu0 %v16607_v5, %s19910_s20 }
  0x57   : > { %2072 = vrot.lane.b32.xlu1 %v16588_v2, %s19906_s21  ;;  %2070 = vrot.lane.b32.xlu0 %v16611_v6, %s19906_s21 }
  0x5b   : > { %2076 = vrot.lane.b32.xlu1 %v16585_v1, %s19906_s21  ;;  %2074 = vrot.lane.b32.xlu0 %v16596_v3, %s19906_s21 }
  0x5f   : > { %2078 = vrot.lane.b32.xlu1 %v16607_v5, %s19906_s21  ;;  %2068 = vrot.lane.b32.xlu0 %v16599_v4, %s19906_s21 }
  0x63   : > { %2082 = vrot.lane.b32.xlu1 %v16678_v8, %s19906_s21  ;;  %2080 = vrot.lane.b32.xlu0 %v16618_v7, %s19906_s21  ;;  %s16421_s21 = smov 93  }
  0x67   : > { %2405 = vrot.lane.b32.xlu1 %v16588_v2, %s16419_s22  ;;  %2403 = vrot.lane.b32.xlu0 %v16611_v6, %s16419_s22 }
  0x6b   : > { %2409 = vrot.lane.b32.xlu1 %v16585_v1, %s16419_s22  ;;  %2407 = vrot.lane.b32.xlu0 %v16596_v3, %s16419_s22 }
  0x6f   : > { %2411 = vrot.lane.b32.xlu1 %v16607_v5, %s16419_s22  ;;  %2401 = vrot.lane.b32.xlu0 %v16599_v4, %s16419_s22 }
  0x73   : > { %2415 = vrot.lane.b32.xlu1 %v16678_v8, %s16419_s22  ;;  %2413 = vrot.lane.b32.xlu0 %v16618_v7, %s16419_s22  ;;  %s16427_s22 = smov 61  }
  0x77   : > { %2738 = vrot.lane.b32.xlu1 %v16588_v2, %s16420_s23  ;;  %2736 = vrot.lane.b32.xlu0 %v16611_v6, %s16420_s23 }
  0x7b   : > { %2742 = vrot.lane.b32.xlu1 %v16585_v1, %s16420_s23  ;;  %2740 = vrot.lane.b32.xlu0 %v16596_v3, %s16420_s23 }
  0x7f   : > { %2744 = vrot.lane.b32.xlu1 %v16607_v5, %s16420_s23  ;;  %2734 = vrot.lane.b32.xlu0 %v16599_v4, %s16420_s23 }
  0x83   : > { %2748 = vrot.lane.b32.xlu1 %v16678_v8, %s16420_s23  ;;  %2746 = vrot.lane.b32.xlu0 %v16618_v7, %s16420_s23  ;;  %s16426_s23 = smov 62  }
  0x87   : > { %3071 = vrot.lane.b32.xlu1 %v16588_v2, %s16421_s21  ;;  %3069 = vrot.lane.b32.xlu0 %v16611_v6, %s16421_s21 }
  0x8b   : > { %3075 = vrot.lane.b32.xlu1 %v16585_v1, %s16421_s21  ;;  %3073 = vrot.lane.b32.xlu0 %v16596_v3, %s16421_s21 }
  0x8f   : > { %3077 = vrot.lane.b32.xlu1 %v16607_v5, %s16421_s21  ;;  %3067 = vrot.lane.b32.xlu0 %v16599_v4, %s16421_s21 }
  0x91   : > { %v461_v9 = vpop.permute.xlu1 %460  ;;  %v457_v10 = vpop.permute.xlu0 %456 }
  0x93   : > { %3081 = vrot.lane.b32.xlu1 %v16678_v8, %s16421_s21  ;;  %3079 = vrot.lane.b32.xlu0 %v16618_v7, %s16421_s21  ;;  %s16428_s21 = smov 60  }
  0x95   : > { %v459_v11 = vpop.permute.xlu1 %458  ;;  %v453_v12 = vpop.permute.xlu0 %452 }
  0x96   : > { %v16709_v13 = vsel %vm466_vm0, %v459_v11, %v461_v9  ;;  %v16712_v14 = vsel %vm466_vm0, %v457_v10, %v459_v11 }
  0x97   : > { %13464 = vmatprep.subr.msk.mxu1 %vm477_vm1, %v16709_v13  ;;  %3404 = vrot.lane.b32.xlu1 %v16588_v2, %s16422_s16 }
  0x98   : > { %3402 = vrot.lane.b32.xlu0 %v16611_v6, %s16422_s16  ;;  %13465 = vmatpush1.msk.msra.mxu1 %vm477_vm1, %v16712_v14 }
  0x99   : > { %v463_v16 = vpop.permute.xlu1 %462  ;;  %v455_v17 = vpop.permute.xlu0 %454  ;;  %13466 = vmatmul.mubr.msk.f32.vlgmr.msra.gmra.mrb[0].mxu1 %vm473_vm2, %v13460_v15  ;;  %14481 = vmatprep.subr.mxu1 %v16413_v0 }
  0x9a   : > { %v16728_v18 = vsel %vm466_vm0, %v455_v17, %v457_v10  ;;  %v467_v19 = vsel %vm466_vm0, %v453_v12, %v455_v17  ;;  %14483 = vmatprep.mubr.msk.f32.mxu1 %vm16423_vm3, %v16413_v0  ;;  %v16751_v23 = vsel %vm466_vm0, %v461_v9, %v463_v16 }
  0x9b   : > { %3408 = vrot.lane.b32.xlu1 %v16585_v1, %s16422_s16  ;;  %13461 = vmatprep.subr.msk.mxu0 %vm477_vm1, %v16728_v18 }
  0x9c   : > { %3406 = vrot.lane.b32.xlu0 %v16596_v3, %s16422_s16  ;;  %13462 = vmatpush1.msk.msra.mxu0 %vm477_vm1, %v467_v19 }
  0x9d   : > { %v1080_v20 = vpop.permute.xlu1 %1079  ;;  %13463 = vmatmul.mubr.msk.f32.vlgmr.msra.gmra.mrb[0].mxu0 %vm473_vm2, %v13460_v15  ;;  %v16741_v21 = vpop.permute.xlu0 %464 }
  0x9e   : > { %14482 = vmatpush3.msk.msra.mxu1 %vm477_vm1, %v16741_v21  ;;  %v16747_v22 = vsel %vm466_vm0, %v463_v16, %v16741_v21  ;;  %698 = vmatprep.mubr.f32.mxu0 %v16413_v0 }
  0x9f   : > { %3410 = vrot.lane.b32.xlu1 %v16607_v5, %s16422_s16  ;;  %13467 = vmatprep.subr.msk.mxu0 %vm477_vm1, %v16747_v22 }
  0xa0   : > { %3400 = vrot.lane.b32.xlu0 %v16599_v4, %s16422_s16  ;;  %13468 = vmatpush1.msk.msra.mxu0 %vm477_vm1, %v16751_v23 }
  0xa1   : > { %14484 = vmatmul.mubr.msk.f32.vlgmr.msra.gmra.mrb[2].mxu1 %vm473_vm2, %v13460_v15  ;;  %v1084_v24 = vpop.permute.xlu1 %1083  ;;  %13469 = vmatmul.mubr.msk.f32.vlgmr.msra.gmra.mrb[2].mxu0 %vm473_vm2, %v13460_v15  ;;  %v1082_v25 = vpop.permute.xlu0 %1081 }
  0xa2   : > { %13472 = vmatprep.subr.msk.mxu0 %vm477_vm1, %v16611_v6  ;;  %13475 = vmatprep.subr.msk.mxu1 %vm477_vm1, %v16596_v3  ;;  %v16790_v29 = vsel %vm1091_vm4, %v1080_v20, %v1082_v25  ;;  %v16809_v33 = vsel %vm1091_vm4, %v1082_v25, %v1084_v24 }
  0xa3   : > { %3414 = vrot.lane.b32.xlu1 %v16678_v8, %s16422_s16  ;;  %13473 = vmatpush1.msk.msra.mxu0 %vm477_vm1, %v16599_v4 }
  0xa4   : > { %3412 = vrot.lane.b32.xlu0 %v16618_v7, %s16422_s16  ;;  %13476 = vmatpush1.msk.msra.mxu1 %vm477_vm1, %v16588_v2  ;;  %s16424_s16 = smov 64  }
  0xa5   : > { %927 = vmatprep.mubr.f32.mxu1 %v16413_v0  ;;  %856 = vmatprep.mubr.f32.mxu0 %v16413_v0  ;;  %v1078_v27 = vpop.permute.xlu1 %1077  ;;  %v1086_v28 = vpop.permute.xlu0 %1085 }
  0xa6   : > { %13477 = vmatmul.mubr.msk.f32.vlgmr.msra.gmra.mrb[0].mxu1 %vm473_vm2, %v442_v26  ;;  %13478 = vmatprep.subr.msk.mxu0 %vm477_vm1, %v16607_v5  ;;  %v16793_v30 = vsel %vm1091_vm4, %v1084_v24, %v1086_v28  ;;  %v1092_v34 = vsel %vm1091_vm4, %v1078_v27, %v1080_v20  ;;  %v13519_v24 = vld [vmem:[%s19925_s1 + $0x28] sm:$0xff] }
  0xa7   : > { %13474 = vmatmul.mubr.msk.f32.vlgmr.msra.gmra.mrb[0].mxu0 %vm473_vm2, %v442_v26  ;;  %14486 = vmatprep.subr.mxu1 %v16413_v0 }
  0xa8   : > { %13479 = vmatpush1.msk.msra.mxu0 %vm477_vm1, %v16585_v1  ;;  %14487 = vmatpush3.msk.msra.mxu1 %vm477_vm1, %v16618_v7 }
  0xa9   : > { %13484 = vmatprep.subr.msk.mxu0 %vm477_vm1, %v16790_v29  ;;  %3737 = vrot.lane.b32.xlu1 %v16588_v2, %s16424_s16  ;;  %v16799_v31 = vpop.permute.xlu1 %1089  ;;  %v1088_v32 = vpop.permute.xlu0 %1087 }
  0xaa   : > { %3735 = vrot.lane.b32.xlu0 %v16611_v6, %s16424_s16  ;;  %14488 = vmatprep.mubr.msk.f32.mxu1 %vm16423_vm3, %v16413_v0  ;;  %v16816_v35 = vsel %vm1091_vm4, %v1088_v32, %v16799_v31  ;;  %v16834_v39 = vsel %vm1091_vm4, %v1086_v28, %v1088_v32 }
  0xab   : > { %13487 = vmatprep.subr.msk.mxu1 %vm477_vm1, %v16793_v30  ;;  %998 = vmatprep.mubr.f32.mxu0 %v16413_v0 }
  0xac   : > { %14489 = vmatmul.mubr.msk.f32.vlgmr.msra.gmra.mrb[4].mxu1 %vm473_vm2, %v442_v26  ;;  %13480 = vmatmul.mubr.msk.f32.vlgmr.msra.gmra.mrb[2].mxu0 %vm473_vm2, %v442_v26 }
  0xad   : > { %13488 = vmatpush1.msk.msra.mxu1 %vm477_vm1, %v16809_v33  ;;  %13485 = vmatpush1.msk.msra.mxu0 %vm477_vm1, %v1092_v34  ;;  %v1412_v36 = vpop.permute.xlu1 %1411  ;;  %v1410_v37 = vpop.permute.xlu0 %1409 }
  0xae   : > { %3741 = vrot.lane.b32.xlu1 %v16585_v1, %s16424_s16  ;;  %3739 = vrot.lane.b32.xlu0 %v16596_v3, %s16424_s16  ;;  %v16839_v40 = vsel %vm1421_vm5, %v1410_v37, %v1412_v36 }
  0xaf   : > { %1250 = vmatprep.mubr.f32.mxu1 %v16413_v0  ;;  %13490 = vmatprep.subr.msk.mxu0 %vm477_vm1, %v16816_v35 }
  0xb0   : > { %14491 = vmatprep.subr.mxu1 %v16413_v0  ;;  %1179 = vmatprep.mubr.f32.mxu0 %v16413_v0 }
  0xb1   : > { %13489 = vmatmul.mubr.msk.f32.vlgmr.msra.gmra.mrb[0].mxu1 %vm473_vm2, %v13483_v38  ;;  %13486 = vmatmul.mubr.msk.f32.vlgmr.msra.gmra.mrb[0].mxu0 %vm473_vm2, %v13483_v38  ;;  %v1416_v41 = vpop.permute.xlu1 %1415  ;;  %v1414_v42 = vpop.permute.xlu0 %1413 }
  0xb2   : > { %14492 = vmatpush3.msk.msra.mxu1 %vm477_vm1, %v16799_v31  ;;  %13491 = vmatpush1.msk.msra.mxu0 %vm477_vm1, %v16834_v39  ;;  %v16846_v43 = vsel %vm1421_vm5, %v1414_v42, %v1416_v41  ;;  %v16853_v44 = vsel %vm1421_vm5, %v1412_v36, %v1414_v42 }
  0xb3   : > { %3743 = vrot.lane.b32.xlu1 %v16607_v5, %s16424_s16  ;;  %3733 = vrot.lane.b32.xlu0 %v16599_v4, %s16424_s16 }
  0xb4   : > { %13496 = vmatprep.subr.msk.mxu0 %vm477_vm1, %v16839_v40  ;;  %14493 = vmatprep.mubr.msk.f32.mxu1 %vm16423_vm3, %v16413_v0 }
  0xb5   : > { %13499 = vmatprep.subr.msk.mxu1 %vm477_vm1, %v16846_v43  ;;  %14494 = vmatmul.mubr.msk.f32.vlgmr.msra.gmra.mrb[6].mxu1 %vm473_vm2, %v13483_v38  ;;  %v1418_v45 = vpop.permute.xlu1 %1417  ;;  %v1408_v46 = vpop.permute.xlu0 %1407 }
  0xb6   : > { %13500 = vmatpush1.msk.msra.mxu1 %vm477_vm1, %v16853_v44  ;;  %v1422_v47 = vsel %vm1421_vm5, %v1408_v46, %v1410_v37  ;;  %1321 = vmatprep.mubr.f32.mxu0 %v16413_v0  ;;  %v16894_v52 = vsel %vm1421_vm5, %v1416_v41, %v1418_v45 }
  0xb7   : > { %3747 = vrot.lane.b32.xlu1 %v16678_v8, %s16424_s16  ;;  %3745 = vrot.lane.b32.xlu0 %v16618_v7, %s16424_s16  ;;  %s16425_s16 = smov 63  }
  0xb8   : > { %13492 = vmatmul.mubr.msk.f32.vlgmr.msra.gmra.mrb[2].mxu0 %vm473_vm2, %v13483_v38  ;;  %1580 = vmatprep.mubr.f32.mxu1 %v16413_v0 }
  0xb9   : > { %13497 = vmatpush1.msk.msra.mxu0 %vm477_vm1, %v1422_v47  ;;  %v1740_v49 = vpop.permute.xlu1 %1739  ;;  %14496 = vmatprep.subr.mxu1 %v16413_v0  ;;  %v16877_v50 = vpop.permute.xlu0 %1419 }
  0xba   : > { %13501 = vmatmul.mubr.msk.f32.vlgmr.msra.gmra.mrb[0].mxu1 %vm473_vm2, %v13495_v48  ;;  %1509 = vmatprep.mubr.f32.mxu0 %v16413_v0  ;;  %v16883_v51 = vsel %vm1421_vm5, %v1418_v45, %v16877_v50 }
  0xbb   : > { %4070 = vrot.lane.b32.xlu1 %v16588_v2, %s16425_s16  ;;  %4068 = vrot.lane.b32.xlu0 %v16611_v6, %s16425_s16 }
  0xbc   : > { %14497 = vmatpush3.msk.msra.mxu1 %vm477_vm1, %v16877_v50  ;;  %13502 = vmatprep.subr.msk.mxu0 %vm477_vm1, %v16883_v51 }
  0xbd   : > { %13498 = vmatmul.mubr.msk.f32.vlgmr.msra.gmra.mrb[0].mxu0 %vm473_vm2, %v13495_v48  ;;  %v1744_v53 = vpop.permute.xlu1 %1743  ;;  %v1742_v54 = vpop.permute.xlu0 %1741  ;;  %14498 = vmatprep.mubr.msk.f32.mxu1 %vm16423_vm3, %v16413_v0 }
  0xbe   : > { %13503 = vmatpush1.msk.msra.mxu0 %vm477_vm1, %v16894_v52  ;;  %v16902_v55 = vsel %vm1751_vm6, %v1740_v49, %v1742_v54  ;;  %1651 = vmatprep.mubr.f32.mxu0 %v16413_v0  ;;  %v16927_v61 = vsel %vm1751_vm6, %v1742_v54, %v1744_v53 }
  0xbf   : > { %4074 = vrot.lane.b32.xlu1 %v16585_v1, %s16425_s16  ;;  %4072 = vrot.lane.b32.xlu0 %v16596_v3, %s16425_s16 }
  0xc0   : > { %13508 = vmatprep.subr.msk.mxu0 %vm477_vm1, %v16902_v55  ;;  %14499 = vmatmul.mubr.msk.f32.vlgmr.msra.gmra.mrb[8].mxu1 %vm473_vm2, %v13495_v48 }
  0xc1   : > { %v1738_v56 = vpop.permute.xlu1 %1737  ;;  %v1746_v57 = vpop.permute.xlu0 %1745  ;;  %13504 = vmatmul.mubr.msk.f32.vlgmr.msra.gmra.mrb[2].mxu0 %vm473_vm2, %v13495_v48  ;;  %1910 = vmatprep.mubr.f32.mxu1 %v16413_v0 }
  0xc2   : > { %v1752_v58 = vsel %vm1751_vm6, %v1738_v56, %v1740_v49  ;;  %v16916_v59 = vsel %vm1751_vm6, %v1744_v53, %v1746_v57  ;;  %1839 = vmatprep.mubr.f32.mxu0 %v16413_v0  ;;  %v13531_v49 = vld [vmem:[%s19925_s1 + $0x30] sm:$0xff] }
  0xc3   : > { %4076 = vrot.lane.b32.xlu1 %v16607_v5, %s16425_s16  ;;  %4066 = vrot.lane.b32.xlu0 %v16599_v4, %s16425_s16 }
  0xc4   : > { %13509 = vmatpush1.msk.msra.mxu0 %vm477_vm1, %v1752_v58  ;;  %13511 = vmatprep.subr.msk.mxu1 %vm477_vm1, %v16916_v59 }
  0xc5   : > { %13512 = vmatpush1.msk.msra.mxu1 %vm477_vm1, %v16927_v61  ;;  %v16934_v62 = vpop.permute.xlu1 %1749  ;;  %v1748_v63 = vpop.permute.xlu0 %1747  ;;  %13510 = vmatmul.mubr.msk.f32.vlgmr.msra.gmra.mrb[0].mxu0 %vm473_vm2, %v13507_v60 }
  0xc6   : > { %v16938_v9 = vsel %vm1751_vm6, %v1746_v57, %v1748_v63  ;;  %v16942_v10 = vsel %vm1751_vm6, %v1748_v63, %v16934_v62  ;;  %14501 = vmatprep.subr.mxu1 %v16413_v0  ;;  %13513 = vmatmul.mubr.msk.f32.vlgmr.msra.gmra.mrb[0].mxu1 %vm473_vm2, %v13507_v60 }
  0xc7   : > { %4080 = vrot.lane.b32.xlu1 %v16678_v8, %s16425_s16  ;;  %4078 = vrot.lane.b32.xlu0 %v16618_v7, %s16425_s16  ;;  %s16429_s16 = smov 32  }
  0xc8   : > { %13514 = vmatprep.subr.msk.mxu0 %vm477_vm1, %v16942_v10  ;;  %14502 = vmatpush3.msk.msra.mxu1 %vm477_vm1, %v16934_v62 }
  0xc9   : > { %13515 = vmatpush1.msk.msra.mxu0 %vm477_vm1, %v16938_v9  ;;  %v2073_v11 = vpop.permute.xlu1 %2072  ;;  %v2071_v12 = vpop.permute.xlu0 %2070  ;;  %14503 = vmatprep.mubr.msk.f32.mxu1 %vm16423_vm3, %v16413_v0 }
  0xca   : > { %v2086_v15 = vsel %vm2084_vm7, %v2071_v12, %v2073_v11  ;;  %14504 = vmatmul.mubr.msk.f32.vlgmr.msra.gmra.mrb[10].mxu1 %vm473_vm2, %v13507_v60  ;;  %1981 = vmatprep.mubr.f32.mxu0 %v16413_v0 }
  0xcb   : > { %4403 = vrot.lane.b32.xlu1 %v16588_v2, %s16426_s23  ;;  %4401 = vrot.lane.b32.xlu0 %v16611_v6, %s16426_s23 }
  0xcc   : > { %13520 = vmatprep.subr.msk.mxu0 %vm477_vm1, %v2086_v15  ;;  %13516 = vmatmul.mubr.msk.f32.vlgmr.msra.gmra.mrb[2].mxu0 %vm473_vm2, %v13507_v60 }
  0xcd   : > { %v2077_v16 = vpop.permute.xlu1 %2076  ;;  %v2075_v17 = vpop.permute.xlu0 %2074  ;;  %2244 = vmatprep.mubr.f32.mxu1 %v16413_v0  ;;  %2173 = vmatprep.mubr.f32.mxu0 %v16413_v0 }
  0xce   : > { %v2087_v19 = vsel %vm2084_vm7, %v2073_v11, %v2075_v17  ;;  %v2088_v20 = vsel %vm2084_vm7, %v2075_v17, %v2077_v16 }
  0xcf   : > { %4407 = vrot.lane.b32.xlu1 %v16585_v1, %s16426_s23  ;;  %4405 = vrot.lane.b32.xlu0 %v16596_v3, %s16426_s23 }
  0xd0   : > { %13523 = vmatprep.subr.msk.mxu1 %vm477_vm1, %v2088_v20 }
  0xd1   : > { %13524 = vmatpush1.msk.msra.mxu1 %vm477_vm1, %v2087_v19  ;;  %v2079_v25 = vpop.permute.xlu1 %2078  ;;  %v2069_v26 = vpop.permute.xlu0 %2068 }
  0xd2   : > { %v2085_v27 = vsel %vm2084_vm7, %v2069_v26, %v2071_v12  ;;  %14506 = vmatprep.subr.mxu1 %v16413_v0  ;;  %13525 = vmatmul.mubr.msk.f32.vlgmr.msra.gmra.mrb[0].mxu1 %vm473_vm2, %v13519_v24  ;;  %v2089_v37 = vsel %vm2084_vm7, %v2077_v16, %v2079_v25 }
  0xd3   : > { %4409 = vrot.lane.b32.xlu1 %v16607_v5, %s16426_s23  ;;  %4399 = vrot.lane.b32.xlu0 %v16599_v4, %s16426_s23 }
  0xd4   : > { %13521 = vmatpush1.msk.msra.mxu0 %vm477_vm1, %v2085_v27  ;;  %14508 = vmatprep.mubr.msk.f32.mxu1 %vm16423_vm3, %v16413_v0 }
  0xd5   : > { %v2083_v28 = vpop.permute.xlu1 %2082  ;;  %v2081_v32 = vpop.permute.xlu0 %2080  ;;  %13522 = vmatmul.mubr.msk.f32.vlgmr.msra.gmra.mrb[0].mxu0 %vm473_vm2, %v13519_v24 }
  0xd6   : > { %v2091_v34 = vsel %vm2084_vm7, %v2081_v32, %v2083_v28  ;;  %v2090_v36 = vsel %vm2084_vm7, %v2079_v25, %v2081_v32  ;;  %2315 = vmatprep.mubr.f32.mxu0 %v16413_v0  ;;  %v13543_v25 = vld [vmem:[%s19925_s1 + $0x38] sm:$0xff] }
  0xd7   : > { %4413 = vrot.lane.b32.xlu1 %v16678_v8, %s16426_s23  ;;  %4411 = vrot.lane.b32.xlu0 %v16618_v7, %s16426_s23  ;;  %s16430_s23 = smov 31  }
  0xd8   : > { %13526 = vmatprep.subr.msk.mxu0 %vm477_vm1, %v2090_v36  ;;  %14507 = vmatpush3.msk.msra.mxu1 %vm477_vm1, %v2091_v34 }
  0xd9   : > { %13527 = vmatpush1.msk.msra.mxu0 %vm477_vm1, %v2089_v37  ;;  %v2406_v38 = vpop.permute.xlu1 %2405  ;;  %v2404_v41 = vpop.permute.xlu0 %2403  ;;  %14509 = vmatmul.mubr.msk.f32.vlgmr.msra.gmra.mrb[12].mxu1 %vm473_vm2, %v13519_v24 }
  0xda   : > { %v2419_v42 = vsel %vm2417_vm8, %v2404_v41, %v2406_v38  ;;  %13528 = vmatmul.mubr.msk.f32.vlgmr.msra.gmra.mrb[2].mxu0 %vm473_vm2, %v13519_v24  ;;  %2577 = vmatprep.mubr.f32.mxu1 %v16413_v0 }
  0xdb   : > { %4736 = vrot.lane.b32.xlu1 %v16588_v2, %s16427_s22  ;;  %4734 = vrot.lane.b32.xlu0 %v16611_v6, %s16427_s22 }
  0xdc   : > { %13532 = vmatprep.subr.msk.mxu0 %vm477_vm1, %v2419_v42  ;;  %2506 = vmatprep.mubr.f32.mxu0 %v16413_v0 }
  0xdd   : > { %v2410_v45 = vpop.permute.xlu1 %2409  ;;  %v2408_v46 = vpop.permute.xlu0 %2407 }
  0xde   : > { %v2420_v47 = vsel %vm2417_vm8, %v2406_v38, %v2408_v46  ;;  %v2421_v48 = vsel %vm2417_vm8, %v2408_v46, %v2410_v45 }
  0xdf   : > { %4740 = vrot.lane.b32.xlu1 %v16585_v1, %s16427_s22  ;;  %4738 = vrot.lane.b32.xlu0 %v16596_v3, %s16427_s22 }
  0xe0   : > { %13535 = vmatprep.subr.msk.mxu1 %vm477_vm1, %v2421_v48 }
  0xe1   : > { %13536 = vmatpush1.msk.msra.mxu1 %vm477_vm1, %v2420_v47  ;;  %v2412_v53 = vpop.permute.xlu1 %2411  ;;  %v2402_v54 = vpop.permute.xlu0 %2401 }
  0xe2   : > { %v2418_v56 = vsel %vm2417_vm8, %v2402_v54, %v2404_v41  ;;  %14511 = vmatprep.subr.mxu1 %v16413_v0  ;;  %13537 = vmatmul.mubr.msk.f32.vlgmr.msra.gmra.mrb[0].mxu1 %vm473_vm2, %v13531_v49  ;;  %v2422_v11 = vsel %vm2417_vm8, %v2410_v45, %v2412_v53 }
  0xe3   : > { %4742 = vrot.lane.b32.xlu1 %v16607_v5, %s16427_s22  ;;  %4732 = vrot.lane.b32.xlu0 %v16599_v4, %s16427_s22 }
  0xe4   : > { %13533 = vmatpush1.msk.msra.mxu0 %vm477_vm1, %v2418_v56  ;;  %14513 = vmatprep.mubr.msk.f32.mxu1 %vm16423_vm3, %v16413_v0 }
  0xe5   : > { %v2416_v57 = vpop.permute.xlu1 %2415  ;;  %v2414_v58 = vpop.permute.xlu0 %2413  ;;  %13534 = vmatmul.mubr.msk.f32.vlgmr.msra.gmra.mrb[0].mxu0 %vm473_vm2, %v13531_v49 }
  0xe6   : > { %v2424_v60 = vsel %vm2417_vm8, %v2414_v58, %v2416_v57  ;;  %v2423_v63 = vsel %vm2417_vm8, %v2412_v53, %v2414_v58  ;;  %2648 = vmatprep.mubr.f32.mxu0 %v16413_v0  ;;  %v13555_v53 = vld [vmem:[%s19925_s1 + $0x40] sm:$0xff]  ;;  %vm5081_vm8 = vcmask 490496  }
  0xe7   : > { %4746 = vrot.lane.b32.xlu1 %v16678_v8, %s16427_s22  ;;  %4744 = vrot.lane.b32.xlu0 %v16618_v7, %s16427_s22  ;;  %s16431_s22 = smov 30  }
  0xe8   : > { %13538 = vmatprep.subr.msk.mxu0 %vm477_vm1, %v2423_v63  ;;  %14512 = vmatpush3.msk.msra.mxu1 %vm477_vm1, %v2424_v60 }
  0xe9   : > { %13539 = vmatpush1.msk.msra.mxu0 %vm477_vm1, %v2422_v11  ;;  %v2739_v12 = vpop.permute.xlu1 %2738  ;;  %v2737_v15 = vpop.permute.xlu0 %2736  ;;  %14514 = vmatmul.mubr.msk.f32.vlgmr.msra.gmra.mrb[14].mxu1 %vm473_vm2, %v13531_v49 }
  0xea   : > { %v2752_v16 = vsel %vm2750_vm9, %v2737_v15, %v2739_v12  ;;  %13540 = vmatmul.mubr.msk.f32.vlgmr.msra.gmra.mrb[2].mxu0 %vm473_vm2, %v13531_v49  ;;  %2910 = vmatprep.mubr.f32.mxu1 %v16413_v0 }
  0xeb   : > { %5069 = vrot.lane.b32.xlu1 %v16588_v2, %s16428_s21  ;;  %5067 = vrot.lane.b32.xlu0 %v16611_v6, %s16428_s21 }
  0xec   : > { %13544 = vmatprep.subr.msk.mxu0 %vm477_vm1, %v2752_v16  ;;  %2839 = vmatprep.mubr.f32.mxu0 %v16413_v0 }
  0xed   : > { %v2743_v17 = vpop.permute.xlu1 %2742  ;;  %v2741_v19 = vpop.permute.xlu0 %2740 }
  0xee   : > { %v2753_v20 = vsel %vm2750_vm9, %v2739_v12, %v2741_v19  ;;  %v2754_v24 = vsel %vm2750_vm9, %v2741_v19, %v2743_v17 }
  0xef   : > { %5073 = vrot.lane.b32.xlu1 %v16585_v1, %s16428_s21  ;;  %5071 = vrot.lane.b32.xlu0 %v16596_v3, %s16428_s21 }
  0xf0   : > { %13547 = vmatprep.subr.msk.mxu1 %vm477_vm1, %v2754_v24 }
  0xf1   : > { %13548 = vmatpush1.msk.msra.mxu1 %vm477_vm1, %v2753_v20  ;;  %v2745_v26 = vpop.permute.xlu1 %2744  ;;  %v2735_v27 = vpop.permute.xlu0 %2734 }
  0xf2   : > { %v2751_v28 = vsel %vm2750_vm9, %v2735_v27, %v2737_v15  ;;  %14516 = vmatprep.subr.mxu1 %v16413_v0  ;;  %13549 = vmatmul.mubr.msk.f32.vlgmr.msra.gmra.mrb[0].mxu1 %vm473_vm2, %v13543_v25  ;;  %v2755_v38 = vsel %vm2750_vm9, %v2743_v17, %v2745_v26 }
  0xf3   : > { %5075 = vrot.lane.b32.xlu1 %v16607_v5, %s16428_s21  ;;  %5065 = vrot.lane.b32.xlu0 %v16599_v4, %s16428_s21 }
  0xf4   : > { %13545 = vmatpush1.msk.msra.mxu0 %vm477_vm1, %v2751_v28  ;;  %14518 = vmatprep.mubr.msk.f32.mxu1 %vm16423_vm3, %v16413_v0 }
  0xf5   : > { %v2749_v32 = vpop.permute.xlu1 %2748  ;;  %v2747_v34 = vpop.permute.xlu0 %2746  ;;  %13546 = vmatmul.mubr.msk.f32.vlgmr.msra.gmra.mrb[0].mxu0 %vm473_vm2, %v13543_v25 }
  0xf6   : > { %v2757_v36 = vsel %vm2750_vm9, %v2747_v34, %v2749_v32  ;;  %v2756_v37 = vsel %vm2750_vm9, %v2745_v26, %v2747_v34  ;;  %2981 = vmatprep.mubr.f32.mxu0 %v16413_v0  ;;  %v13567_v26 = vld [vmem:[%s19925_s1 + $0x48] sm:$0xff]  ;;  %vm5414_vm9 = vcmask 261120  }
  0xf7   : > { %5079 = vrot.lane.b32.xlu1 %v16678_v8, %s16428_s21  ;;  %5077 = vrot.lane.b32.xlu0 %v16618_v7, %s16428_s21  ;;  %s16432_s21 = smov 29  }
  0xf8   : > { %13550 = vmatprep.subr.msk.mxu0 %vm477_vm1, %v2756_v37  ;;  %14517 = vmatpush3.msk.msra.mxu1 %vm477_vm1, %v2757_v36 }
  0xf9   : > { %13551 = vmatpush1.msk.msra.mxu0 %vm477_vm1, %v2755_v38  ;;  %v3072_v41 = vpop.permute.xlu1 %3071  ;;  %v3070_v42 = vpop.permute.xlu0 %3069  ;;  %14519 = vmatmul.mubr.msk.f32.vlgmr.msra.gmra.mrb[16].mxu1 %vm473_vm2, %v13543_v25 }
  0xfa   : > { %v3085_v45 = vsel %vm3083_vm10, %v3070_v42, %v3072_v41  ;;  %13552 = vmatmul.mubr.msk.f32.vlgmr.msra.gmra.mrb[2].mxu0 %vm473_vm2, %v13543_v25  ;;  %3243 = vmatprep.mubr.f32.mxu1 %v16413_v0 }
  0xfb   : > { %5402 = vrot.lane.b32.xlu1 %v16588_v2, %s16429_s16  ;;  %5400 = vrot.lane.b32.xlu0 %v16611_v6, %s16429_s16 }
  0xfc   : > { %13556 = vmatprep.subr.msk.mxu0 %vm477_vm1, %v3085_v45  ;;  %3172 = vmatprep.mubr.f32.mxu0 %v16413_v0 }
  0xfd   : > { %v3076_v46 = vpop.permute.xlu1 %3075  ;;  %v3074_v47 = vpop.permute.xlu0 %3073 }
  0xfe   : > { %v3086_v48 = vsel %vm3083_vm10, %v3072_v41, %v3074_v47  ;;  %v3087_v49 = vsel %vm3083_vm10, %v3074_v47, %v3076_v46 }
  0xff   : > { %5406 = vrot.lane.b32.xlu1 %v16585_v1, %s16429_s16  ;;  %5404 = vrot.lane.b32.xlu0 %v16596_v3, %s16429_s16 }
 0x100   : > { %13559 = vmatprep.subr.msk.mxu1 %vm477_vm1, %v3087_v49 }
 0x101   : > { %13560 = vmatpush1.msk.msra.mxu1 %vm477_vm1, %v3086_v48  ;;  %v3078_v54 = vpop.permute.xlu1 %3077  ;;  %v3068_v56 = vpop.permute.xlu0 %3067 }
 0x102   : > { %v3084_v57 = vsel %vm3083_vm10, %v3068_v56, %v3070_v42  ;;  %14521 = vmatprep.subr.mxu1 %v16413_v0  ;;  %13561 = vmatmul.mubr.msk.f32.vlgmr.msra.gmra.mrb[0].mxu1 %vm473_vm2, %v13555_v53  ;;  %v3088_v12 = vsel %vm3083_vm10, %v3076_v46, %v3078_v54 }
 0x103   : > { %5408 = vrot.lane.b32.xlu1 %v16607_v5, %s16429_s16  ;;  %5398 = vrot.lane.b32.xlu0 %v16599_v4, %s16429_s16 }
 0x104   : > { %13557 = vmatpush1.msk.msra.mxu0 %vm477_vm1, %v3084_v57  ;;  %14523 = vmatprep.mubr.msk.f32.mxu1 %vm16423_vm3, %v16413_v0 }
 0x105   : > { %v3082_v58 = vpop.permute.xlu1 %3081  ;;  %v3080_v60 = vpop.permute.xlu0 %3079  ;;  %13558 = vmatmul.mubr.msk.f32.vlgmr.msra.gmra.mrb[0].mxu0 %vm473_vm2, %v13555_v53 }
 0x106   : > { %v3090_v63 = vsel %vm3083_vm10, %v3080_v60, %v3082_v58  ;;  %v3089_v11 = vsel %vm3083_vm10, %v3078_v54, %v3080_v60  ;;  %3314 = vmatprep.mubr.f32.mxu0 %v16413_v0  ;;  %v13579_v54 = vld [vmem:[%s19925_s1 + $0x50] sm:$0xff]  ;;  %vm5747_vm10 = vcmask 252928  }
 0x107   : > { %5412 = vrot.lane.b32.xlu1 %v16678_v8, %s16429_s16  ;;  %5410 = vrot.lane.b32.xlu0 %v16618_v7, %s16429_s16  ;;  %s16433_s16 = smov 28  }
 0x108   : > { %13562 = vmatprep.subr.msk.mxu0 %vm477_vm1, %v3089_v11  ;;  %14522 = vmatpush3.msk.msra.mxu1 %vm477_vm1, %v3090_v63 }
 0x109   : > { %13563 = vmatpush1.msk.msra.mxu0 %vm477_vm1, %v3088_v12  ;;  %v3405_v15 = vpop.permute.xlu1 %3404  ;;  %14524 = vmatmul.mubr.msk.f32.vlgmr.msra.gmra.mrb[18].mxu1 %vm473_vm2, %v13555_v53 }
 0x10a   : > { %v3403_v16 = vpop.permute.xlu0 %3402  ;;  %13564 = vmatmul.mubr.msk.f32.vlgmr.msra.gmra.mrb[2].mxu0 %vm473_vm2, %v13555_v53  ;;  %3576 = vmatprep.mubr.f32.mxu1 %v16413_v0 }
 0x10b   : > { %5735 = vrot.lane.b32.xlu1 %v16588_v2, %s16430_s23  ;;  %5733 = vrot.lane.b32.xlu0 %v16611_v6, %s16430_s23  ;;  %v3418_v17 = vsel %vm3416_vm11, %v3403_v16, %v3405_v15 }
 0x10c   : > { %13568 = vmatprep.subr.msk.mxu0 %vm477_vm1, %v3418_v17  ;;  %3505 = vmatprep.mubr.f32.mxu0 %v16413_v0 }
 0x10d   : > { %v3409_v19 = vpop.permute.xlu1 %3408 }
 0x10e   : > { %v3407_v20 = vpop.permute.xlu0 %3406 }
 0x10f   : > { %5739 = vrot.lane.b32.xlu1 %v16585_v1, %s16430_s23  ;;  %5737 = vrot.lane.b32.xlu0 %v16596_v3, %s16430_s23  ;;  %v3419_v24 = vsel %vm3416_vm11, %v3405_v15, %v3407_v20  ;;  %v3420_v25 = vsel %vm3416_vm11, %v3407_v20, %v3409_v19 }
 0x110   : > { %13571 = vmatprep.subr.msk.mxu1 %vm477_vm1, %v3420_v25 }
 0x111   : > { %13572 = vmatpush1.msk.msra.mxu1 %vm477_vm1, %v3419_v24  ;;  %v3411_v27 = vpop.permute.xlu1 %3410 }
 0x112   : > { %v3401_v28 = vpop.permute.xlu0 %3400  ;;  %14526 = vmatprep.subr.mxu1 %v16413_v0  ;;  %13573 = vmatmul.mubr.msk.f32.vlgmr.msra.gmra.mrb[0].mxu1 %vm473_vm2, %v13567_v26  ;;  %v3421_v41 = vsel %vm3416_vm11, %v3409_v19, %v3411_v27 }
 0x113   : > { %5741 = vrot.lane.b32.xlu1 %v16607_v5, %s16430_s23  ;;  %5731 = vrot.lane.b32.xlu0 %v16599_v4, %s16430_s23  ;;  %v3417_v32 = vsel %vm3416_vm11, %v3401_v28, %v3403_v16 }
 0x114   : > { %13569 = vmatpush1.msk.msra.mxu0 %vm477_vm1, %v3417_v32  ;;  %14528 = vmatprep.mubr.msk.f32.mxu1 %vm16423_vm3, %v16413_v0 }
 0x115   : > { %v3415_v34 = vpop.permute.xlu1 %3414  ;;  %13570 = vmatmul.mubr.msk.f32.vlgmr.msra.gmra.mrb[0].mxu0 %vm473_vm2, %v13567_v26 }
 0x116   : > { %v3413_v36 = vpop.permute.xlu0 %3412  ;;  %3647 = vmatprep.mubr.f32.mxu0 %v16413_v0 }
 0x117   : > { %5745 = vrot.lane.b32.xlu1 %v16678_v8, %s16430_s23  ;;  %5743 = vrot.lane.b32.xlu0 %v16618_v7, %s16430_s23  ;;  %v3423_v37 = vsel %vm3416_vm11, %v3413_v36, %v3415_v34  ;;  %v3422_v38 = vsel %vm3416_vm11, %v3411_v27, %v3413_v36  ;;  %vm6080_vm11 = vcmask 244736   ;;  %s16441_s23 = smov 100  }
 0x118   : > { %13574 = vmatprep.subr.msk.mxu0 %vm477_vm1, %v3422_v38  ;;  %14527 = vmatpush3.msk.msra.mxu1 %vm477_vm1, %v3423_v37  ;;  %v17217_v37 = vld [vmem:[%s16582_s24 + $0x8] sm:$0x77] }
 0x119   : > { %13575 = vmatpush1.msk.msra.mxu0 %vm477_vm1, %v3421_v41  ;;  %14529 = vmatmul.mubr.msk.f32.vlgmr.msra.gmra.mrb[20].mxu1 %vm473_vm2, %v13567_v26 }
 0x11a   : > { %13576 = vmatmul.mubr.msk.f32.vlgmr.msra.gmra.mrb[2].mxu0 %vm473_vm2, %v13567_v26  ;;  %3909 = vmatprep.mubr.f32.mxu1 %v16413_v0 }
 0x11b   : > { %6068 = vrot.lane.b32.xlu1 %v16588_v2, %s16431_s22  ;;  %6066 = vrot.lane.b32.xlu0 %v16611_v6, %s16431_s22  ;;  %v3738_v42 = vpop.permute.xlu1 %3737 }
 0x11c   : > { %v3736_v45 = vpop.permute.xlu0 %3735  ;;  %3838 = vmatprep.mubr.f32.mxu0 %v16413_v0 }
 0x11d   : > { %v3751_v46 = vsel %vm3749_vm12, %v3736_v45, %v3738_v42 }
 0x11e   : > { %13580 = vmatprep.subr.msk.mxu0 %vm477_vm1, %v3751_v46 }
 0x11f   : > { %6072 = vrot.lane.b32.xlu1 %v16585_v1, %s16431_s22  ;;  %6070 = vrot.lane.b32.xlu0 %v16596_v3, %s16431_s22 }
 0x120   : > { %v3742_v47 = vpop.permute.xlu1 %3741  ;;  %v3740_v48 = vpop.permute.xlu0 %3739 }
 0x121   : > { %v3752_v49 = vsel %vm3749_vm12, %v3738_v42, %v3740_v48  ;;  %v3753_v53 = vsel %vm3749_vm12, %v3740_v48, %v3742_v47 }
 0x122   : > { %13583 = vmatprep.subr.msk.mxu1 %vm477_vm1, %v3753_v53  ;;  %v16347_v53 = vld [vmem:[%s16582_s24] sm:$0x77] }
 0x123   : > { %6074 = vrot.lane.b32.xlu1 %v16607_v5, %s16431_s22  ;;  %6064 = vrot.lane.b32.xlu0 %v16599_v4, %s16431_s22 }
 0x124   : > { %13584 = vmatpush1.msk.msra.mxu1 %vm477_vm1, %v3752_v49 }
 0x125   : > { %v3744_v56 = vpop.permute.xlu1 %3743  ;;  %v3734_v57 = vpop.permute.xlu0 %3733  ;;  %14531 = vmatprep.subr.mxu1 %v16413_v0  ;;  %13585 = vmatmul.mubr.msk.f32.vlgmr.msra.gmra.mrb[0].mxu1 %vm473_vm2, %v13579_v54 }
 0x126   : > { %v3750_v58 = vsel %vm3749_vm12, %v3734_v57, %v3736_v45  ;;  %14533 = vmatprep.mubr.msk.f32.mxu1 %vm16423_vm3, %v16413_v0  ;;  %v3754_v15 = vsel %vm3749_vm12, %v3742_v47, %v3744_v56  ;;  %v17232_v45 = vld [vmem:[%s16582_s24 + $0x10] sm:$0x77] }
 0x127   : > { %6078 = vrot.lane.b32.xlu1 %v16678_v8, %s16431_s22  ;;  %6076 = vrot.lane.b32.xlu0 %v16618_v7, %s16431_s22  ;;  %s19929_s22 = smov 127  }
 0x128   : > { %13581 = vmatpush1.msk.msra.mxu0 %vm477_vm1, %v3750_v58 }
 0x129   : > { %v3748_v60 = vpop.permute.xlu1 %3747  ;;  %v3746_v63 = vpop.permute.xlu0 %3745  ;;  %13582 = vmatmul.mubr.msk.f32.vlgmr.msra.gmra.mrb[0].mxu0 %vm473_vm2, %v13579_v54 }
 0x12a   : > { %v3756_v11 = vsel %vm3749_vm12, %v3746_v63, %v3748_v60  ;;  %v3755_v12 = vsel %vm3749_vm12, %v3744_v56, %v3746_v63  ;;  %3980 = vmatprep.mubr.f32.mxu0 %v16413_v0  ;;  %v17257_v60 = vld [vmem:[%s16582_s24 + $0x18] sm:$0x77]  ;;  %s19926_s24 = smov 125   ;;  %vm6413_vm12 = vcmask 236544  }
 0x12b   : > { %6401 = vrot.lane.b32.xlu1 %v16588_v2, %s16432_s21  ;;  %6399 = vrot.lane.b32.xlu0 %v16611_v6, %s16432_s21 }
 0x12c   : > { %13586 = vmatprep.subr.msk.mxu0 %vm477_vm1, %v3755_v12  ;;  %14532 = vmatpush3.msk.msra.mxu1 %vm477_vm1, %v3756_v11 }
 0x12d   : > { %13587 = vmatpush1.msk.msra.mxu0 %vm477_vm1, %v3754_v15  ;;  %v4071_v16 = vpop.permute.xlu1 %4070  ;;  %v4069_v17 = vpop.permute.xlu0 %4068  ;;  %14534 = vmatmul.mubr.msk.f32.vlgmr.msra.gmra.mrb[22].mxu1 %vm473_vm2, %v13579_v54 }
 0x12e   : > { %v4084_v19 = vsel %vm4082_vm13, %v4069_v17, %v4071_v16  ;;  %13588 = vmatmul.mubr.msk.f32.vlgmr.msra.gmra.mrb[2].mxu0 %vm473_vm2, %v13579_v54  ;;  %4242 = vmatprep.mubr.f32.mxu1 %v16413_v0  ;;  %v13603_v54 = vld [vmem:[%s19925_s1 + $0x60] sm:$0xff] }
 0x12f   : > { %6405 = vrot.lane.b32.xlu1 %v16585_v1, %s16432_s21  ;;  %6403 = vrot.lane.b32.xlu0 %v16596_v3, %s16432_s21  ;;  %v13591_v1 = vld [vmem:[%s19925_s1 + $0x58] sm:$0xff] }
 0x130   : > { %13592 = vmatprep.subr.msk.mxu0 %vm477_vm1, %v4084_v19  ;;  %4171 = vmatprep.mubr.f32.mxu0 %v16413_v0 }
 0x131   : > { %v4075_v2 = vpop.permute.xlu1 %4074  ;;  %v4073_v20 = vpop.permute.xlu0 %4072 }
 0x132   : > { %v4085_v24 = vsel %vm4082_vm13, %v4071_v16, %v4073_v20  ;;  %v4086_v25 = vsel %vm4082_vm13, %v4073_v20, %v4075_v2 }
 0x133   : > { %6407 = vrot.lane.b32.xlu1 %v16607_v5, %s16432_s21  ;;  %6397 = vrot.lane.b32.xlu0 %v16599_v4, %s16432_s21 }
 0x134   : > { %13595 = vmatprep.subr.msk.mxu1 %vm477_vm1, %v4086_v25 }
 0x135   : > { %13596 = vmatpush1.msk.msra.mxu1 %vm477_vm1, %v4085_v24  ;;  %v4077_v26 = vpop.permute.xlu1 %4076  ;;  %v4067_v27 = vpop.permute.xlu0 %4066 }
 0x136   : > { %v4083_v28 = vsel %vm4082_vm13, %v4067_v27, %v4069_v17  ;;  %13597 = vmatmul.mubr.msk.f32.vlgmr.msra.gmra.mrb[0].mxu1 %vm473_vm2, %v13591_v1  ;;  %14536 = vmatprep.subr.mxu1 %v16413_v0 }
 0x137   : > { %6411 = vrot.lane.b32.xlu1 %v16678_v8, %s16432_s21  ;;  %6409 = vrot.lane.b32.xlu0 %v16618_v7, %s16432_s21  ;;  %v4087_v7 = vsel %vm4082_vm13, %v4075_v2, %v4077_v26  ;;  %s16440_s21 = smov 110  }
 0x138   : > { %13593 = vmatpush1.msk.msra.mxu0 %vm477_vm1, %v4083_v28  ;;  %14538 = vmatprep.mubr.msk.f32.mxu1 %vm16423_vm3, %v16413_v0 }
 0x139   : > { %v4081_v4 = vpop.permute.xlu1 %4080  ;;  %v4079_v32 = vpop.permute.xlu0 %4078  ;;  %13594 = vmatmul.mubr.msk.f32.vlgmr.msra.gmra.mrb[0].mxu0 %vm473_vm2, %v13591_v1 }
 0x13a   : > { %v4089_v34 = vsel %vm4082_vm13, %v4079_v32, %v4081_v4  ;;  %v4088_v36 = vsel %vm4082_vm13, %v4077_v26, %v4079_v32  ;;  %4313 = vmatprep.mubr.f32.mxu0 %v16413_v0  ;;  %v13615_v26 = vld [vmem:[%s19925_s1 + $0x68] sm:$0xff]  ;;  %vm6746_vm13 = vcmask 228352  }
 0x13b   : > { %6734 = vrot.lane.b32.xlu1 %v17217_v37, %s16433_s16  ;;  %6732 = vrot.lane.b32.xlu0 %v16611_v6, %s16433_s16 }
 0x13c   : > { %13598 = vmatprep.subr.msk.mxu0 %vm477_vm1, %v4088_v36  ;;  %14537 = vmatpush3.msk.msra.mxu1 %vm477_vm1, %v4089_v34 }
 0x13d   : > { %13599 = vmatpush1.msk.msra.mxu0 %vm477_vm1, %v4087_v7  ;;  %14539 = vmatmul.mubr.msk.f32.vlgmr.msra.gmra.mrb[24].mxu1 %vm473_vm2, %v13591_v1  ;;  %v4404_v38 = vpop.permute.xlu1 %4403  ;;  %v4402_v41 = vpop.permute.xlu0 %4401 }
 0x13e   : > { %v4417_v42 = vsel %vm4415_vm14, %v4402_v41, %v4404_v38  ;;  %13600 = vmatmul.mubr.msk.f32.vlgmr.msra.gmra.mrb[2].mxu0 %vm473_vm2, %v13591_v1  ;;  %4575 = vmatprep.mubr.f32.mxu1 %v16413_v0 }
 0x13f   : > { %6738 = vrot.lane.b32.xlu1 %v17232_v45, %s16433_s16  ;;  %6736 = vrot.lane.b32.xlu0 %v16596_v3, %s16433_s16 }
 0x140   : > { %13604 = vmatprep.subr.msk.mxu0 %vm477_vm1, %v4417_v42  ;;  %4504 = vmatprep.mubr.f32.mxu0 %v16413_v0 }
 0x141   : > { %v4408_v46 = vpop.permute.xlu1 %4407  ;;  %v4406_v47 = vpop.permute.xlu0 %4405 }
 0x142   : > { %v4418_v48 = vsel %vm4415_vm14, %v4404_v38, %v4406_v47  ;;  %v4419_v49 = vsel %vm4415_vm14, %v4406_v47, %v4408_v46 }
 0x143   : > { %6740 = vrot.lane.b32.xlu1 %v16607_v5, %s16433_s16  ;;  %6730 = vrot.lane.b32.xlu0 %v16347_v53, %s16433_s16 }
 0x144   : > { %13607 = vmatprep.subr.msk.mxu1 %vm477_vm1, %v4419_v49 }
 0x145   : > { %13608 = vmatpush1.msk.msra.mxu1 %vm477_vm1, %v4418_v48  ;;  %v4410_v56 = vpop.permute.xlu1 %4409  ;;  %v4400_v57 = vpop.permute.xlu0 %4399 }
 0x146   : > { %v4416_v58 = vsel %vm4415_vm14, %v4400_v57, %v4402_v41  ;;  %13609 = vmatmul.mubr.msk.f32.vlgmr.msra.gmra.mrb[0].mxu1 %vm473_vm2, %v13603_v54  ;;  %14541 = vmatprep.subr.mxu1 %v16413_v0  ;;  %v4420_v16 = vsel %vm4415_vm14, %v4408_v46, %v4410_v56 }
 0x147   : > { %6744 = vrot.lane.b32.xlu1 %v16678_v8, %s16433_s16  ;;  %6742 = vrot.lane.b32.xlu0 %v17257_v60, %s16433_s16  ;;  %s16438_s16 = smov 112  }
 0x148   : > { %13605 = vmatpush1.msk.msra.mxu0 %vm477_vm1, %v4416_v58  ;;  %14543 = vmatprep.mubr.msk.f32.mxu1 %vm16423_vm3, %v16413_v0 }
 0x149   : > { %v4414_v63 = vpop.permute.xlu1 %4413  ;;  %v4412_v11 = vpop.permute.xlu0 %4411  ;;  %13606 = vmatmul.mubr.msk.f32.vlgmr.msra.gmra.mrb[0].mxu0 %vm473_vm2, %v13603_v54 }
 0x14a   : > { %v4422_v12 = vsel %vm4415_vm14, %v4412_v11, %v4414_v63  ;;  %v4421_v15 = vsel %vm4415_vm14, %v4410_v56, %v4412_v11  ;;  %4646 = vmatprep.mubr.f32.mxu0 %v16413_v0 }
 0x14b   : > { %7662 = vrot.lane.b32.xlu1 %v16678_v8, %s19912_s15  ;;  %7360 = vrot.lane.b32.xlu0 %v16678_v8, %s19914_s30  ;;  %s16442_s15 = smov 99  }
 0x14c   : > { %13610 = vmatprep.subr.msk.mxu0 %vm477_vm1, %v4421_v15  ;;  %14542 = vmatpush3.msk.msra.mxu1 %vm477_vm1, %v4422_v12 }
 0x14d   : > { %13611 = vmatpush1.msk.msra.mxu0 %vm477_vm1, %v4420_v16  ;;  %14544 = vmatmul.mubr.msk.f32.vlgmr.msra.gmra.mrb[26].mxu1 %vm473_vm2, %v13603_v54  ;;  %v4737_v17 = vpop.permute.xlu1 %4736  ;;  %v4735_v19 = vpop.permute.xlu0 %4734 }
 0x14e   : > { %v4750_v2 = vsel %vm4748_vm15, %v4735_v19, %v4737_v17  ;;  %13612 = vmatmul.mubr.msk.f32.vlgmr.msra.gmra.mrb[2].mxu0 %vm473_vm2, %v13603_v54  ;;  %4908 = vmatprep.mubr.f32.mxu1 %v16413_v0  ;;  %v13627_v54 = vld [vmem:[%s19925_s1 + $0x70] sm:$0xff] }
 0x14f   : > { %8266 = vrot.lane.b32.xlu1 %v16678_v8, %s19910_s20  ;;  %7964 = vrot.lane.b32.xlu0 %v16678_v8, %s19926_s24  ;;  %s16443_s20 = smov 98  }
 0x150   : > { %13616 = vmatprep.subr.msk.mxu0 %vm477_vm1, %v4750_v2  ;;  %4837 = vmatprep.mubr.f32.mxu0 %v16413_v0 }
 0x151   : > { %v4741_v20 = vpop.permute.xlu1 %4740  ;;  %v4739_v24 = vpop.permute.xlu0 %4738 }
 0x152   : > { %v4751_v25 = vsel %vm4748_vm15, %v4737_v17, %v4739_v24  ;;  %v4752_v1 = vsel %vm4748_vm15, %v4739_v24, %v4741_v20 }
 0x153   : > { %13619 = vmatprep.subr.msk.mxu1 %vm477_vm1, %v4752_v1 }
 0x154   : > { %13620 = vmatpush1.msk.msra.mxu1 %vm477_vm1, %v4751_v25 }
 0x155   : > { %v4743_v27 = vpop.permute.xlu1 %4742  ;;  %v4733_v28 = vpop.permute.xlu0 %4732  ;;  %13621 = vmatmul.mubr.msk.f32.vlgmr.msra.gmra.mrb[0].mxu1 %vm473_vm2, %v13615_v26  ;;  %14546 = vmatprep.subr.mxu1 %v16413_v0 }
 0x156   : > { %v4749_v4 = vsel %vm4748_vm15, %v4733_v28, %v4735_v19  ;;  %14548 = vmatprep.mubr.msk.f32.mxu1 %vm16423_vm3, %v16413_v0  ;;  %v4753_v38 = vsel %vm4748_vm15, %v4741_v20, %v4743_v27 }
 0x157   : > { %13617 = vmatpush1.msk.msra.mxu0 %vm477_vm1, %v4749_v4 }
 0x158   : > { %13618 = vmatmul.mubr.msk.f32.vlgmr.msra.gmra.mrb[0].mxu0 %vm473_vm2, %v13615_v26 }
 0x159   : > { %v4747_v32 = vpop.permute.xlu1 %4746  ;;  %v4745_v34 = vpop.permute.xlu0 %4744  ;;  %4979 = vmatprep.mubr.f32.mxu0 %v16413_v0 }
 0x15a   : > { %v4755_v36 = vsel %vm4748_vm15, %v4745_v34, %v4747_v32  ;;  %v4754_v7 = vsel %vm4748_vm15, %v4743_v27, %v4745_v34  ;;  %vm8884_vm15 = vcmask 744448  }
 0x15b   : > { %13622 = vmatprep.subr.msk.mxu0 %vm477_vm1, %v4754_v7  ;;  %14547 = vmatpush3.msk.msra.mxu1 %vm477_vm1, %v4755_v36 }
 0x15c   : > { %13623 = vmatpush1.msk.msra.mxu0 %vm477_vm1, %v4753_v38  ;;  %14549 = vmatmul.mubr.msk.f32.vlgmr.msra.gmra.mrb[28].mxu1 %vm473_vm2, %v13615_v26 }
 0x15d   : > { %v5070_v41 = vpop.permute.xlu1 %5069  ;;  %v5068_v42 = vpop.permute.xlu0 %5067  ;;  %13624 = vmatmul.mubr.msk.f32.vlgmr.msra.gmra.mrb[2].mxu0 %vm473_vm2, %v13615_v26  ;;  %5241 = vmatprep.mubr.f32.mxu1 %v16413_v0  ;;  %v13639_v26 = vld [vmem:[%s19925_s1 + $0x78] sm:$0xff] }
 0x15e   : > { %v5083_v46 = vsel %vm5081_vm8, %v5068_v42, %v5070_v41  ;;  %5170 = vmatprep.mubr.f32.mxu0 %v16413_v0 }
 0x15f   : > { %13628 = vmatprep.subr.msk.mxu0 %vm477_vm1, %v5083_v46 }
 0x161   : > { %v5074_v47 = vpop.permute.xlu1 %5073  ;;  %v5072_v48 = vpop.permute.xlu0 %5071 }
 0x162   : > { %v5084_v49 = vsel %vm5081_vm8, %v5070_v41, %v5072_v48  ;;  %v5085_v53 = vsel %vm5081_vm8, %v5072_v48, %v5074_v47 }
 0x163   : > { %13631 = vmatprep.subr.msk.mxu1 %vm477_vm1, %v5085_v53 }
 0x164   : > { %13632 = vmatpush1.msk.msra.mxu1 %vm477_vm1, %v5084_v49 }
 0x165   : > { %v5076_v56 = vpop.permute.xlu1 %5075  ;;  %v5066_v57 = vpop.permute.xlu0 %5065  ;;  %13633 = vmatmul.mubr.msk.f32.vlgmr.msra.gmra.mrb[0].mxu1 %vm473_vm2, %v13627_v54  ;;  %14551 = vmatprep.subr.mxu1 %v16413_v0 }
 0x166   : > { %v5082_v58 = vsel %vm5081_vm8, %v5066_v57, %v5068_v42  ;;  %14553 = vmatprep.mubr.msk.f32.mxu1 %vm16423_vm3, %v16413_v0  ;;  %v5086_v16 = vsel %vm5081_vm8, %v5074_v47, %v5076_v56 }
 0x167   : > { %13629 = vmatpush1.msk.msra.mxu0 %vm477_vm1, %v5082_v58 }
 0x168   : > { %13630 = vmatmul.mubr.msk.f32.vlgmr.msra.gmra.mrb[0].mxu0 %vm473_vm2, %v13627_v54 }
 0x169   : > { %v5080_v63 = vpop.permute.xlu1 %5079  ;;  %v5078_v11 = vpop.permute.xlu0 %5077  ;;  %5312 = vmatprep.mubr.f32.mxu0 %v16413_v0 }
 0x16a   : > { %v5088_v12 = vsel %vm5081_vm8, %v5078_v11, %v5080_v63  ;;  %v5087_v15 = vsel %vm5081_vm8, %v5076_v56, %v5078_v11  ;;  %v13651_v11 = vld [vmem:[%s19925_s1 + $0x80] sm:$0xff]  ;;  %vm9951_vm8 = vcmask 908288  }
 0x16b   : > { %13634 = vmatprep.subr.msk.mxu0 %vm477_vm1, %v5087_v15  ;;  %14552 = vmatpush3.msk.msra.mxu1 %vm477_vm1, %v5088_v12 }
 0x16c   : > { %13635 = vmatpush1.msk.msra.mxu0 %vm477_vm1, %v5086_v16  ;;  %14554 = vmatmul.mubr.msk.f32.vlgmr.msra.gmra.mrb[30].mxu1 %vm473_vm2, %v13627_v54 }
 0x16d   : > { %v5403_v17 = vpop.permute.xlu1 %5402  ;;  %v5401_v19 = vpop.permute.xlu0 %5400  ;;  %13636 = vmatmul.mubr.msk.f32.vlgmr.msra.gmra.mrb[2].mxu0 %vm473_vm2, %v13627_v54  ;;  %5574 = vmatprep.mubr.f32.mxu1 %v16413_v0 }
 0x16e   : > { %v5416_v2 = vsel %vm5414_vm9, %v5401_v19, %v5403_v17  ;;  %5503 = vmatprep.mubr.f32.mxu0 %v16413_v0 }
 0x16f   : > { %13640 = vmatprep.subr.msk.mxu0 %vm477_vm1, %v5416_v2 }
 0x171   : > { %v5407_v20 = vpop.permute.xlu1 %5406  ;;  %v5405_v24 = vpop.permute.xlu0 %5404 }
 0x172   : > { %v5417_v25 = vsel %vm5414_vm9, %v5403_v17, %v5405_v24  ;;  %v5418_v1 = vsel %vm5414_vm9, %v5405_v24, %v5407_v20 }
 0x173   : > { %13643 = vmatprep.subr.msk.mxu1 %vm477_vm1, %v5418_v1 }
 0x174   : > { %13644 = vmatpush1.msk.msra.mxu1 %vm477_vm1, %v5417_v25  ;;  %v771_v27 = vpop.f32.mrb[2].mxu1 }
 0x175   : > { %v5409_v28 = vpop.permute.xlu1 %5408  ;;  %v5399_v4 = vpop.permute.xlu0 %5398  ;;  %13645 = vmatmul.mubr.msk.f32.vlgmr.msra.gmra.mrb[0].mxu1 %vm473_vm2, %v13639_v26  ;;  %14556 = vmatprep.subr.mxu1 %v16413_v0 }
 0x176   : > { %v5415_v32 = vsel %vm5414_vm9, %v5399_v4, %v5401_v19  ;;  %14558 = vmatprep.mubr.msk.f32.mxu1 %vm16423_vm3, %v16413_v0  ;;  %v14485_v34 = vpop.f32.mrb[3].mxu1  ;;  %v5419_v42 = vsel %vm5414_vm9, %v5407_v20, %v5409_v28 }
 0x177   : > { %13641 = vmatpush1.msk.msra.mxu0 %vm477_vm1, %v5415_v32 }
 0x178   : > { %13642 = vmatmul.mubr.msk.f32.vlgmr.msra.gmra.mrb[0].mxu0 %vm473_vm2, %v13639_v26 }
 0x179   : > { %v5413_v36 = vpop.permute.xlu1 %5412  ;;  %v5411_v7 = vpop.permute.xlu0 %5410  ;;  %5645 = vmatprep.mubr.f32.mxu0 %v16413_v0 }
 0x17a   : > { %v5421_v38 = vsel %vm5414_vm9, %v5411_v7, %v5413_v36  ;;  %v5420_v41 = vsel %vm5414_vm9, %v5409_v28, %v5411_v7  ;;  %vm10049_vm9 = vcmask 900096  }
 0x17b   : > { %13646 = vmatprep.subr.msk.mxu0 %vm477_vm1, %v5420_v41  ;;  %14557 = vmatpush3.msk.msra.mxu1 %vm477_vm1, %v5421_v38  ;;  %v13663_v38 = vld [vmem:[%s19925_s1 + $0x88] sm:$0xff] }
 0x17c   : > { %13647 = vmatpush1.msk.msra.mxu0 %vm477_vm1, %v5419_v42  ;;  %14559 = vmatmul.mubr.msk.f32.vlgmr.msra.gmra.mrb[32].mxu1 %vm473_vm2, %v13639_v26 }
 0x17d   : > { %v5736_v46 = vpop.permute.xlu1 %5735  ;;  %v5734_v47 = vpop.permute.xlu0 %5733  ;;  %13648 = vmatmul.mubr.msk.f32.vlgmr.msra.gmra.mrb[2].mxu0 %vm473_vm2, %v13639_v26  ;;  %5907 = vmatprep.mubr.f32.mxu1 %v16413_v0 }
 0x17e   : > { %v5749_v48 = vsel %vm5747_vm10, %v5734_v47, %v5736_v46  ;;  %5836 = vmatprep.mubr.f32.mxu0 %v16413_v0 }
 0x17f   : > { %13652 = vmatprep.subr.msk.mxu0 %vm477_vm1, %v5749_v48  ;;  %v1071_v49 = vpop.f32.mrb[4].mxu1 }
 0x180   : > { %v1072_v53 = vadd.f32 %v1071_v49, %v771_v27  ;;  %v14490_v54 = vpop.f32.mrb[5].mxu1 }
 0x181   : > { %v5740_v56 = vpop.permute.xlu1 %5739  ;;  %v5738_v57 = vpop.permute.xlu0 %5737 }
 0x182   : > { %v5750_v58 = vsel %vm5747_vm10, %v5736_v46, %v5738_v57  ;;  %v5751_v63 = vsel %vm5747_vm10, %v5738_v57, %v5740_v56 }
 0x183   : > { %13655 = vmatprep.subr.msk.mxu1 %vm477_vm1, %v5751_v63 }
 0x184   : > { %13656 = vmatpush1.msk.msra.mxu1 %vm477_vm1, %v5750_v58 }
 0x185   : > { %v5742_v12 = vpop.permute.xlu1 %5741  ;;  %v5732_v15 = vpop.permute.xlu0 %5731  ;;  %13657 = vmatmul.mubr.msk.f32.vlgmr.msra.gmra.mrb[0].mxu1 %vm473_vm2, %v13651_v11  ;;  %14561 = vmatprep.subr.mxu1 %v16413_v0 }
 0x186   : > { %v5748_v16 = vsel %vm5747_vm10, %v5732_v15, %v5734_v47  ;;  %14563 = vmatprep.mubr.msk.f32.mxu1 %vm16423_vm3, %v16413_v0  ;;  %v5752_v26 = vsel %vm5747_vm10, %v5740_v56, %v5742_v12 }
 0x187   : > { %13653 = vmatpush1.msk.msra.mxu0 %vm477_vm1, %v5748_v16 }
 0x188   : > { %13654 = vmatmul.mubr.msk.f32.vlgmr.msra.gmra.mrb[0].mxu0 %vm473_vm2, %v13651_v11  ;;  %v1394_v17 = vpop.f32.mrb[6].mxu1 }
 0x189   : > { %v5746_v19 = vpop.permute.xlu1 %5745  ;;  %v5744_v2 = vpop.permute.xlu0 %5743  ;;  %5978 = vmatprep.mubr.f32.mxu0 %v16413_v0  ;;  %v1404_v20 = vadd.f32 %v1394_v17, %v1072_v53 }
 0x18a   : > { %v5753_v24 = vsel %vm5747_vm10, %v5742_v12, %v5744_v2  ;;  %v5754_v25 = vsel %vm5747_vm10, %v5744_v2, %v5746_v19  ;;  %v14495_v1 = vpop.f32.mrb[7].mxu1  ;;  %vm10147_vm10 = vcmask 818176  }
 0x18b   : > { %13658 = vmatprep.subr.msk.mxu0 %vm477_vm1, %v5753_v24  ;;  %14562 = vmatpush3.msk.msra.mxu1 %vm477_vm1, %v5754_v25  ;;  %v13675_v25 = vld [vmem:[%s19925_s1 + $0x90] sm:$0xff] }
 0x18c   : > { %13659 = vmatpush1.msk.msra.mxu0 %vm477_vm1, %v5752_v26  ;;  %14564 = vmatmul.mubr.msk.f32.vlgmr.msra.gmra.mrb[34].mxu1 %vm473_vm2, %v13651_v11 }
 0x18d   : > { %v6069_v27 = vpop.permute.xlu1 %6068  ;;  %v6067_v28 = vpop.permute.xlu0 %6066  ;;  %13660 = vmatmul.mubr.msk.f32.vlgmr.msra.gmra.mrb[2].mxu0 %vm473_vm2, %v13651_v11  ;;  %6240 = vmatprep.mubr.f32.mxu1 %v16413_v0 }
 0x18e   : > { %v6082_v4 = vsel %vm6080_vm11, %v6067_v28, %v6069_v27  ;;  %6169 = vmatprep.mubr.f32.mxu0 %v16413_v0 }
 0x18f   : > { %13664 = vmatprep.subr.msk.mxu0 %vm477_vm1, %v6082_v4 }
 0x191   : > { %v6073_v32 = vpop.permute.xlu1 %6072  ;;  %v6071_v34 = vpop.permute.xlu0 %6070 }
 0x192   : > { %v6083_v36 = vsel %vm6080_vm11, %v6069_v27, %v6071_v34  ;;  %v6084_v7 = vsel %vm6080_vm11, %v6071_v34, %v6073_v32 }
 0x193   : > { %13667 = vmatprep.subr.msk.mxu1 %vm477_vm1, %v6084_v7  ;;  %v1724_v41 = vpop.f32.mrb[8].mxu1 }
 0x194   : > { %13668 = vmatpush1.msk.msra.mxu1 %vm477_vm1, %v6083_v36  ;;  %v1734_v42 = vadd.f32 %v1724_v41, %v1404_v20  ;;  %v14500_v46 = vpop.f32.mrb[9].mxu1 }
 0x195   : > { %v6075_v47 = vpop.permute.xlu1 %6074  ;;  %v6065_v48 = vpop.permute.xlu0 %6064  ;;  %13669 = vmatmul.mubr.msk.f32.vlgmr.msra.gmra.mrb[0].mxu1 %vm473_vm2, %v13663_v38  ;;  %14566 = vmatprep.subr.mxu1 %v16413_v0 }
 0x196   : > { %v6081_v49 = vsel %vm6080_vm11, %v6065_v48, %v6067_v28  ;;  %14568 = vmatprep.mubr.msk.f32.mxu1 %vm16423_vm3, %v16413_v0  ;;  %v6085_v58 = vsel %vm6080_vm11, %v6073_v32, %v6075_v47  ;;  %v8566_v48 = vld [vmem:[%s19927_s2] sm:$0xff]  ;;  %s19928_s2 = smov 96  }
 0x197   : > { %13665 = vmatpush1.msk.msra.mxu0 %vm477_vm1, %v6081_v49 }
 0x198   : > { %13666 = vmatmul.mubr.msk.f32.vlgmr.msra.gmra.mrb[0].mxu0 %vm473_vm2, %v13663_v38 }
 0x199   : > { %v6079_v53 = vpop.permute.xlu1 %6078  ;;  %v6077_v54 = vpop.permute.xlu0 %6076  ;;  %6311 = vmatprep.mubr.f32.mxu0 %v16413_v0 }
 0x19a   : > { %v6086_v56 = vsel %vm6080_vm11, %v6075_v47, %v6077_v54  ;;  %v6087_v57 = vsel %vm6080_vm11, %v6077_v54, %v6079_v53  ;;  %v16434_v54 = vmov 0   ;;  %vm10245_vm11 = vcmask 809984  }
 0x19b   : > { %13670 = vmatprep.subr.msk.mxu0 %vm477_vm1, %v6086_v56  ;;  %14567 = vmatpush3.msk.msra.mxu1 %vm477_vm1, %v6087_v57 }
 0x19c   : > { %13671 = vmatpush1.msk.msra.mxu0 %vm477_vm1, %v6085_v58  ;;  %14569 = vmatmul.mubr.msk.f32.vlgmr.msra.gmra.mrb[36].mxu1 %vm473_vm2, %v13663_v38  ;;  %v13687_v58 = vld [vmem:[%s19925_s1 + $0x98] sm:$0xff] }
 0x19d   : > { %v6402_v63 = vpop.permute.xlu1 %6401  ;;  %v6400_v11 = vpop.permute.xlu0 %6399  ;;  %13672 = vmatmul.mubr.msk.f32.vlgmr.msra.gmra.mrb[2].mxu0 %vm473_vm2, %v13663_v38  ;;  %6573 = vmatprep.mubr.f32.mxu1 %v16413_v0 }
 0x19e   : > { %v6415_v12 = vsel %vm6413_vm12, %v6400_v11, %v6402_v63  ;;  %6502 = vmatprep.mubr.f32.mxu0 %v16413_v0  ;;  %v2054_v15 = vpop.f32.mrb[10].mxu1  ;;  %16314 = vset.pattern.permute.xlu0 %v16434_v54 }
 0x19f   : > { %13676 = vmatprep.subr.msk.mxu0 %vm477_vm1, %v6415_v12  ;;  %v2064_v16 = vadd.f32 %v2054_v15, %v1734_v42  ;;  %v14505_v17 = vpop.f32.mrb[11].mxu1  ;;  %16340 = vset.pattern.permute.xlu1 %v16434_v54 }
 0x1a0   : > { %8569 = vperm.xlu0 %16314, %v8566_v48  }
 0x1a1   : > { %v6406_v19 = vpop.permute.xlu1 %6405  ;;  %v6404_v2 = vpop.permute.xlu0 %6403 }
 0x1a2   : > { %v6416_v20 = vsel %vm6413_vm12, %v6402_v63, %v6404_v2  ;;  %v6417_v24 = vsel %vm6413_vm12, %v6404_v2, %v6406_v19 }
 0x1a3   : > { %13679 = vmatprep.subr.msk.mxu1 %vm477_vm1, %v6417_v24 }
 0x1a4   : > { %13680 = vmatpush1.msk.msra.mxu1 %vm477_vm1, %v6416_v20 }
 0x1a5   : > { %v6408_v1 = vpop.permute.xlu1 %6407  ;;  %v6398_v26 = vpop.permute.xlu0 %6397  ;;  %13681 = vmatmul.mubr.msk.f32.vlgmr.msra.gmra.mrb[0].mxu1 %vm473_vm2, %v13675_v25  ;;  %14571 = vmatprep.subr.mxu1 %v16413_v0 }
 0x1a6   : > { %v6414_v27 = vsel %vm6413_vm12, %v6398_v26, %v6400_v11  ;;  %14573 = vmatprep.mubr.msk.f32.mxu1 %vm16423_vm3, %v16413_v0  ;;  %v6418_v36 = vsel %vm6413_vm12, %v6406_v19, %v6408_v1 }
 0x1a7   : > { %13677 = vmatpush1.msk.msra.mxu0 %vm477_vm1, %v6414_v27 }
 0x1a8   : > { %13678 = vmatmul.mubr.msk.f32.vlgmr.msra.gmra.mrb[0].mxu0 %vm473_vm2, %v13675_v25 }
 0x1a9   : > { %v6412_v28 = vpop.permute.xlu1 %6411  ;;  %v6410_v4 = vpop.permute.xlu0 %6409  ;;  %6644 = vmatprep.mubr.f32.mxu0 %v16413_v0 }
 0x1aa   : > { %v6419_v32 = vsel %vm6413_vm12, %v6408_v1, %v6410_v4  ;;  %v6420_v34 = vsel %vm6413_vm12, %v6410_v4, %v6412_v28  ;;  %vm10343_vm12 = vcmask 801792  }
 0x1ab   : > { %13682 = vmatprep.subr.msk.mxu0 %vm477_vm1, %v6419_v32  ;;  %14572 = vmatpush3.msk.msra.mxu1 %vm477_vm1, %v6420_v34 }
 0x1ac   : > { %13683 = vmatpush1.msk.msra.mxu0 %vm477_vm1, %v6418_v36  ;;  %14574 = vmatmul.mubr.msk.f32.vlgmr.msra.gmra.mrb[38].mxu1 %vm473_vm2, %v13675_v25  ;;  %v2388_v7 = vpop.f32.mrb[12].mxu1 }
 0x1ad   : > { %v6735_v38 = vpop.permute.xlu1 %6734  ;;  %v6733_v41 = vpop.permute.xlu0 %6732  ;;  %13684 = vmatmul.mubr.msk.f32.vlgmr.msra.gmra.mrb[2].mxu0 %vm473_vm2, %v13675_v25  ;;  %6906 = vmatprep.mubr.f32.mxu1 %v16413_v0  ;;  %v2398_v42 = vadd.f32 %v2388_v7, %v2064_v16  ;;  %v13699_v25 = vld [vmem:[%s19925_s1 + $0xa0] sm:$0xff] }
 0x1ae   : > { %v6748_v46 = vsel %vm6746_vm13, %v6733_v41, %v6735_v38  ;;  %6835 = vmatprep.mubr.f32.mxu0 %v16413_v0  ;;  %v14510_v47 = vpop.f32.mrb[13].mxu1 }
 0x1af   : > { %13688 = vmatprep.subr.msk.mxu0 %vm477_vm1, %v6748_v46 }
 0x1b1   : > { %v6739_v49 = vpop.permute.xlu1 %6738  ;;  %v6737_v53 = vpop.permute.xlu0 %6736 }
 0x1b2   : > { %v6749_v56 = vsel %vm6746_vm13, %v6735_v38, %v6737_v53  ;;  %v6750_v57 = vsel %vm6746_vm13, %v6737_v53, %v6739_v49 }
 0x1b3   : > { %13691 = vmatprep.subr.msk.mxu1 %vm477_vm1, %v6750_v57 }
 0x1b4   : > { %13692 = vmatpush1.msk.msra.mxu1 %vm477_vm1, %v6749_v56 }
 0x1b5   : > { %v6741_v63 = vpop.permute.xlu1 %6740  ;;  %v6731_v11 = vpop.permute.xlu0 %6730  ;;  %13693 = vmatmul.mubr.msk.f32.vlgmr.msra.gmra.mrb[0].mxu1 %vm473_vm2, %v13687_v58  ;;  %14576 = vmatprep.subr.mxu1 %v16413_v0 }
 0x1b6   : > { %v6747_v12 = vsel %vm6746_vm13, %v6731_v11, %v6733_v41  ;;  %14578 = vmatprep.mubr.msk.f32.mxu1 %vm16423_vm3, %v16413_v0  ;;  %v6751_v2 = vsel %vm6746_vm13, %v6739_v49, %v6741_v63 }
 0x1b7   : > { %13689 = vmatpush1.msk.msra.mxu0 %vm477_vm1, %v6747_v12 }
 0x1b8   : > { %13690 = vmatmul.mubr.msk.f32.vlgmr.msra.gmra.mrb[0].mxu0 %vm473_vm2, %v13687_v58 }
 0x1b9   : > { %v6745_v15 = vpop.permute.xlu1 %6744  ;;  %v6743_v16 = vpop.permute.xlu0 %6742  ;;  %6977 = vmatprep.mubr.f32.mxu0 %v16413_v0 }
 0x1ba   : > { %v6752_v17 = vsel %vm6746_vm13, %v6741_v63, %v6743_v16  ;;  %v6753_v19 = vsel %vm6746_vm13, %v6743_v16, %v6745_v15  ;;  %vm10441_vm13 = vcmask 793600  }
 0x1bb   : > { %13694 = vmatprep.subr.msk.mxu0 %vm477_vm1, %v6752_v17  ;;  %14577 = vmatpush3.msk.msra.mxu1 %vm477_vm1, %v6753_v19 }
 0x1bc   : > { %13695 = vmatpush1.msk.msra.mxu0 %vm477_vm1, %v6751_v2  ;;  %14579 = vmatmul.mubr.msk.f32.vlgmr.msra.gmra.mrb[40].mxu1 %vm473_vm2, %v13687_v58  ;;  %v2721_v20 = vpop.f32.mrb[14].mxu1 }
 0x1bd   : > { %13696 = vmatmul.mubr.msk.f32.vlgmr.msra.gmra.mrb[2].mxu0 %vm473_vm2, %v13687_v58  ;;  %13703 = vmatprep.subr.msk.mxu1 %vm477_vm1, %v17232_v45  ;;  %v2731_v24 = vadd.f32 %v2721_v20, %v2398_v42  ;;  %v14515_v1 = vpop.f32.mrb[15].mxu1 }
 0x1be   : > { %13700 = vmatprep.subr.msk.mxu0 %vm477_vm1, %v17217_v37  ;;  %13704 = vmatpush1.msk.msra.mxu1 %vm477_vm1, %v16596_v3  ;;  %v7361_v3 = vpop.permute.xlu0 %7360 }
 0x1bf   : > { %13701 = vmatpush1.msk.msra.mxu0 %vm477_vm1, %v16611_v6  ;;  %7203 = vmatprep.mubr.f32.mxu1 %v16413_v0  ;;  %v7362_v6 = vsel %vm466_vm0, %v16741_v21, %v7361_v3  ;;  %v13723_v21 = vld [vmem:[%s19925_s1 + $0xb0] sm:$0xff] }
 0x1c0   : > { %14581 = vmatprep.subr.mxu1 %v16413_v0  ;;  %7132 = vmatprep.mubr.f32.mxu0 %v16413_v0 }
 0x1c1   : > { %13705 = vmatmul.mubr.msk.f32.vlgmr.msra.gmra.mrb[0].mxu1 %vm473_vm2, %v13699_v25  ;;  %13706 = vmatprep.subr.msk.mxu0 %vm477_vm1, %v17257_v60 }
 0x1c2   : > { %14582 = vmatpush3.msk.msra.mxu1 %vm477_vm1, %v16678_v8  ;;  %13702 = vmatmul.mubr.msk.f32.vlgmr.msra.gmra.mrb[0].mxu0 %vm473_vm2, %v13699_v25  ;;  %v7663_v8 = vpop.permute.xlu1 %7662 }
 0x1c3   : > { %13707 = vmatpush1.msk.msra.mxu0 %vm477_vm1, %v16607_v5  ;;  %13715 = vmatprep.subr.msk.mxu1 %vm477_vm1, %v16751_v23  ;;  %v13711_v5 = vld [vmem:[%s19925_s1 + $0xa8] sm:$0xff]  ;;  %v7965_v23 = vpop.permute.xlu0 %7964 }
 0x1c4   : > { %13712 = vmatprep.subr.msk.mxu0 %vm477_vm1, %v16712_v14  ;;  %14583 = vmatprep.mubr.msk.f32.mxu1 %vm16423_vm3, %v16413_v0 }
 0x1c5   : > { %7274 = vmatprep.mubr.f32.mxu0 %v16413_v0  ;;  %14584 = vmatmul.mubr.msk.f32.vlgmr.msra.gmra.mrb[42].mxu1 %vm473_vm2, %v13699_v25 }
 0x1c6   : > { %13716 = vmatpush1.msk.msra.mxu1 %vm477_vm1, %v16709_v13  ;;  %13708 = vmatmul.mubr.msk.f32.vlgmr.msra.gmra.mrb[2].mxu0 %vm473_vm2, %v13699_v25 }
 0x1c7   : > { %13713 = vmatpush1.msk.msra.mxu0 %vm477_vm1, %v16728_v18  ;;  %7505 = vmatprep.mubr.f32.mxu1 %v16413_v0 }
 0x1c8   : > { %13718 = vmatprep.subr.msk.mxu0 %vm477_vm1, %v7362_v6  ;;  %14586 = vmatprep.subr.mxu1 %v16413_v0 }
 0x1c9   : > { %7434 = vmatprep.mubr.f32.mxu0 %v16413_v0  ;;  %13717 = vmatmul.mubr.msk.f32.vlgmr.msra.gmra.mrb[0].mxu1 %vm473_vm2, %v13711_v5 }
 0x1ca   : > { %14587 = vmatpush3.msk.msra.mxu1 %vm477_vm1, %v7361_v3  ;;  %13714 = vmatmul.mubr.msk.f32.vlgmr.msra.gmra.mrb[0].mxu0 %vm473_vm2, %v13711_v5 }
 0x1cb   : > { %13719 = vmatpush1.msk.msra.mxu0 %vm477_vm1, %v16747_v22  ;;  %13727 = vmatprep.subr.msk.mxu1 %vm477_vm1, %v16834_v39  ;;  %v7664_v22 = vsel %vm1091_vm4, %v16799_v31, %v7663_v8  ;;  %v8267_v31 = vpop.permute.xlu1 %8266 }
 0x1cc   : > { %13724 = vmatprep.subr.msk.mxu0 %vm477_vm1, %v16809_v33  ;;  %14588 = vmatprep.mubr.msk.f32.mxu1 %vm16423_vm3, %v16413_v0  ;;  %v3054_v13 = vpop.f32.mrb[16].mxu1 }
 0x1cd   : > { %7576 = vmatprep.mubr.f32.mxu0 %v16413_v0  ;;  %14589 = vmatmul.mubr.msk.f32.vlgmr.msra.gmra.mrb[44].mxu1 %vm473_vm2, %v13711_v5  ;;  %v3064_v14 = vadd.f32 %v3054_v13, %v2731_v24  ;;  %v14520_v18 = vpop.f32.mrb[17].mxu1 }
 0x1ce   : > { %13728 = vmatpush1.msk.msra.mxu1 %vm477_vm1, %v16793_v30  ;;  %13720 = vmatmul.mubr.msk.f32.vlgmr.msra.gmra.mrb[2].mxu0 %vm473_vm2, %v13711_v5  ;;  %v7966_v30 = vsel %vm1421_vm5, %v16877_v50, %v7965_v23 }
 0x1cf   : > { %13725 = vmatpush1.msk.msra.mxu0 %vm477_vm1, %v16790_v29  ;;  %7807 = vmatprep.mubr.f32.mxu1 %v16413_v0  ;;  %v13735_v29 = vld [vmem:[%s19925_s1 + $0xb8] sm:$0xff] }
 0x1d0   : > { %13730 = vmatprep.subr.msk.mxu0 %vm477_vm1, %v7664_v22  ;;  %14591 = vmatprep.subr.mxu1 %v16413_v0 }
 0x1d1   : > { %7736 = vmatprep.mubr.f32.mxu0 %v16413_v0  ;;  %13729 = vmatmul.mubr.msk.f32.vlgmr.msra.gmra.mrb[0].mxu1 %vm473_vm2, %v13723_v21 }
 0x1d2   : > { %14592 = vmatpush3.msk.msra.mxu1 %vm477_vm1, %v7663_v8  ;;  %13726 = vmatmul.mubr.msk.f32.vlgmr.msra.gmra.mrb[0].mxu0 %vm473_vm2, %v13723_v21 }
 0x1d3   : > { %13731 = vmatpush1.msk.msra.mxu0 %vm477_vm1, %v16816_v35  ;;  %13739 = vmatprep.subr.msk.mxu1 %vm477_vm1, %v16894_v52 }
 0x1d4   : > { %13736 = vmatprep.subr.msk.mxu0 %vm477_vm1, %v16853_v44  ;;  %14593 = vmatprep.mubr.msk.f32.mxu1 %vm16423_vm3, %v16413_v0 }
 0x1d5   : > { %7878 = vmatprep.mubr.f32.mxu0 %v16413_v0  ;;  %14594 = vmatmul.mubr.msk.f32.vlgmr.msra.gmra.mrb[46].mxu1 %vm473_vm2, %v13723_v21 }
 0x1d6   : > { %13740 = vmatpush1.msk.msra.mxu1 %vm477_vm1, %v16846_v43  ;;  %13732 = vmatmul.mubr.msk.f32.vlgmr.msra.gmra.mrb[2].mxu0 %vm473_vm2, %v13723_v21  ;;  %v8268_v43 = vsel %vm1751_vm6, %v16934_v62, %v8267_v31 }
 0x1d7   : > { %13737 = vmatpush1.msk.msra.mxu0 %vm477_vm1, %v16839_v40  ;;  %8109 = vmatprep.mubr.f32.mxu1 %v16413_v0  ;;  %v13747_v40 = vld [vmem:[%s19925_s1 + $0xc0] sm:$0xff]  ;;  %s19931_s1 = smov 124  }
 0x1d8   : > { %13742 = vmatprep.subr.msk.mxu0 %vm477_vm1, %v7966_v30  ;;  %14596 = vmatprep.subr.mxu1 %v16413_v0 }
 0x1d9   : > { %8038 = vmatprep.mubr.f32.mxu0 %v16413_v0  ;;  %13741 = vmatmul.mubr.msk.f32.vlgmr.msra.gmra.mrb[0].mxu1 %vm473_vm2, %v13735_v29 }
 0x1da   : > { %14597 = vmatpush3.msk.msra.mxu1 %vm477_vm1, %v7965_v23  ;;  %13738 = vmatmul.mubr.msk.f32.vlgmr.msra.gmra.mrb[0].mxu0 %vm473_vm2, %v13735_v29 }
 0x1db   : > { %13743 = vmatpush1.msk.msra.mxu0 %vm477_vm1, %v16883_v51  ;;  %13751 = vmatprep.subr.msk.mxu1 %vm477_vm1, %v16938_v9 }
 0x1dc   : > { %13748 = vmatprep.subr.msk.mxu0 %vm477_vm1, %v16927_v61  ;;  %14598 = vmatprep.mubr.msk.f32.mxu1 %vm16423_vm3, %v16413_v0  ;;  %v3387_v33 = vpop.f32.mrb[18].mxu1 }
 0x1dd   : > { %8180 = vmatprep.mubr.f32.mxu0 %v16413_v0  ;;  %14599 = vmatmul.mubr.msk.f32.vlgmr.msra.gmra.mrb[48].mxu1 %vm473_vm2, %v13735_v29  ;;  %v3397_v35 = vadd.f32 %v3387_v33, %v3064_v14  ;;  %v14525_v39 = vpop.f32.mrb[19].mxu1 }
 0x1de   : > { %13752 = vmatpush1.msk.msra.mxu1 %vm477_vm1, %v16916_v59  ;;  %13744 = vmatmul.mubr.msk.f32.vlgmr.msra.gmra.mrb[2].mxu0 %vm473_vm2, %v13735_v29 }
 0x1df   : > { %13749 = vmatpush1.msk.msra.mxu0 %vm477_vm1, %v16902_v55  ;;  %8411 = vmatprep.mubr.f32.mxu1 %v16413_v0 }
 0x1e0   : > { %13754 = vmatprep.subr.msk.mxu0 %vm477_vm1, %v8268_v43  ;;  %8340 = vmatprep.mubr.f32.mxu0 %v16413_v0 }
 0x1e1   : > { %13753 = vmatmul.mubr.msk.f32.vlgmr.msra.gmra.mrb[0].mxu1 %vm473_vm2, %v13747_v40  ;;  %14601 = vmatprep.subr.mxu1 %v16413_v0 }
 0x1e2   : > { %13750 = vmatmul.mubr.msk.f32.vlgmr.msra.gmra.mrb[0].mxu0 %vm473_vm2, %v13747_v40  ;;  %14602 = vmatpush3.msk.msra.mxu1 %vm477_vm1, %v8267_v31 }
 0x1e3   : > { %13755 = vmatpush1.msk.msra.mxu0 %vm477_vm1, %v16942_v10  ;;  %14603 = vmatprep.mubr.msk.f32.mxu1 %vm16423_vm3, %v16413_v0 }
 0x1e4   : > { %8482 = vmatprep.mubr.f32.mxu0 %v16413_v0 }
 0x1e5   : > { %14604 = vmatmul.mubr.msk.f32.vlgmr.msra.gmra.mrb[50].mxu1 %vm473_vm2, %v13747_v40 }
 0x1e6   : > { %13756 = vmatmul.mubr.msk.f32.vlgmr.msra.gmra.mrb[2].mxu0 %vm473_vm2, %v13747_v40  ;;  %vm16435_vm2 = vmmov 1  }
 0x1e7   : > { %14673 = vmatprep.mubr.msk.f32.mxu0 %vm16423_vm3, %v16413_v0  ;;  %vm15484_vm14 = vmpackc.low %vm477_vm1, %vm16435_vm2  ;;  %vm9192_vm1 = vcmask 64512  }
 0x1ec   : > { %v3720_v44 = vpop.f32.mrb[20].mxu1 }
 0x1ed   : > { %v3730_v50 = vadd.f32 %v3720_v44, %v3397_v35  ;;  %v14530_v51 = vpop.f32.mrb[21].mxu1 }
 0x1ee   : > { %v8669_v51 = vld [vmem:[%s19897_s5 + $0x8] sm:$0xff] }
 0x200   : > { %v4053_v52 = vpop.f32.mrb[22].mxu1 }
 0x201   : > { %v4063_v55 = vadd.f32 %v4053_v52, %v3730_v50  ;;  %v14535_v59 = vpop.f32.mrb[23].mxu1  ;;  %v8671_v52 = vld [vmem:[%s19897_s5 + $0x18] sm:$0xff] }
 0x202   : > { %v15271_v59 = vpack.c.bf16 %v8671_v52, %v8669_v51  ;;  %v8700_v51 = vld [vmem:[%s19897_s5 + $0x100] sm:$0xff]  ;;  %v8702_v52 = vld [vmem:[%s19897_s5 + $0x110] sm:$0xff] }
 0x204   : > { %15272 = vmatprep.subr.bf16.mxu1 %v15271_v59  ;;  %v8707_v59 = vld [vmem:[%s19897_s5 + $0x138] sm:$0xff] }
 0x210   : > { %v4386_v61 = vpop.f32.mrb[24].mxu1 }
 0x211   : > { %v4396_v62 = vadd.f32 %v4386_v61, %v4063_v55  ;;  %v14540_v9 = vpop.f32.mrb[25].mxu1  ;;  %v8668_v55 = vld [vmem:[%s19897_s5] sm:$0xff]  ;;  %v8670_v61 = vld [vmem:[%s19897_s5 + $0x10] sm:$0xff] }
 0x212   : > { %v8675_v9 = vld [vmem:[%s19897_s5 + $0x38] sm:$0xff] }
 0x21f   : > { %v17611_v3 = vpop.permute.xlu0 %8569 }
 0x220   : > { %v4719_v10 = vpop.f32.mrb[26].mxu1 }
 0x221   : > { %v4729_v37 = vadd.f32 %v4719_v10, %v4396_v62  ;;  %v14545_v45 = vpop.f32.mrb[27].mxu1  ;;  %v8673_v62 = vld [vmem:[%s19897_s5 + $0x28] sm:$0xff]  ;;  %v15273_v10 = vpack.c.bf16 %v8670_v61, %v8668_v55  ;;  %v15305_v61 = vpack.c.bf16 %v8702_v52, %v8700_v51 }
 0x222   : > { %v8672_v45 = vld [vmem:[%s19897_s5 + $0x20] sm:$0xff]  ;;  %v8705_v55 = vld [vmem:[%s19897_s5 + $0x128] sm:$0xff] }
 0x223   : > { %15274 = vmatpush1.bf16.msra.mxu1 %v15273_v10  ;;  %v8706_v10 = vld [vmem:[%s19897_s5 + $0x130] sm:$0xff] }
 0x22f   : > { %v5052_v60 = vpop.f32.mrb[28].mxu1 }
 0x230   : > { %v5062_v26 = vadd.f32 %v5052_v60, %v4729_v37  ;;  %v14550_v27 = vpop.f32.mrb[29].mxu1  ;;  %v15275_v37 = vpack.c.bf16 %v8675_v9, %v8673_v62  ;;  %v8674_v60 = vld [vmem:[%s19897_s5 + $0x30] sm:$0xff]  ;;  %v15307_v62 = vpack.c.bf16 %v8707_v59, %v8705_v55  ;;  %v8704_v9 = vld [vmem:[%s19897_s5 + $0x120] sm:$0xff] }
 0x231   : > { %v8679_v27 = vld [vmem:[%s19897_s5 + $0x58] sm:$0xff] }
 0x232   : > { %15276 = vmatprep.subr.bf16.mxu1 %v15275_v37  ;;  %v8709_v37 = vld [vmem:[%s19897_s5 + $0x148] sm:$0xff] }
 0x23f   : > { %v5385_v28 = vpop.f32.mrb[30].mxu1 }
 0x240   : > { %v5395_v4 = vadd.f32 %v5385_v28, %v5062_v26  ;;  %v14555_v32 = vpop.f32.mrb[31].mxu1  ;;  %v8677_v26 = vld [vmem:[%s19897_s5 + $0x48] sm:$0xff]  ;;  %v15277_v28 = vpack.c.bf16 %v8674_v60, %v8672_v45  ;;  %v8711_v45 = vld [vmem:[%s19897_s5 + $0x158] sm:$0xff]  ;;  %v15309_v60 = vpack.c.bf16 %v8706_v10, %v8704_v9 }
 0x241   : > { %v8676_v32 = vld [vmem:[%s19897_s5 + $0x40] sm:$0xff] }
 0x242   : > { %15278 = vmatpush1.bf16.msra.mxu1 %v15277_v28  ;;  %v8710_v28 = vld [vmem:[%s19897_s5 + $0x150] sm:$0xff] }
 0x24f   : > { %v5718_v34 = vpop.f32.mrb[32].mxu1 }
 0x250   : > { %v5728_v36 = vadd.f32 %v5718_v34, %v5395_v4  ;;  %v14560_v7 = vpop.f32.mrb[33].mxu1  ;;  %v15279_v4 = vpack.c.bf16 %v8679_v27, %v8677_v26  ;;  %v8678_v34 = vld [vmem:[%s19897_s5 + $0x50] sm:$0xff]  ;;  %v15311_v26 = vpack.c.bf16 %v8711_v45, %v8709_v37  ;;  %v8708_v27 = vld [vmem:[%s19897_s5 + $0x140] sm:$0xff] }
 0x251   : > { %v8683_v7 = vld [vmem:[%s19897_s5 + $0x78] sm:$0xff] }
 0x252   : > { %15280 = vmatprep.subr.bf16.mxu1 %v15279_v4  ;;  %v8713_v4 = vld [vmem:[%s19897_s5 + $0x168] sm:$0xff] }
 0x25f   : > { %v6051_v38 = vpop.f32.mrb[34].mxu1 }
 0x260   : > { %v6061_v41 = vadd.f32 %v6051_v38, %v5728_v36  ;;  %v14565_v42 = vpop.f32.mrb[35].mxu1  ;;  %v8681_v36 = vld [vmem:[%s19897_s5 + $0x68] sm:$0xff]  ;;  %v15281_v38 = vpack.c.bf16 %v8678_v34, %v8676_v32  ;;  %v8715_v32 = vld [vmem:[%s19897_s5 + $0x178] sm:$0xff]  ;;  %v15313_v34 = vpack.c.bf16 %v8710_v28, %v8708_v27 }
 0x261   : > { %v8680_v42 = vld [vmem:[%s19897_s5 + $0x60] sm:$0xff]  ;;  %v8737_v28 = vld [vmem:[%s19897_s5 + $0x228] sm:$0xff] }
 0x262   : > { %15282 = vmatpush1.bf16.msra.mxu1 %v15281_v38  ;;  %v8714_v38 = vld [vmem:[%s19897_s5 + $0x170] sm:$0xff] }
 0x26f   : > { %v6384_v46 = vpop.f32.mrb[36].mxu1 }
 0x270   : > { %v6394_v47 = vadd.f32 %v6384_v46, %v6061_v41  ;;  %v14570_v48 = vpop.f32.mrb[37].mxu1  ;;  %v15283_v41 = vpack.c.bf16 %v8683_v7, %v8681_v36  ;;  %v8682_v46 = vld [vmem:[%s19897_s5 + $0x70] sm:$0xff]  ;;  %v15315_v36 = vpack.c.bf16 %v8715_v32, %v8713_v4  ;;  %v8712_v7 = vld [vmem:[%s19897_s5 + $0x160] sm:$0xff]  ;;  %v8739_v4 = vld [vmem:[%s19897_s5 + $0x238] sm:$0xff] }
 0x271   : > { %v8687_v48 = vld [vmem:[%s19897_s5 + $0x98] sm:$0xff] }
 0x272   : > { %15284 = vmatprep.subr.bf16.mxu1 %v15283_v41  ;;  %v8717_v41 = vld [vmem:[%s19897_s5 + $0x188] sm:$0xff] }
 0x27f   : > { %v6717_v49 = vpop.f32.mrb[38].mxu1 }
 0x280   : > { %v6727_v53 = vadd.f32 %v6717_v49, %v6394_v47  ;;  %v14575_v54 = vpop.f32.mrb[39].mxu1  ;;  %v8685_v47 = vld [vmem:[%s19897_s5 + $0x88] sm:$0xff]  ;;  %v15285_v49 = vpack.c.bf16 %v8682_v46, %v8680_v42  ;;  %v8719_v42 = vld [vmem:[%s19897_s5 + $0x198] sm:$0xff]  ;;  %v15317_v46 = vpack.c.bf16 %v8714_v38, %v8712_v7 }
 0x281   : > { %v8684_v54 = vld [vmem:[%s19897_s5 + $0x80] sm:$0xff] }
 0x282   : > { %15286 = vmatpush1.bf16.msra.mxu1 %v15285_v49  ;;  %v8718_v49 = vld [vmem:[%s19897_s5 + $0x190] sm:$0xff] }
 0x28f   : > { %v7050_v56 = vpop.f32.mrb[40].mxu1 }
 0x290   : > { %v7060_v57 = vadd.f32 %v7050_v56, %v6727_v53  ;;  %v14580_v58 = vpop.f32.mrb[41].mxu1  ;;  %v15287_v53 = vpack.c.bf16 %v8687_v48, %v8685_v47  ;;  %v8686_v56 = vld [vmem:[%s19897_s5 + $0x90] sm:$0xff]  ;;  %v15319_v47 = vpack.c.bf16 %v8719_v42, %v8717_v41  ;;  %v8716_v48 = vld [vmem:[%s19897_s5 + $0x180] sm:$0xff] }
 0x291   : > { %v8691_v58 = vld [vmem:[%s19897_s5 + $0xb8] sm:$0xff] }
 0x292   : > { %15288 = vmatprep.subr.bf16.mxu1 %v15287_v53  ;;  %v8721_v53 = vld [vmem:[%s19897_s5 + $0x1a8] sm:$0xff] }
 0x298   : > { %v7347_v63 = vpop.f32.mrb[42].mxu1 }
 0x299   : > { %v7357_v11 = vadd.f32 %v7347_v63, %v7060_v57  ;;  %v14585_v12 = vpop.f32.mrb[43].mxu1  ;;  %v8689_v57 = vld [vmem:[%s19897_s5 + $0xa8] sm:$0xff]  ;;  %v15289_v63 = vpack.c.bf16 %v8686_v56, %v8684_v54  ;;  %v8723_v54 = vld [vmem:[%s19897_s5 + $0x1b8] sm:$0xff]  ;;  %v15321_v56 = vpack.c.bf16 %v8718_v49, %v8716_v48  ;;  %v8736_v48 = vld [vmem:[%s19897_s5 + $0x220] sm:$0xff] }
 0x29a   : > { %v8688_v12 = vld [vmem:[%s19897_s5 + $0xa0] sm:$0xff]  ;;  %v8738_v49 = vld [vmem:[%s19897_s5 + $0x230] sm:$0xff] }
 0x29b   : > { %15290 = vmatpush1.bf16.msra.mxu1 %v15289_v63  ;;  %v8722_v63 = vld [vmem:[%s19897_s5 + $0x1b0] sm:$0xff] }
 0x2a0   : > { %v7649_v15 = vpop.f32.mrb[44].mxu1 }
 0x2a1   : > { %v7659_v16 = vadd.f32 %v7649_v15, %v7357_v11  ;;  %v14590_v17 = vpop.f32.mrb[45].mxu1  ;;  %v15291_v11 = vpack.c.bf16 %v8691_v58, %v8689_v57  ;;  %v8690_v15 = vld [vmem:[%s19897_s5 + $0xb0] sm:$0xff]  ;;  %v15323_v57 = vpack.c.bf16 %v8723_v54, %v8721_v53  ;;  %v8720_v58 = vld [vmem:[%s19897_s5 + $0x1a0] sm:$0xff]  ;;  %v8741_v53 = vld [vmem:[%s19897_s5 + $0x248] sm:$0xff] }
 0x2a2   : > { %v8695_v17 = vld [vmem:[%s19897_s5 + $0xd8] sm:$0xff] }
 0x2a3   : > { %15292 = vmatprep.subr.bf16.mxu1 %v15291_v11  ;;  %v15325_v11 = vpack.c.bf16 %v8722_v63, %v8720_v58  ;;  %v8743_v54 = vld [vmem:[%s19897_s5 + $0x258] sm:$0xff] }
 0x2a8   : > { %v7951_v19 = vpop.f32.mrb[46].mxu1 }
 0x2a9   : > { %v7961_v2 = vadd.f32 %v7951_v19, %v7659_v16  ;;  %v14595_v20 = vpop.f32.mrb[47].mxu1  ;;  %v8693_v16 = vld [vmem:[%s19897_s5 + $0xc8] sm:$0xff]  ;;  %v15293_v19 = vpack.c.bf16 %v8690_v15, %v8688_v12  ;;  %v8727_v15 = vld [vmem:[%s19897_s5 + $0x1d8] sm:$0xff] }
 0x2aa   : > { %v8692_v20 = vld [vmem:[%s19897_s5 + $0xc0] sm:$0xff]  ;;  %v8725_v12 = vld [vmem:[%s19897_s5 + $0x1c8] sm:$0xff] }
 0x2ab   : > { %15294 = vmatpush1.bf16.msra.mxu1 %v15293_v19  ;;  %v8726_v19 = vld [vmem:[%s19897_s5 + $0x1d0] sm:$0xff] }
 0x2b0   : > { %v8253_v24 = vpop.f32.mrb[48].mxu1 }
 0x2b1   : > { %v8263_v25 = vadd.f32 %v8253_v24, %v7961_v2  ;;  %v14600_v1 = vpop.f32.mrb[49].mxu1  ;;  %v15295_v2 = vpack.c.bf16 %v8695_v17, %v8693_v16  ;;  %v8694_v24 = vld [vmem:[%s19897_s5 + $0xd0] sm:$0xff]  ;;  %v15327_v16 = vpack.c.bf16 %v8727_v15, %v8725_v12  ;;  %v8724_v17 = vld [vmem:[%s19897_s5 + $0x1c0] sm:$0xff]  ;;  %v15341_v12 = vpack.c.bf16 %v8738_v49, %v8736_v48  ;;  %v8775_v48 = vld [vmem:[%s19897_s5 + $0x358] sm:$0xff] }
 0x2b2   : > { %v8699_v1 = vld [vmem:[%s19897_s5 + $0xf8] sm:$0xff] }
 0x2b3   : > { %15296 = vmatprep.subr.bf16.mxu1 %v15295_v2  ;;  %v15329_v2 = vpack.c.bf16 %v8726_v19, %v8724_v17  ;;  %v8740_v17 = vld [vmem:[%s19897_s5 + $0x240] sm:$0xff]  ;;  %v8742_v19 = vld [vmem:[%s19897_s5 + $0x250] sm:$0xff] }
 0x2b4   : > { %v8413_v5 = vpop.f32.mrb[0].mxu1 }
 0x2b5   : > { %v8342_v6 = vpop.f32.mrb[0].mxu0  ;;  %v8415_v8 = vpop.f32.mrb[1].mxu1  ;;  %v17614_v13 = vadd.f32 %v17611_v3, %v8413_v5  ;;  %v15297_v5 = vpack.c.bf16 %v8694_v24, %v8692_v20  ;;  %v8729_v20 = vld [vmem:[%s19897_s5 + $0x1e8] sm:$0xff]  ;;  %v8731_v24 = vld [vmem:[%s19897_s5 + $0x1f8] sm:$0xff] }
 0x2b6   : > { %v8344_v14 = vpop.f32.mrb[1].mxu0  ;;  %v17617_v18 = vadd.f32 %v17611_v3, %v8342_v6  ;;  %v17620_v21 = vadd.f32 %v17611_v3, %v8415_v8  ;;  %v8696_v8 = vld [vmem:[%s19897_s5 + $0xe0] sm:$0xff] }
 0x2b7   : > { %v17623_v22 = vadd.f32 %v17611_v3, %v8344_v14  ;;  %v8581_v30 = vmax.f32 %v17614_v13, 0.0  ;;  %v8698_v14 = vld [vmem:[%s19897_s5 + $0xf0] sm:$0xff]  ;;  %15298 = vmatpush1.bf16.msra.mxu1 %v15297_v5  ;;  %v8728_v5 = vld [vmem:[%s19897_s5 + $0x1e0] sm:$0xff]  ;;  %v8735_v13 = vld [vmem:[%s19897_s5 + $0x218] sm:$0xff] }
 0x2b8   : > { %v8555_v23 = vpop.f32.mrb[50].mxu1  ;;  %v8579_v40 = vmax.f32 %v17617_v18, 0.0  ;;  %v8582_v43 = vmax.f32 %v17620_v21, 0.0  ;;  %v8733_v18 = vld [vmem:[%s19897_s5 + $0x208] sm:$0xff] }
 0x2b9   : > { %v8580_v29 = vmax.f32 %v17623_v22, 0.0  ;;  %v17627_v31 = vadd.f32 %v8555_v23, %v8263_v25  ;;  %v17629_v33 = vpop.f32.mrb[2].mxu0  ;;  %v14605_v35 = vpop.f32.mrb[51].mxu1  ;;  %v8697_v25 = vld [vmem:[%s19897_s5 + $0xe8] sm:$0xff] }
 0x2ba   : > { %v17631_v39 = vpop.f32.mrb[3].mxu0  ;;  %v16320_v50 = vpack.i.bf16 %v8579_v40, %v8582_v43  ;;  %v15299_v6 = vpack.c.bf16 %v8699_v1, %v8697_v25  ;;  %v8701_v23 = vld [vmem:[%s19897_s5 + $0x108] sm:$0xff]  ;;  %v8703_v35 = vld [vmem:[%s19897_s5 + $0x118] sm:$0xff]  ;;  %v15331_v1 = vpack.c.bf16 %v8731_v24, %v8729_v20  ;;  %v8576_v52 = vadd.f32 %v17611_v3, %v17629_v33 }
 0x2bb   : > { %v16315_v44 = vpack.i.bf16 %v8581_v30, %v8580_v29  ;;  %v17842_v55 = vadd.f32 %v17611_v3, %v17631_v39  ;;  %v8578_v22 = vadd.f32 %v17611_v3, %v17627_v31  ;;  %v15345_v24 = vpack.c.bf16 %v8742_v19, %v8740_v17  ;;  %v8776_v17 = vld [vmem:[%s19897_s5 + $0x360] sm:$0xff]  ;;  %v8778_v19 = vld [vmem:[%s19897_s5 + $0x370] sm:$0xff] }
 0x2bc   : > { %15300 = vmatprep.subr.bf16.mxu1 %v15299_v6  ;;  %v8730_v6 = vld [vmem:[%s19897_s5 + $0x1f0] sm:$0xff]  ;;  %v8583_v37 = vmax.f32 %v8576_v52, 0.0  ;;  %v8755_v52 = vld [vmem:[%s19897_s5 + $0x2b8] sm:$0xff] }
 0x2bd   : > { %16316 = vrot.lane.b32.xlu1 %v16315_v44, %s19914_s30  ;;  %v15301_v44 = vpack.c.bf16 %v8698_v14, %v8696_v8  ;;  %v8584_v33 = vmax.f32 %v17842_v55, 0.0 }
 0x2bf   : > { %15302 = vmatpush1.bf16.msra.mxu1 %v15301_v44 }
 0x2c1   : > { %16321 = vrot.lane.b32.xlu1 %v16320_v50, %s19914_s30  ;;  %v15303_v50 = vpack.c.bf16 %v8703_v35, %v8701_v23  ;;  %v15333_v23 = vpack.c.bf16 %v8730_v6, %v8728_v5  ;;  %v8746_v5 = vld [vmem:[%s19897_s5 + $0x270] sm:$0xff]  ;;  %s16437_s30 = smov 113  }
 0x2c3   : > { %15304 = vmatprep.subr.bf16.mxu1 %v15303_v50 }
 0x2c4   : > { %15306 = vmatpush1.bf16.msra.mxu1 %v15305_v61 }
 0x2c5   : > { %15308 = vmatprep.subr.bf16.mxu1 %v15307_v62 }
 0x2c8   : > { %15310 = vmatpush1.bf16.msra.mxu1 %v15309_v60  ;;  %v8732_v60 = vld [vmem:[%s19897_s5 + $0x200] sm:$0xff] }
 0x2c9   : > { %15312 = vmatprep.subr.bf16.mxu1 %v15311_v26  ;;  %v8734_v26 = vld [vmem:[%s19897_s5 + $0x210] sm:$0xff] }
 0x2ca   : > { %v15337_v41 = vpack.c.bf16 %v8734_v26, %v8732_v60  ;;  %v8762_v60 = vld [vmem:[%s19897_s5 + $0x2f0] sm:$0xff]  ;;  %v8765_v26 = vld [vmem:[%s19897_s5 + $0x308] sm:$0xff] }
 0x2cc   : > { %15314 = vmatpush1.bf16.msra.mxu1 %v15313_v34 }
 0x2cd   : > { %15316 = vmatprep.subr.bf16.mxu1 %v15315_v36 }
 0x2d0   : > { %15318 = vmatpush1.bf16.msra.mxu1 %v15317_v46 }
 0x2d1   : > { %15320 = vmatprep.subr.bf16.mxu1 %v15319_v47  ;;  %v15339_v47 = vpack.c.bf16 %v8739_v4, %v8737_v28 }
 0x2d4   : > { %15322 = vmatpush1.bf16.msra.mxu1 %v15321_v56 }
 0x2d5   : > { %15324 = vmatprep.subr.bf16.mxu1 %v15323_v57 }
 0x2d8   : > { %15326 = vmatpush1.bf16.msra.mxu1 %v15325_v11 }
 0x2d9   : > { %15328 = vmatprep.subr.bf16.mxu1 %v15327_v16  ;;  %v15343_v16 = vpack.c.bf16 %v8743_v54, %v8741_v53  ;;  %v8772_v54 = vld [vmem:[%s19897_s5 + $0x340] sm:$0xff] }
 0x2dc   : > { %15330 = vmatpush1.bf16.msra.mxu1 %v15329_v2  ;;  %v8747_v2 = vld [vmem:[%s19897_s5 + $0x278] sm:$0xff] }
 0x2dd   : > { %15332 = vmatprep.subr.bf16.mxu1 %v15331_v1  ;;  %v8744_v1 = vld [vmem:[%s19897_s5 + $0x260] sm:$0xff] }
 0x2e0   : > { %15334 = vmatpush1.bf16.msra.mxu1 %v15333_v23  ;;  %v15349_v23 = vpack.c.bf16 %v8746_v5, %v8744_v1  ;;  %v8785_v1 = vld [vmem:[%s19897_s5 + $0x3a8] sm:$0xff]  ;;  %v8787_v5 = vld [vmem:[%s19897_s5 + $0x3b8] sm:$0xff] }
 0x32f   : > { %v16317_v25 = vpop.permute.xlu1 %16316 }
 0x330   : > { %v16319_v8 = vunpack.i.h.bf16 %v16317_v25  ;;  %v16318_v14 = vunpack.i.l.bf16 %v16317_v25 }
 0x332   : > { %v8608_v44 = vsel %vm466_vm0, %v16318_v14, %v16319_v8 }
 0x333   : > { %v16322_v35 = vpop.permute.xlu1 %16321  ;;  %v8621_v62 = vmax.f32 %v8580_v29, %v8608_v44  ;;  %v16330_v29 = vpack.i.bf16 %v8584_v33, %v8583_v37  ;;  %v8748_v44 = vld [vmem:[%s19897_s5 + $0x280] sm:$0xff] }
 0x334   : > { %v16324_v50 = vunpack.i.h.bf16 %v16322_v35  ;;  %v16323_v51 = vunpack.i.l.bf16 %v16322_v35 }
 0x336   : > { %v8607_v59 = vsel %vm466_vm0, %v16324_v50, %v16318_v14  ;;  %v8609_v61 = vsel %vm466_vm0, %v16319_v8, %v16323_v51  ;;  %v8749_v8 = vld [vmem:[%s19897_s5 + $0x288] sm:$0xff]  ;;  %v8751_v14 = vld [vmem:[%s19897_s5 + $0x298] sm:$0xff]  ;;  %v8750_v50 = vld [vmem:[%s19897_s5 + $0x290] sm:$0xff] }
 0x337   : > { %v8620_v9 = vmax.f32 %v8579_v40, %v8607_v59  ;;  %v17852_v10 = vmax.f32 %v8581_v30, %v8609_v61  ;;  %v15335_v30 = vpack.c.bf16 %v8735_v13, %v8733_v18  ;;  %v8585_v40 = vmax.f32 %v8578_v22, 0.0  ;;  %v8752_v61 = vld [vmem:[%s19897_s5 + $0x2a0] sm:$0xff]  ;;  %v8761_v18 = vld [vmem:[%s19897_s5 + $0x2e8] sm:$0xff]  ;;  %v8763_v13 = vld [vmem:[%s19897_s5 + $0x2f8] sm:$0xff] }
 0x338   : > { %v15351_v35 = vpack.c.bf16 %v8751_v14, %v8749_v8  ;;  %v15353_v55 = vpack.c.bf16 %v8750_v50, %v8748_v44  ;;  %v8756_v22 = vld [vmem:[%s19897_s5 + $0x2c0] sm:$0xff]  ;;  %v15387_v14 = vpack.c.bf16 %v8787_v5, %v8785_v1  ;;  %v8789_v44 = vld [vmem:[%s19897_s5 + $0x3c8] sm:$0xff]  ;;  %v8791_v50 = vld [vmem:[%s19897_s5 + $0x3d8] sm:$0xff] }
 0x339   : > { %8634 = vrot.lane.b32.xlu1 %v8620_v9, %s19928_s2  ;;  %v16325_v39 = vpack.i.bf16 %v17852_v10, %v8621_v62  ;;  %15336 = vmatprep.subr.bf16.mxu1 %v15335_v30 }
 0x33b   : > { %16326 = vrot.lane.b32.xlu0 %v16325_v39, %s19928_s2 }
 0x33f   : > { %16331 = vrot.lane.b32.xlu0 %v16330_v29, %s19929_s22  ;;  %v8758_v29 = vld [vmem:[%s19897_s5 + $0x2d0] sm:$0xff] }
 0x340   : > { %v15361_v30 = vpack.c.bf16 %v8758_v29, %v8756_v22  ;;  %v8797_v22 = vld [vmem:[%s19897_s5 + $0x408] sm:$0xff]  ;;  %v8799_v29 = vld [vmem:[%s19897_s5 + $0x418] sm:$0xff] }
 0x343   : > { %8605 = vrot.lane.b32.xlu0 %v8585_v40, %s19929_s22 }
 0x3ab   : > { %v8635_v27 = vpop.permute.xlu1 %8634 }
 0x3ad   : > { %v17868_v45 = vpop.permute.xlu0 %16326 }
 0x3ae   : > { %v16329_v3 = vunpack.i.h.bf16 %v17868_v45  ;;  %v16328_v31 = vunpack.i.l.bf16 %v17868_v45 }
 0x3b0   : > { %v8648_v32 = vsel %vm2084_vm7, %v8635_v27, %v16328_v31  ;;  %v8649_v34 = vsel %vm2084_vm7, %v16328_v31, %v16329_v3  ;;  %v8760_v31 = vld [vmem:[%s19897_s5 + $0x2e0] sm:$0xff]  ;;  %v8767_v27 = vld [vmem:[%s19897_s5 + $0x318] sm:$0xff] }
 0x3b1   : > { %v8661_v36 = vmax.f32 %v8620_v9, %v8648_v32  ;;  %v16332_v7 = vpop.permute.xlu0 %16331  ;;  %v8662_v38 = vmax.f32 %v8621_v62, %v8649_v34  ;;  %v8754_v62 = vld [vmem:[%s19897_s5 + $0x2b0] sm:$0xff]  ;;  %v8757_v9 = vld [vmem:[%s19897_s5 + $0x2c8] sm:$0xff]  ;;  %v15365_v28 = vpack.c.bf16 %v8762_v60, %v8760_v31  ;;  %v15367_v4 = vpack.c.bf16 %v8767_v27, %v8765_v26  ;;  %v8764_v32 = vld [vmem:[%s19897_s5 + $0x300] sm:$0xff] }
 0x3b2   : > { %v16334_v42 = vunpack.i.h.bf16 %v16332_v7  ;;  %v16333_v46 = vunpack.i.l.bf16 %v16332_v7  ;;  %v8766_v34 = vld [vmem:[%s19897_s5 + $0x310] sm:$0xff]  ;;  %v8771_v7 = vld [vmem:[%s19897_s5 + $0x338] sm:$0xff]  ;;  %v8796_v60 = vld [vmem:[%s19897_s5 + $0x400] sm:$0xff] }
 0x3b3   : > { %8958 = vmatprep.mubr.f32.mxu1 %v8662_v38  ;;  %v15369_v38 = vpack.c.bf16 %v8766_v34, %v8764_v32  ;;  %v8798_v26 = vld [vmem:[%s19897_s5 + $0x410] sm:$0xff]  ;;  %v8801_v27 = vld [vmem:[%s19897_s5 + $0x428] sm:$0xff] }
 0x3b4   : > { %v8610_v56 = vsel %vm466_vm0, %v16323_v51, %v16333_v46  ;;  %v8611_v57 = vsel %vm466_vm0, %v16333_v46, %v16334_v42  ;;  %8959 = vmatmul.mubr.f32.vlgmr.msra.gmra.mrb[52].mxu1 %v8661_v36  ;;  %v8753_v51 = vld [vmem:[%s19897_s5 + $0x2a8] sm:$0xff]  ;;  %v8770_v46 = vld [vmem:[%s19897_s5 + $0x330] sm:$0xff] }
 0x3b5   : > { %v17904_v58 = vmax.f32 %v8582_v43, %v8610_v56  ;;  %v17906_v63 = vmax.f32 %v8583_v37, %v8611_v57  ;;  %v8606_v11 = vpop.permute.xlu0 %8605  ;;  %15338 = vmatpush1.bf16.msra.mxu1 %v15337_v41  ;;  %v8745_v43 = vld [vmem:[%s19897_s5 + $0x268] sm:$0xff]  ;;  %v15355_v59 = vpack.c.bf16 %v8755_v52, %v8753_v51  ;;  %v8759_v37 = vld [vmem:[%s19897_s5 + $0x2d8] sm:$0xff]  ;;  %v8774_v56 = vld [vmem:[%s19897_s5 + $0x350] sm:$0xff]  ;;  %v15391_v52 = vpack.c.bf16 %v8791_v50, %v8789_v44 }
 0x3b6   : > { %v17908_v15 = vmax.f32 %v8585_v40, %v8606_v11  ;;  %15340 = vmatprep.subr.bf16.mxu1 %v15339_v47  ;;  %v8612_v20 = vsel %vm466_vm0, %v16334_v42, %v8606_v11  ;;  %v15347_v25 = vpack.c.bf16 %v8747_v2, %v8745_v43  ;;  %v15359_v39 = vpack.c.bf16 %v8759_v37, %v8757_v9  ;;  %v8769_v36 = vld [vmem:[%s19897_s5 + $0x328] sm:$0xff]  ;;  %v8768_v42 = vld [vmem:[%s19897_s5 + $0x320] sm:$0xff]  ;;  %v8779_v11 = vld [vmem:[%s19897_s5 + $0x378] sm:$0xff] }
 0x3b7   : > { %v16335_v21 = vpack.i.bf16 %v17906_v63, %v17904_v58  ;;  %v17934_v6 = vmax.f32 %v8584_v33, %v8612_v20  ;;  %v15357_v33 = vpack.c.bf16 %v8754_v62, %v8752_v61  ;;  %v15363_v40 = vpack.c.bf16 %v8763_v13, %v8761_v18  ;;  %v8773_v47 = vld [vmem:[%s19897_s5 + $0x348] sm:$0xff]  ;;  %v8783_v43 = vld [vmem:[%s19897_s5 + $0x398] sm:$0xff] }
 0x3b8   : > { %8646 = vrot.lane.b32.xlu0 %v17908_v15, %s19928_s2  ;;  %v15371_v41 = vpack.c.bf16 %v8771_v7, %v8769_v36  ;;  %v15373_v49 = vpack.c.bf16 %v8770_v46, %v8768_v42  ;;  %v15375_v53 = vpack.c.bf16 %v8775_v48, %v8773_v47  ;;  %v8777_v57 = vld [vmem:[%s19897_s5 + $0x368] sm:$0xff]  ;;  %v15381_v2 = vpack.c.bf16 %v8778_v19, %v8776_v17  ;;  %v8795_v62 = vld [vmem:[%s19897_s5 + $0x3f8] sm:$0xff]  ;;  %v8802_v46 = vld [vmem:[%s19897_s5 + $0x430] sm:$0xff] }
 0x3b9   : > { %16336 = vrot.lane.b32.xlu1 %v16335_v21, %s19928_s2  ;;  %15342 = vmatpush1.bf16.msra.mxu1 %v15341_v12  ;;  %v15377_v12 = vpack.c.bf16 %v8774_v56, %v8772_v54  ;;  %v8781_v21 = vld [vmem:[%s19897_s5 + $0x388] sm:$0xff]  ;;  %v15399_v13 = vpack.c.bf16 %v8799_v29, %v8797_v22  ;;  %v8807_v47 = vld [vmem:[%s19897_s5 + $0x458] sm:$0xff] }
 0x3ba   : > { %15344 = vmatprep.subr.bf16.mxu1 %v15343_v16  ;;  %v15379_v16 = vpack.c.bf16 %v8779_v11, %v8777_v57  ;;  %v15383_v20 = vpack.c.bf16 %v8783_v43, %v8781_v21  ;;  %v8793_v61 = vld [vmem:[%s19897_s5 + $0x3e8] sm:$0xff]  ;;  %v8811_v56 = vld [vmem:[%s19897_s5 + $0x478] sm:$0xff] }
 0x3bb   : > { %v15395_v37 = vpack.c.bf16 %v8795_v62, %v8793_v61  ;;  %v8809_v54 = vld [vmem:[%s19897_s5 + $0x468] sm:$0xff]  ;;  %v8815_v19 = vld [vmem:[%s19897_s5 + $0x498] sm:$0xff] }
 0x3bc   : > { %v15411_v11 = vpack.c.bf16 %v8811_v56, %v8809_v54  ;;  %v8813_v17 = vld [vmem:[%s19897_s5 + $0x488] sm:$0xff]  ;;  %v8844_v56 = vld [vmem:[%s19897_s5 + $0x580] sm:$0xff] }
 0x3bd   : > { %8644 = vrot.lane.b32.xlu1 %v17934_v6, %s19928_s2  ;;  %15346 = vmatpush1.bf16.msra.mxu1 %v15345_v24  ;;  %v8780_v24 = vld [vmem:[%s19897_s5 + $0x380] sm:$0xff]  ;;  %v15415_v43 = vpack.c.bf16 %v8815_v19, %v8813_v17 }
 0x3be   : > { %15348 = vmatprep.subr.bf16.mxu1 %v15347_v25  ;;  %v8782_v25 = vld [vmem:[%s19897_s5 + $0x390] sm:$0xff]  ;;  %v8848_v19 = vld [vmem:[%s19897_s5 + $0x5a0] sm:$0xff] }
 0x3bf   : > { %v15385_v8 = vpack.c.bf16 %v8782_v25, %v8780_v24  ;;  %v8817_v24 = vld [vmem:[%s19897_s5 + $0x4a8] sm:$0xff]  ;;  %v8819_v25 = vld [vmem:[%s19897_s5 + $0x4b8] sm:$0xff] }
 0x3c0   : > { %v15419_v5 = vpack.c.bf16 %v8819_v25, %v8817_v24  ;;  %v8852_v25 = vld [vmem:[%s19897_s5 + $0x5c0] sm:$0xff] }
 0x3c1   : > { %15350 = vmatpush1.bf16.msra.mxu1 %v15349_v23  ;;  %v8784_v23 = vld [vmem:[%s19897_s5 + $0x3a0] sm:$0xff] }
 0x3c2   : > { %15352 = vmatprep.subr.bf16.mxu1 %v15351_v35  ;;  %v8786_v35 = vld [vmem:[%s19897_s5 + $0x3b0] sm:$0xff] }
 0x3c3   : > { %v15389_v51 = vpack.c.bf16 %v8786_v35, %v8784_v23  ;;  %v8821_v23 = vld [vmem:[%s19897_s5 + $0x4c8] sm:$0xff]  ;;  %v8823_v35 = vld [vmem:[%s19897_s5 + $0x4d8] sm:$0xff] }
 0x3c4   : > { %v15423_v50 = vpack.c.bf16 %v8823_v35, %v8821_v23  ;;  %v8856_v35 = vld [vmem:[%s19897_s5 + $0x5e0] sm:$0xff] }
 0x3c5   : > { %15354 = vmatpush1.bf16.msra.mxu1 %v15353_v55  ;;  %v8788_v55 = vld [vmem:[%s19897_s5 + $0x3c0] sm:$0xff] }
 0x3c6   : > { %15356 = vmatprep.subr.bf16.mxu1 %v15355_v59  ;;  %v8790_v59 = vld [vmem:[%s19897_s5 + $0x3d0] sm:$0xff] }
 0x3c7   : > { %v15393_v9 = vpack.c.bf16 %v8790_v59, %v8788_v55  ;;  %v8825_v55 = vld [vmem:[%s19897_s5 + $0x4e8] sm:$0xff]  ;;  %v8827_v59 = vld [vmem:[%s19897_s5 + $0x4f8] sm:$0xff] }
 0x3c8   : > { %v15427_v62 = vpack.c.bf16 %v8827_v59, %v8825_v55  ;;  %v8860_v59 = vld [vmem:[%s19897_s5 + $0x600] sm:$0xff] }
 0x3c9   : > { %15358 = vmatpush1.bf16.msra.mxu1 %v15357_v33  ;;  %v8792_v33 = vld [vmem:[%s19897_s5 + $0x3e0] sm:$0xff] }
 0x3ca   : > { %15360 = vmatprep.subr.bf16.mxu1 %v15359_v39  ;;  %v8794_v39 = vld [vmem:[%s19897_s5 + $0x3f0] sm:$0xff] }
 0x3cb   : > { %v15397_v18 = vpack.c.bf16 %v8794_v39, %v8792_v33  ;;  %v8829_v33 = vld [vmem:[%s19897_s5 + $0x508] sm:$0xff]  ;;  %v8831_v39 = vld [vmem:[%s19897_s5 + $0x518] sm:$0xff] }
 0x3cc   : > { %v15431_v29 = vpack.c.bf16 %v8831_v39, %v8829_v33 }
 0x3cd   : > { %15362 = vmatpush1.bf16.msra.mxu1 %v15361_v30 }
 0x3ce   : > { %15364 = vmatprep.subr.bf16.mxu1 %v15363_v40 }
 0x3d1   : > { %15366 = vmatpush1.bf16.msra.mxu1 %v15365_v28  ;;  %v8803_v28 = vld [vmem:[%s19897_s5 + $0x438] sm:$0xff] }
 0x3d2   : > { %15368 = vmatprep.subr.bf16.mxu1 %v15367_v4  ;;  %v15403_v45 = vpack.c.bf16 %v8803_v28, %v8801_v27  ;;  %v8832_v28 = vld [vmem:[%s19897_s5 + $0x520] sm:$0xff] }
 0x3d5   : > { %15370 = vmatpush1.bf16.msra.mxu1 %v15369_v38 }
 0x3d6   : > { %15372 = vmatprep.subr.bf16.mxu1 %v15371_v41  ;;  %v15401_v41 = vpack.c.bf16 %v8798_v26, %v8796_v60  ;;  %v8835_v60 = vld [vmem:[%s19897_s5 + $0x538] sm:$0xff] }
 0x3d9   : > { %15374 = vmatpush1.bf16.msra.mxu1 %v15373_v49 }
 0x3da   : > { %15376 = vmatprep.subr.bf16.mxu1 %v15375_v53  ;;  %v8804_v53 = vld [vmem:[%s19897_s5 + $0x440] sm:$0xff] }
 0x3dd   : > { %15378 = vmatpush1.bf16.msra.mxu1 %v15377_v12  ;;  %v8808_v12 = vld [vmem:[%s19897_s5 + $0x460] sm:$0xff] }
 0x3de   : > { %15380 = vmatprep.subr.bf16.mxu1 %v15379_v16  ;;  %v8810_v16 = vld [vmem:[%s19897_s5 + $0x470] sm:$0xff] }
 0x3df   : > { %v15413_v21 = vpack.c.bf16 %v8810_v16, %v8808_v12  ;;  %v8851_v12 = vld [vmem:[%s19897_s5 + $0x5b8] sm:$0xff] }
 0x3e1   : > { %15382 = vmatpush1.bf16.msra.mxu1 %v15381_v2  ;;  %v8812_v2 = vld [vmem:[%s19897_s5 + $0x480] sm:$0xff] }
 0x3e2   : > { %15384 = vmatprep.subr.bf16.mxu1 %v15383_v20  ;;  %v8814_v20 = vld [vmem:[%s19897_s5 + $0x490] sm:$0xff] }
 0x3e3   : > { %v15417_v1 = vpack.c.bf16 %v8814_v20, %v8812_v2  ;;  %v8855_v2 = vld [vmem:[%s19897_s5 + $0x5d8] sm:$0xff] }
 0x3e5   : > { %15386 = vmatpush1.bf16.msra.mxu1 %v15385_v8  ;;  %v8816_v8 = vld [vmem:[%s19897_s5 + $0x4a0] sm:$0xff] }
 0x3e6   : > { %15388 = vmatprep.subr.bf16.mxu1 %v15387_v14  ;;  %v8818_v14 = vld [vmem:[%s19897_s5 + $0x4b0] sm:$0xff] }
 0x3e7   : > { %v15421_v44 = vpack.c.bf16 %v8818_v14, %v8816_v8  ;;  %v8859_v8 = vld [vmem:[%s19897_s5 + $0x5f8] sm:$0xff] }
 0x3e9   : > { %15390 = vmatpush1.bf16.msra.mxu1 %v15389_v51  ;;  %v8820_v51 = vld [vmem:[%s19897_s5 + $0x4c0] sm:$0xff] }
 0x3ea   : > { %15392 = vmatprep.subr.bf16.mxu1 %v15391_v52  ;;  %v8822_v52 = vld [vmem:[%s19897_s5 + $0x4d0] sm:$0xff] }
 0x3eb   : > { %v15425_v61 = vpack.c.bf16 %v8822_v52, %v8820_v51  ;;  %v8863_v51 = vld [vmem:[%s19897_s5 + $0x618] sm:$0xff] }
 0x3ed   : > { %15394 = vmatpush1.bf16.msra.mxu1 %v15393_v9  ;;  %v8824_v9 = vld [vmem:[%s19897_s5 + $0x4e0] sm:$0xff] }
 0x3ee   : > { %15396 = vmatprep.subr.bf16.mxu1 %v15395_v37  ;;  %v8826_v37 = vld [vmem:[%s19897_s5 + $0x4f0] sm:$0xff] }
 0x3ef   : > { %v15429_v22 = vpack.c.bf16 %v8826_v37, %v8824_v9  ;;  %v8865_v9 = vld [vmem:[%s19897_s5 + $0x628] sm:$0xff]  ;;  %v8867_v37 = vld [vmem:[%s19897_s5 + $0x638] sm:$0xff] }
 0x3f1   : > { %15398 = vmatpush1.bf16.msra.mxu1 %v15397_v18  ;;  %v8828_v18 = vld [vmem:[%s19897_s5 + $0x500] sm:$0xff] }
 0x3f2   : > { %15400 = vmatprep.subr.bf16.mxu1 %v15399_v13  ;;  %v8830_v13 = vld [vmem:[%s19897_s5 + $0x510] sm:$0xff] }
 0x3f3   : > { %v15433_v26 = vpack.c.bf16 %v8830_v13, %v8828_v18  ;;  %v8868_v13 = vld [vmem:[%s19897_s5 + $0x640] sm:$0xff] }
 0x42a   : > { %v18110_v34 = vpop.permute.xlu0 %8646 }
 0x42b   : > { %v18088_v30 = vpop.permute.xlu1 %16336 }
 0x42c   : > { %v16339_v40 = vunpack.i.h.bf16 %v18088_v30  ;;  %v16338_v31 = vunpack.i.l.bf16 %v18088_v30  ;;  %v8864_v30 = vld [vmem:[%s19897_s5 + $0x620] sm:$0xff] }
 0x42e   : > { %v8650_v4 = vsel %vm2084_vm7, %v16329_v3, %v16338_v31  ;;  %v8651_v32 = vsel %vm2084_vm7, %v16338_v31, %v16339_v40  ;;  %v8800_v3 = vld [vmem:[%s19897_s5 + $0x420] sm:$0xff]  ;;  %v8833_v31 = vld [vmem:[%s19897_s5 + $0x528] sm:$0xff] }
 0x42f   : > { %v8663_v36 = vmax.f32 %v17852_v10, %v8650_v4  ;;  %v18113_v7 = vpop.permute.xlu1 %8644  ;;  %v8664_v38 = vmax.f32 %v17904_v58, %v8651_v32  ;;  %v8805_v58 = vld [vmem:[%s19897_s5 + $0x448] sm:$0xff]  ;;  %v15405_v48 = vpack.c.bf16 %v8802_v46, %v8800_v3  ;;  %v15435_v27 = vpack.c.bf16 %v8835_v60, %v8833_v31  ;;  %v8834_v4 = vld [vmem:[%s19897_s5 + $0x530] sm:$0xff]  ;;  %v8843_v46 = vld [vmem:[%s19897_s5 + $0x578] sm:$0xff] }
 0x430   : > { %v8653_v42 = vsel %vm2084_vm7, %v18113_v7, %v18110_v34  ;;  %v15407_v49 = vpack.c.bf16 %v8807_v47, %v8805_v58  ;;  %v8837_v32 = vld [vmem:[%s19897_s5 + $0x548] sm:$0xff]  ;;  %v8840_v47 = vld [vmem:[%s19897_s5 + $0x560] sm:$0xff]  ;;  %v8870_v31 = vld [vmem:[%s19897_s5 + $0x650] sm:$0xff] }
 0x431   : > { %v8666_v10 = vmax.f32 %v17934_v6, %v8653_v42  ;;  %9029 = vmatprep.mubr.f32.mxu1 %v8664_v38  ;;  %v8806_v6 = vld [vmem:[%s19897_s5 + $0x450] sm:$0xff]  ;;  %v15437_v38 = vpack.c.bf16 %v8834_v4, %v8832_v28  ;;  %v8836_v42 = vld [vmem:[%s19897_s5 + $0x540] sm:$0xff]  ;;  %v8841_v3 = vld [vmem:[%s19897_s5 + $0x568] sm:$0xff] }
 0x432   : > { %9030 = vmatmul.mubr.f32.vlgmr.msra.gmra.mrb[52].mxu1 %v8663_v36  ;;  %v15409_v57 = vpack.c.bf16 %v8806_v6, %v8804_v53  ;;  %v8839_v36 = vld [vmem:[%s19897_s5 + $0x558] sm:$0xff]  ;;  %v15443_v58 = vpack.c.bf16 %v8843_v46, %v8841_v3  ;;  %v8873_v60 = vld [vmem:[%s19897_s5 + $0x668] sm:$0xff]  ;;  %v8872_v4 = vld [vmem:[%s19897_s5 + $0x660] sm:$0xff] }
 0x433   : > { %15402 = vmatpush1.bf16.msra.mxu1 %v15401_v41  ;;  %9100 = vmatprep.mubr.f32.mxu1 %v8666_v10  ;;  %v15439_v41 = vpack.c.bf16 %v8839_v36, %v8837_v32  ;;  %v8847_v53 = vld [vmem:[%s19897_s5 + $0x598] sm:$0xff]  ;;  %v8874_v32 = vld [vmem:[%s19897_s5 + $0x670] sm:$0xff]  ;;  %v8877_v36 = vld [vmem:[%s19897_s5 + $0x688] sm:$0xff] }
 0x434   : > { %15404 = vmatprep.subr.bf16.mxu1 %v15403_v45  ;;  %v8838_v45 = vld [vmem:[%s19897_s5 + $0x550] sm:$0xff]  ;;  %v8881_v46 = vld [vmem:[%s19897_s5 + $0x6a8] sm:$0xff] }
 0x435   : > { %v15441_v10 = vpack.c.bf16 %v8838_v45, %v8836_v42  ;;  %v8876_v45 = vld [vmem:[%s19897_s5 + $0x680] sm:$0xff]  ;;  %v8878_v3 = vld [vmem:[%s19897_s5 + $0x690] sm:$0xff] }
 0x437   : > { %15406 = vmatpush1.bf16.msra.mxu1 %v15405_v48  ;;  %v8842_v48 = vld [vmem:[%s19897_s5 + $0x570] sm:$0xff] }
 0x438   : > { %15408 = vmatprep.subr.bf16.mxu1 %v15407_v49  ;;  %v8845_v49 = vld [vmem:[%s19897_s5 + $0x588] sm:$0xff]  ;;  %v15445_v6 = vpack.c.bf16 %v8842_v48, %v8840_v47  ;;  %v8880_v48 = vld [vmem:[%s19897_s5 + $0x6a0] sm:$0xff] }
 0x439   : > { %v15447_v54 = vpack.c.bf16 %v8847_v53, %v8845_v49  ;;  %v8882_v49 = vld [vmem:[%s19897_s5 + $0x6b0] sm:$0x7] }
 0x43a   : > { %v15486_v53 = vpack.c.bf16 %v8882_v49, %v8880_v48  ;;  %v13801_v48 = vld [vmem:[%s19895_s3 + $0xa8] sm:$0xff] }
 0x43b   : > { %15410 = vmatpush1.bf16.msra.mxu1 %v15409_v57  ;;  %v8846_v57 = vld [vmem:[%s19897_s5 + $0x590] sm:$0xff] }
 0x43c   : > { %15412 = vmatprep.subr.bf16.mxu1 %v15411_v11  ;;  %v8849_v11 = vld [vmem:[%s19897_s5 + $0x5a8] sm:$0xff]  ;;  %v15449_v16 = vpack.c.bf16 %v8846_v57, %v8844_v56 }
 0x43d   : > { %v15451_v17 = vpack.c.bf16 %v8851_v12, %v8849_v11  ;;  %v13762_v11 = vld [vmem:[%s19895_s3 + $0x10] sm:$0xff] }
 0x43f   : > { %15414 = vmatpush1.bf16.msra.mxu1 %v15413_v21  ;;  %v8850_v21 = vld [vmem:[%s19897_s5 + $0x5b0] sm:$0xff] }
 0x440   : > { %15416 = vmatprep.subr.bf16.mxu1 %v15415_v43  ;;  %v8853_v43 = vld [vmem:[%s19897_s5 + $0x5c8] sm:$0xff]  ;;  %v15453_v20 = vpack.c.bf16 %v8850_v21, %v8848_v19  ;;  %v9178_v21 = vld [vmem:[%s19895_s3] sm:$0xff] }
 0x441   : > { %v15455_v24 = vpack.c.bf16 %v8855_v2, %v8853_v43 }
 0x443   : > { %15418 = vmatpush1.bf16.msra.mxu1 %v15417_v1  ;;  %v8854_v1 = vld [vmem:[%s19897_s5 + $0x5d0] sm:$0xff] }
 0x444   : > { %15420 = vmatprep.subr.bf16.mxu1 %v15419_v5  ;;  %v8857_v5 = vld [vmem:[%s19897_s5 + $0x5e8] sm:$0xff]  ;;  %v15457_v14 = vpack.c.bf16 %v8854_v1, %v8852_v25  ;;  %v13768_v25 = vld [vmem:[%s19895_s3 + $0x20] sm:$0xff] }
 0x445   : > { %v15459_v23 = vpack.c.bf16 %v8859_v8, %v8857_v5  ;;  %v13769_v8 = vld [vmem:[%s19895_s3 + $0x28] sm:$0xff] }
 0x447   : > { %15422 = vmatpush1.bf16.msra.mxu1 %v15421_v44  ;;  %v8858_v44 = vld [vmem:[%s19897_s5 + $0x5f0] sm:$0xff] }
 0x448   : > { %15424 = vmatprep.subr.bf16.mxu1 %v15423_v50  ;;  %v8861_v50 = vld [vmem:[%s19897_s5 + $0x608] sm:$0xff]  ;;  %v15461_v52 = vpack.c.bf16 %v8858_v44, %v8856_v35 }
 0x449   : > { %v15463_v55 = vpack.c.bf16 %v8863_v51, %v8861_v50  ;;  %v13773_v50 = vld [vmem:[%s19895_s3 + $0x38] sm:$0xff] }
 0x44b   : > { %15426 = vmatpush1.bf16.msra.mxu1 %v15425_v61  ;;  %v8862_v61 = vld [vmem:[%s19897_s5 + $0x610] sm:$0xff] }
 0x44c   : > { %15428 = vmatprep.subr.bf16.mxu1 %v15427_v62  ;;  %v8652_v62 = vsel %vm2084_vm7, %v16339_v40, %v18113_v7  ;;  %v15465_v33 = vpack.c.bf16 %v8862_v61, %v8860_v59  ;;  %v8866_v40 = vld [vmem:[%s19897_s5 + $0x630] sm:$0xff]  ;;  %v8869_v7 = vld [vmem:[%s19897_s5 + $0x648] sm:$0xff] }
 0x44d   : > { %v8665_v39 = vmax.f32 %v17906_v63, %v8652_v62  ;;  %v15469_v63 = vpack.c.bf16 %v8866_v40, %v8864_v30  ;;  %v13777_v61 = vld [vmem:[%s19895_s3 + $0x48] sm:$0xff]  ;;  %v13784_v30 = vld [vmem:[%s19895_s3 + $0x60] sm:$0xff] }
 0x44f   : > { %15430 = vmatpush1.bf16.msra.mxu1 %v15429_v22  ;;  %v15467_v22 = vpack.c.bf16 %v8867_v37, %v8865_v9  ;;  %v13780_v9 = vld [vmem:[%s19895_s3 + $0x50] sm:$0xff] }
 0x450   : > { %15432 = vmatprep.subr.bf16.mxu1 %v15431_v29  ;;  %v8871_v29 = vld [vmem:[%s19897_s5 + $0x658] sm:$0xff] }
 0x451   : > { %v15471_v18 = vpack.c.bf16 %v8871_v29, %v8869_v7  ;;  %v13785_v29 = vld [vmem:[%s19895_s3 + $0x68] sm:$0xff] }
 0x453   : > { %15434 = vmatpush1.bf16.msra.mxu1 %v15433_v26  ;;  %v8875_v26 = vld [vmem:[%s19897_s5 + $0x678] sm:$0xff] }
 0x454   : > { %15436 = vmatprep.subr.bf16.mxu1 %v15435_v27  ;;  %v15473_v27 = vpack.c.bf16 %v8870_v31, %v8868_v13  ;;  %v15475_v28 = vpack.c.bf16 %v8875_v26, %v8873_v60  ;;  %v13789_v60 = vld [vmem:[%s19895_s3 + $0x78] sm:$0xff] }
 0x457   : > { %15438 = vmatpush1.bf16.msra.mxu1 %v15437_v38  ;;  %v8879_v38 = vld [vmem:[%s19897_s5 + $0x698] sm:$0xff] }
 0x458   : > { %15440 = vmatprep.subr.bf16.mxu1 %v15439_v41  ;;  %v15477_v41 = vpack.c.bf16 %v8874_v32, %v8872_v4  ;;  %v15479_v42 = vpack.c.bf16 %v8879_v38, %v8877_v36  ;;  %v13793_v32 = vld [vmem:[%s19895_s3 + $0x88] sm:$0xff]  ;;  %v11609_v36 = vld [vmem:[%s19896_s4] sm:$0xff] }
 0x45b   : > { %15442 = vmatpush1.bf16.msra.mxu1 %v15441_v10  ;;  %v8883_v10 = vld [vmem:[%s19897_s5 + $0x6b8] sm:$0x7] }
 0x45c   : > { %15444 = vmatprep.subr.bf16.mxu1 %v15443_v58  ;;  %v15481_v58 = vpack.c.bf16 %v8878_v3, %v8876_v45  ;;  %v15483_v47 = vpack.c.bf16 %v8883_v10, %v8881_v46  ;;  %v13797_v3 = vld [vmem:[%s19895_s3 + $0x98] sm:$0xff]  ;;  %v13800_v10 = vld [vmem:[%s19895_s3 + $0xa0] sm:$0xff] }
 0x45f   : > { %15446 = vmatpush1.bf16.msra.mxu1 %v15445_v6  ;;  %v8667_v6 = vmax.f32 %v17908_v15, %v18110_v34  ;;  %v11610_v15 = vld [vmem:[%s19896_s4 + $0x8] sm:$0xff] }
 0x460   : > { %15448 = vmatprep.subr.bf16.mxu1 %v15447_v54 }
 0x463   : > { %15450 = vmatpush1.bf16.msra.mxu1 %v15449_v16 }
 0x464   : > { %15452 = vmatprep.subr.bf16.mxu1 %v15451_v17  ;;  %v13763_v17 = vld [vmem:[%s19895_s3 + $0x18] sm:$0xff] }
 0x467   : > { %15454 = vmatpush1.bf16.msra.mxu1 %v15453_v20  ;;  %v9179_v20 = vld [vmem:[%s19895_s3 + $0x8] sm:$0xff] }
 0x468   : > { %15456 = vmatprep.subr.bf16.mxu1 %v15455_v24 }
 0x46b   : > { %15458 = vmatpush1.bf16.msra.mxu1 %v15457_v14 }
 0x46c   : > { %15460 = vmatprep.subr.bf16.mxu1 %v15459_v23  ;;  %v13772_v23 = vld [vmem:[%s19895_s3 + $0x30] sm:$0xff] }
 0x46f   : > { %15462 = vmatpush1.bf16.msra.mxu1 %v15461_v52  ;;  %v13776_v52 = vld [vmem:[%s19895_s3 + $0x40] sm:$0xff] }
 0x470   : > { %15464 = vmatprep.subr.bf16.mxu1 %v15463_v55 }
 0x472   : > { %9101 = vmatmul.mubr.f32.vlgmr.msra.gmra.mrb[52].mxu1 %v8665_v39  ;;  %v13781_v39 = vld [vmem:[%s19895_s3 + $0x58] sm:$0xff] }
 0x473   : > { %15466 = vmatpush1.bf16.msra.mxu1 %v15465_v33  ;;  %9171 = vmatprep.mubr.f32.mxu1 %v16413_v0 }
 0x474   : > { %15468 = vmatprep.subr.bf16.mxu1 %v15467_v22 }
 0x477   : > { %15470 = vmatpush1.bf16.msra.mxu1 %v15469_v63 }
 0x478   : > { %15472 = vmatprep.subr.bf16.mxu1 %v15471_v18  ;;  %v13788_v18 = vld [vmem:[%s19895_s3 + $0x70] sm:$0xff] }
 0x47b   : > { %15474 = vmatpush1.bf16.msra.mxu1 %v15473_v27  ;;  %v13792_v27 = vld [vmem:[%s19895_s3 + $0x80] sm:$0xff] }
 0x47c   : > { %15476 = vmatprep.subr.bf16.mxu1 %v15475_v28 }
 0x47f   : > { %15478 = vmatpush1.bf16.msra.mxu1 %v15477_v41  ;;  %v13796_v41 = vld [vmem:[%s19895_s3 + $0x90] sm:$0xff] }
 0x480   : > { %15480 = vmatprep.subr.bf16.mxu1 %v15479_v42 }
 0x483   : > { %15482 = vmatpush1.bf16.msra.mxu1 %v15481_v58 }
 0x484   : > { %15485 = vmatprep.subr.msk.bf16.mxu1 %vm15484_vm14, %v15483_v47 }
 0x487   : > { %15488 = vmatpush1.bf16.msk.msra.mxu1 %vm15484_vm14, %v15486_v53  ;;  %v13804_v53 = vld [vmem:[%s19895_s3 + $0xb0] sm:$0xff]  ;;  %vm10636_vm14 = vcmask 703488  }
 0x48a   : > { %13761 = vmatmul.mubr.msk.f32.vlgmr.msra.gmra.mrb[52].mxu1 %vm8884_vm15, %v8667_v6  ;;  %vm10832_vm15 = vcmask 687104  }
 0x48b   : > { %9263 = vmatprep.mubr.f32.mxu1 %v16413_v0 }
 0x55d   : > { %v18377_v54 = vpop.f32.mrb[52].mxu1 }
 0x55e   : > { %9185 = vrot.lane.b32.xlu1 %v18377_v54, %s19929_s22  ;;  %v18381_v56 = vpop.f32.mrb[53].mxu1 }
 0x55f   : > { %9187 = vrot.lane.b32.xlu0 %v18381_v56, %s19929_s22 }
 0x562   : > { %9362 = vrot.lane.b32.xlu1 %v18377_v54, %s19930_s27 }
 0x563   : > { %9364 = vrot.lane.b32.xlu0 %v18381_v56, %s19930_s27  ;;  %s16445_s27 = smov 86  }
 0x566   : > { %9459 = vrot.lane.b32.xlu1 %v18377_v54, %s19926_s24 }
 0x567   : > { %9461 = vrot.lane.b32.xlu0 %v18381_v56, %s19926_s24  ;;  %s16439_s24 = smov 111  }
 0x56a   : > { %9556 = vrot.lane.b32.xlu1 %v18377_v54, %s19931_s1 }
 0x56b   : > { %9558 = vrot.lane.b32.xlu0 %v18381_v56, %s19931_s1  ;;  %s16446_s1 = smov 85  }
 0x56e   : > { %9653 = vrot.lane.b32.xlu1 %v18377_v54, %s16436_s17 }
 0x56f   : > { %9655 = vrot.lane.b32.xlu0 %v18381_v56, %s16436_s17 }
 0x572   : > { %9751 = vrot.lane.b32.xlu1 %v18377_v54, %s16437_s30 }
 0x573   : > { %9753 = vrot.lane.b32.xlu0 %v18381_v56, %s16437_s30  ;;  %s16447_s30 = smov 84  }
 0x576   : > { %9849 = vrot.lane.b32.xlu1 %v18377_v54, %s16438_s16 }
 0x577   : > { %9851 = vrot.lane.b32.xlu0 %v18381_v56, %s16438_s16  ;;  %s16448_s16 = smov 83  }
 0x57a   : > { %9947 = vrot.lane.b32.xlu1 %v18377_v54, %s16439_s24 }
 0x57b   : > { %9949 = vrot.lane.b32.xlu0 %v18381_v56, %s16439_s24  ;;  %s16450_s24 = smov 72  }
 0x57e   : > { %10045 = vrot.lane.b32.xlu1 %v18377_v54, %s16440_s21 }
 0x57f   : > { %10047 = vrot.lane.b32.xlu0 %v18381_v56, %s16440_s21  ;;  %s16451_s21 = smov 71  }
 0x582   : > { %10143 = vrot.lane.b32.xlu1 %v18377_v54, %s16441_s23 }
 0x583   : > { %10145 = vrot.lane.b32.xlu0 %v18381_v56, %s16441_s23  ;;  %s16452_s23 = smov 70  }
 0x586   : > { %10241 = vrot.lane.b32.xlu1 %v18377_v54, %s16442_s15 }
 0x587   : > { %10243 = vrot.lane.b32.xlu0 %v18381_v56, %s16442_s15  ;;  %s16453_s15 = smov 69  }
 0x58a   : > { %10339 = vrot.lane.b32.xlu1 %v18377_v54, %s16443_s20 }
 0x58b   : > { %10341 = vrot.lane.b32.xlu0 %v18381_v56, %s16443_s20  ;;  %s16454_s20 = smov 68  }
 0x58e   : > { %10437 = vrot.lane.b32.xlu1 %v18377_v54, %s16444_s0 }
 0x58f   : > { %10439 = vrot.lane.b32.xlu0 %v18381_v56, %s16444_s0  ;;  %s431_s0 = sand.u32 1, %s16403_s26  }
 0x592   : > { %10535 = vrot.lane.b32.xlu1 %v18377_v54, %s19928_s2 }
 0x593   : > { %10537 = vrot.lane.b32.xlu0 %v18381_v56, %s19928_s2  ;;  %s16449_s2 = smov 82  }
 0x596   : > { %10632 = vrot.lane.b32.xlu1 %v18377_v54, %s16445_s27 }
 0x597   : > { %10634 = vrot.lane.b32.xlu0 %v18381_v56, %s16445_s27 }
 0x59a   : > { %10730 = vrot.lane.b32.xlu1 %v18377_v54, %s16446_s1 }
 0x59b   : > { %10732 = vrot.lane.b32.xlu0 %v18381_v56, %s16446_s1  ;;  %s14103_s1 = sshll.u32 %s16548_s29, 4  ;;  %s16456_s29 = smov [#allocation2]  }
 0x59e   : > { %10828 = vrot.lane.b32.xlu1 %v18377_v54, %s16447_s30 }
 0x59f   : > { %10830 = vrot.lane.b32.xlu0 %v18381_v56, %s16447_s30  ;;  %s432_s30 = scalar_lea.vmem [#allocation2], %s431_s0 }
 0x5a2   : > { %10926 = vrot.lane.b32.xlu1 %v18377_v54, %s16448_s16 }
 0x5a3   : > { %10928 = vrot.lane.b32.xlu0 %v18381_v56, %s16448_s16  ;;  %s13399_s16 = sshll.u32 %s432_s30, 4  ;;  %s19852_s16 = int_to_ptr.vmem [resolvable:$true] %s13399_s16 }
 0x5a6   : > { %11024 = vrot.lane.b32.xlu1 %v18377_v54, %s16449_s2 }
 0x5a7   : > { %11026 = vrot.lane.b32.xlu0 %v18381_v56, %s16449_s2 }
 0x5aa   : > { %11122 = vrot.lane.b32.xlu1 %v18377_v54, %s16450_s24 }
 0x5ab   : > { %11124 = vrot.lane.b32.xlu0 %v18381_v56, %s16450_s24 }
 0x5ae   : > { %11220 = vrot.lane.b32.xlu1 %v18377_v54, %s16451_s21 }
 0x5af   : > { %11222 = vrot.lane.b32.xlu0 %v18381_v56, %s16451_s21  ;;  %s13387_s21 = scalar_lea.sflag [#allocation3], %s431_s0 }
 0x5b2   : > { %11318 = vrot.lane.b32.xlu1 %v18377_v54, %s16452_s23 }
 0x5b3   : > { %11320 = vrot.lane.b32.xlu0 %v18381_v56, %s16452_s23  ;;  %s16349_s23 = scalar_lea.vmem %s19852_s16, 16 }
 0x5b4   : > { %p16350_p11 = scmp.ne.s32.totalorder %s19852_s16, %s16349_s23 }
 0x5b6   : > { %11416 = vrot.lane.b32.xlu1 %v18377_v54, %s16453_s15  ;;  %p16351_p12 = pnand %p16350_p11, %p16565_p5 }
 0x5b7   : > { %11418 = vrot.lane.b32.xlu0 %v18381_v56, %s16453_s15  ;;  %s16353_s15 = sshll.u32 %s16456_s29, 4  ;;  %s16354_s15 = int_to_ptr.vmem [resolvable:$false] %s16353_s15 }
 0x5b8   : > { %p16352_p13 = pneg %p16351_p12  ;;  %p16356_p0 = scmp.lt.s32.totalorder %s19852_s16, %s16354_s15 }
 0x5ba   : > { %11514 = vrot.lane.b32.xlu1 %v18377_v54, %s16454_s20 }
 0x5bb   : > { %11516 = vrot.lane.b32.xlu0 %v18381_v56, %s16454_s20  ;;  %s16355_s20 = scalar_lea.vmem %s16354_s15, 32 }
 0x5bc   : > { %p16357_p1 = scmp.lt.s32.totalorder %s16355_s20, %s16349_s23 }
 0x5be   : > { %11613 = vperm.xlu1 %16340, %v11609_v36   ;;  %p16358_p2 = por %p16357_p1, %p16356_p0 }
 0x5bf   : > { %11618 = vperm.xlu0 %16314, %v11610_v15  }
 0x5c0   : > { %p16359_p3 = pnand %p16358_p2, %p16352_p13 }
 0x5d0   : > { %v9186_v34 = vpop.permute.xlu1 %9185 }
 0x5d1   : > { %v9188_v57 = vpop.permute.xlu0 %9187 }
 0x5d2   : > { %v9189_v12 = vsel %vm466_vm0, %v9186_v34, %v9188_v57  ;;  %9199 = vmatprep.subr.mxu1 %v9188_v57  ;;  %v13808_v34 = vld [vmem:[%s19895_s3 + $0xc0] sm:$0xff] }
 0x5d3   : > { %9200 = vmatpush1.msra.mxu1 %v9189_v12  ;;  %v13809_v12 = vld [vmem:[%s19895_s3 + $0xc8] sm:$0xff] }
 0x5d4   : > { %13764 = vmatmul.mubr.msk.f32.vlgmr.msra.gmra.mrb[54].mxu1 %vm9192_vm1, %v13762_v11  ;;  %9282 = vmatprep.subr.mxu1 %v18381_v56  ;;  %v9363_v19 = vpop.permute.xlu1 %9362  ;;  %v13805_v56 = vld [vmem:[%s19895_s3 + $0xb8] sm:$0xff] }
 0x5d5   : > { %9283 = vmatpush1.msra.mxu1 %v18377_v54  ;;  %v9365_v16 = vpop.permute.xlu0 %9364  ;;  %9269 = vmatprep.mubr.f32.mxu1 %v16413_v0 }
 0x5d6   : > { %9375 = vmatprep.subr.mxu1 %v9365_v16  ;;  %v9366_v43 = vsel %vm1091_vm4, %v9363_v19, %v9365_v16  ;;  %vm9657_vm4 = vcmask 932864  }
 0x5d8   : > { %13765 = vmatmul.mubr.msk.f32.gmra.mrb[56].mxu1 %vm9192_vm1, %v13763_v17  ;;  %v9460_v24 = vpop.permute.xlu1 %9459  ;;  %v13812_v17 = vld [vmem:[%s19895_s3 + $0xd0] sm:$0xff] }
 0x5d9   : > { %9346 = vmatprep.mubr.f32.mxu1 %v16413_v0  ;;  %v9462_v2 = vpop.permute.xlu0 %9461 }
 0x5da   : > { %v9463_v1 = vsel %vm1421_vm5, %v9460_v24, %v9462_v2  ;;  %vm9755_vm5 = vcmask 924672  }
 0x5dc   : > { %13766 = vmatmul.mubr.msk.f32.vlgmr.msra.gmra.mrb[54].mxu1 %vm9192_vm1, %v9178_v21  ;;  %v9557_v14 = vpop.permute.xlu1 %9556 }
 0x5dd   : > { %9376 = vmatpush1.msra.mxu1 %v9366_v43  ;;  %9352 = vmatprep.mubr.f32.mxu1 %v16413_v0  ;;  %v9559_v5 = vpop.permute.xlu0 %9558  ;;  %v13813_v43 = vld [vmem:[%s19895_s3 + $0xd8] sm:$0xff] }
 0x5de   : > { %9472 = vmatprep.subr.mxu1 %v9462_v2  ;;  %v9560_v35 = vsel %vm1751_vm6, %v9557_v14, %v9559_v5  ;;  %vm9853_vm6 = vcmask 916480  }
 0x5e0   : > { %13767 = vmatmul.mubr.msk.f32.gmra.mrb[56].mxu1 %vm9192_vm1, %v9179_v20  ;;  %v9654_v51 = vpop.permute.xlu1 %9653  ;;  %v13816_v20 = vld [vmem:[%s19895_s3 + $0xe0] sm:$0xff] }
 0x5e1   : > { %9439 = vmatprep.mubr.f32.mxu1 %v16413_v0  ;;  %v9656_v44 = vpop.permute.xlu0 %9655 }
 0x5e2   : > { %v9658_v55 = vsel %vm9657_vm4, %v9654_v51, %v9656_v44 }
 0x5e4   : > { %13770 = vmatmul.mubr.msk.f32.vlgmr.msra.gmra.mrb[54].mxu1 %vm9192_vm1, %v13768_v25  ;;  %v9752_v62 = vpop.permute.xlu1 %9751 }
 0x5e5   : > { %9473 = vmatpush1.msra.mxu1 %v9463_v1  ;;  %9445 = vmatprep.mubr.f32.mxu1 %v16413_v0  ;;  %v9754_v59 = vpop.permute.xlu0 %9753  ;;  %v13817_v1 = vld [vmem:[%s19895_s3 + $0xe8] sm:$0xff] }
 0x5e6   : > { %9569 = vmatprep.subr.mxu1 %v9559_v5  ;;  %v9756_v37 = vsel %vm9755_vm5, %v9752_v62, %v9754_v59  ;;  %vm10930_vm5 = vcmask 678912  }
 0x5e8   : > { %13771 = vmatmul.mubr.msk.f32.gmra.mrb[56].mxu1 %vm9192_vm1, %v13769_v8  ;;  %v9850_v22 = vpop.permute.xlu1 %9849  ;;  %v13820_v8 = vld [vmem:[%s19895_s3 + $0xf0] sm:$0xff] }
 0x5e9   : > { %9536 = vmatprep.mubr.f32.mxu1 %v16413_v0  ;;  %v9852_v33 = vpop.permute.xlu0 %9851 }
 0x5ea   : > { %v9854_v40 = vsel %vm9853_vm6, %v9850_v22, %v9852_v33  ;;  %vm11028_vm6 = vcmask 670720  }
 0x5ec   : > { %13774 = vmatmul.mubr.msk.f32.vlgmr.msra.gmra.mrb[54].mxu1 %vm9192_vm1, %v13772_v23  ;;  %v9948_v63 = vpop.permute.xlu1 %9947 }
 0x5ed   : > { %9570 = vmatpush1.msra.mxu1 %v9560_v35  ;;  %9542 = vmatprep.mubr.f32.mxu1 %v16413_v0  ;;  %v9950_v7 = vpop.permute.xlu0 %9949  ;;  %v13821_v35 = vld [vmem:[%s19895_s3 + $0xf8] sm:$0xff] }
 0x5ee   : > { %9667 = vmatprep.subr.mxu1 %v9656_v44  ;;  %v9952_v13 = vsel %vm9951_vm8, %v9948_v63, %v9950_v7  ;;  %vm11126_vm8 = vcmask 588800  }
 0x5f0   : > { %13775 = vmatmul.mubr.msk.f32.gmra.mrb[56].mxu1 %vm9192_vm1, %v13773_v50  ;;  %v10046_v26 = vpop.permute.xlu1 %10045  ;;  %v13824_v50 = vld [vmem:[%s19895_s3 + $0x100] sm:$0xff] }
 0x5f1   : > { %9633 = vmatprep.mubr.f32.mxu1 %v16413_v0  ;;  %v10048_v31 = vpop.permute.xlu0 %10047 }
 0x5f2   : > { %v10050_v28 = vsel %vm10049_vm9, %v10046_v26, %v10048_v31  ;;  %vm11224_vm9 = vcmask 580608  }
 0x5f4   : > { %13778 = vmatmul.mubr.msk.f32.vlgmr.msra.gmra.mrb[54].mxu1 %vm9192_vm1, %v13776_v52  ;;  %v10144_v38 = vpop.permute.xlu1 %10143 }
 0x5f5   : > { %9668 = vmatpush1.msra.mxu1 %v9658_v55  ;;  %9639 = vmatprep.mubr.f32.mxu1 %v16413_v0  ;;  %v10146_v4 = vpop.permute.xlu0 %10145  ;;  %v13825_v55 = vld [vmem:[%s19895_s3 + $0x108] sm:$0xff] }
 0x5f6   : > { %9765 = vmatprep.subr.mxu1 %v9754_v59  ;;  %v10148_v42 = vsel %vm10147_vm10, %v10144_v38, %v10146_v4  ;;  %vm11322_vm10 = vcmask 572416  }
 0x5f8   : > { %13779 = vmatmul.mubr.msk.f32.gmra.mrb[56].mxu1 %vm9192_vm1, %v13777_v61  ;;  %v10242_v46 = vpop.permute.xlu1 %10241  ;;  %v13828_v61 = vld [vmem:[%s19895_s3 + $0x110] sm:$0xff] }
 0x5f9   : > { %9731 = vmatprep.mubr.f32.mxu1 %v16413_v0  ;;  %v10244_v45 = vpop.permute.xlu0 %10243 }
 0x5fa   : > { %v10246_v58 = vsel %vm10245_vm11, %v10242_v46, %v10244_v45  ;;  %vm11420_vm11 = vcmask 564224  }
 0x5fc   : > { %13782 = vmatmul.mubr.msk.f32.vlgmr.msra.gmra.mrb[54].mxu1 %vm9192_vm1, %v13780_v9  ;;  %v10340_v49 = vpop.permute.xlu1 %10339 }
 0x5fd   : > { %9766 = vmatpush1.msra.mxu1 %v9756_v37  ;;  %9737 = vmatprep.mubr.f32.mxu1 %v16413_v0  ;;  %v10342_v47 = vpop.permute.xlu0 %10341  ;;  %v13829_v37 = vld [vmem:[%s19895_s3 + $0x118] sm:$0xff] }
 0x5fe   : > { %9863 = vmatprep.subr.mxu1 %v9852_v33  ;;  %v10344_v6 = vsel %vm10343_vm12, %v10340_v49, %v10342_v47  ;;  %vm11518_vm12 = vcmask 556032   ;;  %v13853_v49 = vld [vmem:[%s19895_s3 + $0x178] sm:$0xff] }
 0x600   : > { %13783 = vmatmul.mubr.msk.f32.gmra.mrb[56].mxu1 %vm9192_vm1, %v13781_v39  ;;  %v10438_v15 = vpop.permute.xlu1 %10437  ;;  %v13832_v39 = vld [vmem:[%s19895_s3 + $0x120] sm:$0xff] }
 0x601   : > { %9829 = vmatprep.mubr.f32.mxu1 %v16413_v0  ;;  %v10440_v54 = vpop.permute.xlu0 %10439 }
 0x602   : > { %v10442_v57 = vsel %vm10441_vm13, %v10438_v15, %v10440_v54  ;;  %v11669_v15 = vld [vmem:[%s19898_s6] sm:$0xff] }
 0x604   : > { %13786 = vmatmul.mubr.msk.f32.vlgmr.msra.gmra.mrb[54].mxu1 %vm9192_vm1, %v13784_v30  ;;  %v10536_v16 = vpop.permute.xlu1 %10535 }
 0x605   : > { %9864 = vmatpush1.msra.mxu1 %v9854_v40  ;;  %9835 = vmatprep.mubr.f32.mxu1 %v16413_v0  ;;  %v10538_v11 = vpop.permute.xlu0 %10537  ;;  %v13833_v40 = vld [vmem:[%s19895_s3 + $0x128] sm:$0xff] }
 0x606   : > { %9961 = vmatprep.subr.mxu1 %v9950_v7  ;;  %v10539_v19 = vsel %vm2084_vm7, %v10536_v16, %v10538_v11  ;;  %vm10734_vm7 = vcmask 695296  }
 0x608   : > { %13787 = vmatmul.mubr.msk.f32.gmra.mrb[56].mxu1 %vm9192_vm1, %v13785_v29  ;;  %v10633_v2 = vpop.permute.xlu1 %10632  ;;  %v13836_v29 = vld [vmem:[%s19895_s3 + $0x130] sm:$0xff] }
 0x609   : > { %9927 = vmatprep.mubr.f32.mxu1 %v16413_v0  ;;  %v10635_v21 = vpop.permute.xlu0 %10634 }
 0x60a   : > { %v10637_v24 = vsel %vm10636_vm14, %v10633_v2, %v10635_v21  ;;  %v11674_v2 = vld [vmem:[%s19898_s6 + $0x28] sm:$0xff] }
 0x60c   : > { %13790 = vmatmul.mubr.msk.f32.vlgmr.msra.gmra.mrb[54].mxu1 %vm9192_vm1, %v13788_v18  ;;  %v10731_v5 = vpop.permute.xlu1 %10730 }
 0x60d   : > { %9962 = vmatpush1.msra.mxu1 %v9952_v13  ;;  %9933 = vmatprep.mubr.f32.mxu1 %v16413_v0  ;;  %v10733_v25 = vpop.permute.xlu0 %10732  ;;  %v13837_v13 = vld [vmem:[%s19895_s3 + $0x138] sm:$0xff] }
 0x60e   : > { %10059 = vmatprep.subr.mxu1 %v10048_v31  ;;  %v10735_v14 = vsel %vm10734_vm7, %v10731_v5, %v10733_v25 }
 0x610   : > { %13791 = vmatmul.mubr.msk.f32.gmra.mrb[56].mxu1 %vm9192_vm1, %v13789_v60  ;;  %v10829_v44 = vpop.permute.xlu1 %10828  ;;  %v13840_v60 = vld [vmem:[%s19895_s3 + $0x140] sm:$0xff] }
 0x611   : > { %10025 = vmatprep.mubr.f32.mxu1 %v16413_v0  ;;  %v10831_v23 = vpop.permute.xlu0 %10830 }
 0x612   : > { %v10833_v51 = vsel %vm10832_vm15, %v10829_v44, %v10831_v23  ;;  %v11676_v44 = vld [vmem:[%s19898_s6 + $0x38] sm:$0xff] }
 0x614   : > { %13794 = vmatmul.mubr.msk.f32.vlgmr.msra.gmra.mrb[54].mxu1 %vm9192_vm1, %v13792_v27  ;;  %v10927_v59 = vpop.permute.xlu1 %10926 }
 0x615   : > { %10060 = vmatpush1.msra.mxu1 %v10050_v28  ;;  %10031 = vmatprep.mubr.f32.mxu1 %v16413_v0  ;;  %v10929_v52 = vpop.permute.xlu0 %10928  ;;  %v13841_v28 = vld [vmem:[%s19895_s3 + $0x148] sm:$0xff] }
 0x616   : > { %10157 = vmatprep.subr.mxu1 %v10146_v4  ;;  %v10931_v62 = vsel %vm10930_vm5, %v10927_v59, %v10929_v52  ;;  %v11678_v59 = vld [vmem:[%s19898_s6 + $0x48] sm:$0xff] }
 0x618   : > { %13795 = vmatmul.mubr.msk.f32.gmra.mrb[56].mxu1 %vm9192_vm1, %v13793_v32  ;;  %v11025_v33 = vpop.permute.xlu1 %11024  ;;  %v13844_v32 = vld [vmem:[%s19895_s3 + $0x150] sm:$0xff] }
 0x619   : > { %10123 = vmatprep.mubr.f32.mxu1 %v16413_v0  ;;  %v11027_v9 = vpop.permute.xlu0 %11026 }
 0x61a   : > { %v11029_v22 = vsel %vm11028_vm6, %v11025_v33, %v11027_v9  ;;  %v11681_v33 = vld [vmem:[%s19898_s6 + $0x60] sm:$0xff] }
 0x61c   : > { %13798 = vmatmul.mubr.msk.f32.vlgmr.msra.gmra.mrb[54].mxu1 %vm9192_vm1, %v13796_v41  ;;  %v11123_v7 = vpop.permute.xlu1 %11122  ;;  %v13845_v41 = vld [vmem:[%s19895_s3 + $0x158] sm:$0xff] }
 0x61d   : > { %10158 = vmatpush1.msra.mxu1 %v10148_v42  ;;  %10129 = vmatprep.mubr.f32.mxu1 %v16413_v0  ;;  %v11125_v30 = vpop.permute.xlu0 %11124 }
 0x61e   : > { %10255 = vmatprep.subr.mxu1 %v10244_v45  ;;  %v11127_v63 = vsel %vm11126_vm8, %v11123_v7, %v11125_v30  ;;  %v13848_v45 = vld [vmem:[%s19895_s3 + $0x160] sm:$0xff] }
 0x620   : > { %13799 = vmatmul.mubr.msk.f32.gmra.mrb[56].mxu1 %vm9192_vm1, %v13797_v3  ;;  %v11221_v31 = vpop.permute.xlu1 %11220 }
 0x621   : > { %10221 = vmatprep.mubr.f32.mxu1 %v16413_v0  ;;  %v11223_v18 = vpop.permute.xlu0 %11222 }
 0x622   : > { %v11225_v26 = vsel %vm11224_vm9, %v11221_v31, %v11223_v18  ;;  %v16455_v31 = vmov 0.0|0.0  }
 0x623   : > { %15523 = vmatprep.subr.bf16.mxu0 %v16455_v31 }
 0x624   : > { %13802 = vmatmul.mubr.msk.f32.vlgmr.msra.gmra.mrb[54].mxu1 %vm9192_vm1, %v13800_v10  ;;  %v11319_v4 = vpop.permute.xlu1 %11318  ;;  %v13849_v10 = vld [vmem:[%s19895_s3 + $0x168] sm:$0xff] }
 0x625   : > { %10256 = vmatpush1.msra.mxu1 %v10246_v58  ;;  %10227 = vmatprep.mubr.f32.mxu1 %v16413_v0  ;;  %v11321_v27 = vpop.permute.xlu0 %11320 }
 0x626   : > { %10353 = vmatprep.subr.mxu1 %v10342_v47  ;;  %v11323_v36 = vsel %vm11322_vm10, %v11319_v4, %v11321_v27  ;;  %v13852_v47 = vld [vmem:[%s19895_s3 + $0x170] sm:$0xff] }
 0x628   : > { %13803 = vmatmul.mubr.msk.f32.gmra.mrb[56].mxu1 %vm9192_vm1, %v13801_v48  ;;  %v11417_v42 = vpop.permute.xlu1 %11416 }
 0x629   : > { %10319 = vmatprep.mubr.f32.mxu1 %v16413_v0  ;;  %v11419_v38 = vpop.permute.xlu0 %11418 }
 0x62a   : > { %v11421_v3 = vsel %vm11420_vm11, %v11417_v42, %v11419_v38 }
 0x62c   : > { %13806 = vmatmul.mubr.msk.f32.vlgmr.msra.gmra.mrb[54].mxu1 %vm9192_vm1, %v13804_v53  ;;  %v11515_v58 = vpop.permute.xlu1 %11514  ;;  %v13856_v53 = vld [vmem:[%s19895_s3 + $0x180] sm:$0xff] }
 0x62d   : > { %10354 = vmatpush1.msra.mxu1 %v10344_v6  ;;  %10325 = vmatprep.mubr.f32.mxu1 %v16413_v0  ;;  %v11517_v46 = vpop.permute.xlu0 %11516  ;;  %v13857_v6 = vld [vmem:[%s19895_s3 + $0x188] sm:$0xff] }
 0x62e   : > { %10451 = vmatprep.subr.mxu1 %v10440_v54  ;;  %v11519_v48 = vsel %vm11518_vm12, %v11515_v58, %v11517_v46 }
 0x630   : > { %13807 = vmatmul.mubr.msk.f32.gmra.mrb[56].mxu1 %vm9192_vm1, %v13805_v56 }
 0x631   : > { %10417 = vmatprep.mubr.f32.mxu1 %v16413_v0 }
 0x634   : > { %13810 = vmatmul.mubr.msk.f32.vlgmr.msra.gmra.mrb[54].mxu1 %vm9192_vm1, %v13808_v34  ;;  %v11670_v34 = vld [vmem:[%s19898_s6 + $0x8] sm:$0xff] }
 0x635   : > { %10452 = vmatpush1.msra.mxu1 %v10442_v57  ;;  %10423 = vmatprep.mubr.f32.mxu1 %v16413_v0  ;;  %v11671_v57 = vld [vmem:[%s19898_s6 + $0x10] sm:$0xff]  ;;  %v15489_v16 = vpack.c.bf16 %v11670_v34, %v11669_v15  ;;  %v11783_v15 = vld [vmem:[%s19899_s7 + $0x58] sm:$0xff] }
 0x636   : > { %10548 = vmatprep.subr.mxu1 %v10538_v11 }
 0x638   : > { %13811 = vmatmul.mubr.msk.f32.gmra.mrb[56].mxu1 %vm9192_vm1, %v13809_v12 }
 0x639   : > { %10515 = vmatprep.mubr.f32.mxu1 %v16413_v0 }
 0x63c   : > { %13814 = vmatmul.mubr.msk.f32.vlgmr.msra.gmra.mrb[54].mxu1 %vm9192_vm1, %v13812_v17  ;;  %v11672_v17 = vld [vmem:[%s19898_s6 + $0x18] sm:$0xff] }
 0x63d   : > { %10549 = vmatpush1.msra.mxu1 %v10539_v19  ;;  %10521 = vmatprep.mubr.f32.mxu1 %v16413_v0  ;;  %v11614_v54 = vpop.permute.xlu1 %11613 }
 0x63e   : > { %10646 = vmatprep.subr.mxu1 %v10635_v21  ;;  %v15493_v21 = vpack.c.bf16 %v11672_v17, %v11671_v57  ;;  %v11784_v57 = vld [vmem:[%s19899_s7 + $0x60] sm:$0xff]  ;;  %v11787_v17 = vld [vmem:[%s19899_s7 + $0x78] sm:$0xff] }
 0x640   : > { %13815 = vmatmul.mubr.msk.f32.gmra.mrb[56].mxu1 %vm9192_vm1, %v13813_v43  ;;  %v11673_v43 = vld [vmem:[%s19898_s6 + $0x20] sm:$0xff] }
 0x641   : > { %10612 = vmatprep.mubr.f32.mxu1 %v16413_v0 }
 0x644   : > { %13818 = vmatmul.mubr.msk.f32.vlgmr.msra.gmra.mrb[54].mxu1 %vm9192_vm1, %v13816_v20 }
 0x645   : > { %10647 = vmatpush1.msra.mxu1 %v10637_v24  ;;  %10618 = vmatprep.mubr.f32.mxu1 %v16413_v0  ;;  %v11619_v24 = vpop.permute.xlu0 %11618 }
 0x646   : > { %10744 = vmatprep.subr.mxu1 %v10733_v25 }
 0x648   : > { %13819 = vmatmul.mubr.msk.f32.gmra.mrb[56].mxu1 %vm9192_vm1, %v13817_v1 }
 0x649   : > { %10710 = vmatprep.mubr.f32.mxu1 %v16413_v0 }
 0x64c   : > { %13822 = vmatmul.mubr.msk.f32.vlgmr.msra.gmra.mrb[54].mxu1 %vm9192_vm1, %v13820_v8 }
 0x64d   : > { %10745 = vmatpush1.msra.mxu1 %v10735_v14  ;;  %10716 = vmatprep.mubr.f32.mxu1 %v16413_v0  ;;  %v15497_v14 = vpack.c.bf16 %v11674_v2, %v11673_v43 }
 0x64e   : > { %10842 = vmatprep.subr.mxu1 %v10831_v23 }
 0x650   : > { %13823 = vmatmul.mubr.msk.f32.gmra.mrb[56].mxu1 %vm9192_vm1, %v13821_v35  ;;  %v11675_v35 = vld [vmem:[%s19898_s6 + $0x30] sm:$0xff] }
 0x651   : > { %10808 = vmatprep.mubr.f32.mxu1 %v16413_v0 }
 0x654   : > { %13826 = vmatmul.mubr.msk.f32.vlgmr.msra.gmra.mrb[54].mxu1 %vm9192_vm1, %v13824_v50 }
 0x655   : > { %10843 = vmatpush1.msra.mxu1 %v10833_v51  ;;  %10814 = vmatprep.mubr.f32.mxu1 %v16413_v0 }
 0x656   : > { %10940 = vmatprep.subr.mxu1 %v10929_v52  ;;  %v15501_v52 = vpack.c.bf16 %v11676_v44, %v11675_v35  ;;  %v13865_v44 = vld [vmem:[%s19899_s7 + $0x90] sm:$0xff] }
 0x658   : > { %13827 = vmatmul.mubr.msk.f32.gmra.mrb[56].mxu1 %vm9192_vm1, %v13825_v55  ;;  %v11677_v55 = vld [vmem:[%s19898_s6 + $0x40] sm:$0xff] }
 0x659   : > { %10906 = vmatprep.mubr.f32.mxu1 %v16413_v0 }
 0x65c   : > { %13830 = vmatmul.mubr.msk.f32.vlgmr.msra.gmra.mrb[54].mxu1 %vm9192_vm1, %v13828_v61  ;;  %v15505_v61 = vpack.c.bf16 %v11678_v59, %v11677_v55  ;;  %v13867_v55 = vld [vmem:[%s19899_s7 + $0xa0] sm:$0xff]  ;;  %v13868_v59 = vld [vmem:[%s19899_s7 + $0xa8] sm:$0xff] }
 0x65d   : > { %10941 = vmatpush1.msra.mxu1 %v10931_v62  ;;  %10912 = vmatprep.mubr.f32.mxu1 %v16413_v0  ;;  %v11679_v62 = vld [vmem:[%s19898_s6 + $0x50] sm:$0xff] }
 0x65e   : > { %11038 = vmatprep.subr.mxu1 %v11027_v9  ;;  %v11680_v9 = vld [vmem:[%s19898_s6 + $0x58] sm:$0xff] }
 0x660   : > { %13831 = vmatmul.mubr.msk.f32.gmra.mrb[56].mxu1 %vm9192_vm1, %v13829_v37  ;;  %v15509_v37 = vpack.c.bf16 %v11680_v9, %v11679_v62  ;;  %v13869_v62 = vld [vmem:[%s19899_s7 + $0xb0] sm:$0xff]  ;;  %v13870_v9 = vld [vmem:[%s19899_s7 + $0xb8] sm:$0xff] }
 0x661   : > { %11004 = vmatprep.mubr.f32.mxu1 %v16413_v0 }
 0x664   : > { %13834 = vmatmul.mubr.msk.f32.vlgmr.msra.gmra.mrb[54].mxu1 %vm9192_vm1, %v13832_v39  ;;  %v11682_v39 = vld [vmem:[%s19898_s6 + $0x68] sm:$0xff] }
 0x665   : > { %11039 = vmatpush1.msra.mxu1 %v11029_v22  ;;  %11010 = vmatprep.mubr.f32.mxu1 %v16413_v0  ;;  %v15513_v22 = vpack.c.bf16 %v11682_v39, %v11681_v33  ;;  %v13871_v33 = vld [vmem:[%s19899_s7 + $0xc0] sm:$0xff]  ;;  %v13872_v39 = vld [vmem:[%s19899_s7 + $0xc8] sm:$0xff] }
 0x666   : > { %11136 = vmatprep.subr.mxu1 %v11125_v30  ;;  %v11683_v30 = vld [vmem:[%s19898_s6 + $0x70] sm:$0xff] }
 0x668   : > { %13835 = vmatmul.mubr.msk.f32.gmra.mrb[56].mxu1 %vm9192_vm1, %v13833_v40  ;;  %v11684_v40 = vld [vmem:[%s19898_s6 + $0x78] sm:$0x1] }
 0x669   : > { %11102 = vmatprep.mubr.f32.mxu1 %v16413_v0  ;;  %v15517_v7 = vpack.c.bf16 %v11684_v40, %v11683_v30  ;;  %v13873_v30 = vld [vmem:[%s19899_s7 + $0xd0] sm:$0xff]  ;;  %v13874_v40 = vld [vmem:[%s19899_s7 + $0xd8] sm:$0xff] }
 0x66c   : > { %13838 = vmatmul.mubr.msk.f32.vlgmr.msra.gmra.mrb[54].mxu1 %vm9192_vm1, %v13836_v29  ;;  %v11772_v29 = vld [vmem:[%s19899_s7] sm:$0xff] }
 0x66d   : > { %11137 = vmatpush1.msra.mxu1 %v11127_v63  ;;  %11108 = vmatprep.mubr.f32.mxu1 %v16413_v0  ;;  %v11773_v63 = vld [vmem:[%s19899_s7 + $0x8] sm:$0xff] }
 0x66e   : > { %11234 = vmatprep.subr.mxu1 %v11223_v18  ;;  %v11774_v18 = vld [vmem:[%s19899_s7 + $0x10] sm:$0xff] }
 0x670   : > { %13839 = vmatmul.mubr.msk.f32.gmra.mrb[56].mxu1 %vm9192_vm1, %v13837_v13 }
 0x671   : > { %11200 = vmatprep.mubr.f32.mxu1 %v16413_v0 }
 0x674   : > { %13842 = vmatmul.mubr.msk.f32.vlgmr.msra.gmra.mrb[54].mxu1 %vm9192_vm1, %v13840_v60  ;;  %v15524_v60 = vpack.c.bf16 %v11773_v63, %v11772_v29  ;;  %v13875_v29 = vld [vmem:[%s19899_s7 + $0xe0] sm:$0xff]  ;;  %v13876_v63 = vld [vmem:[%s19899_s7 + $0xe8] sm:$0xff] }
 0x675   : > { %11235 = vmatpush1.msra.mxu1 %v11225_v26  ;;  %11206 = vmatprep.mubr.f32.mxu1 %v16413_v0  ;;  %v11775_v26 = vld [vmem:[%s19899_s7 + $0x18] sm:$0xff] }
 0x676   : > { %11332 = vmatprep.subr.mxu1 %v11321_v27  ;;  %15525 = vmatpush3.bf16.msra.mxu0 %v15524_v60  ;;  %v13878_v60 = vld [vmem:[%s19899_s7 + $0xf8] sm:$0xff] }
 0x677   : > { %15526 = vmatprep.subr.bf16.mxu0 %v16455_v31 }
 0x678   : > { %13843 = vmatmul.mubr.msk.f32.gmra.mrb[56].mxu1 %vm9192_vm1, %v13841_v28 }
 0x679   : > { %11298 = vmatprep.mubr.f32.mxu1 %v16413_v0 }
 0x67c   : > { %13846 = vmatmul.mubr.msk.f32.vlgmr.msra.gmra.mrb[54].mxu1 %vm9192_vm1, %v13844_v32  ;;  %v15527_v32 = vpack.c.bf16 %v11775_v26, %v11774_v18  ;;  %v15566_v18 = vpack.c.bf16 %v13876_v63, %v13875_v29  ;;  %v13913_v29 = vld [vmem:[%s19899_s7 + $0x210] sm:$0xff]  ;;  %v13914_v63 = vld [vmem:[%s19899_s7 + $0x218] sm:$0xff] }
 0x67d   : > { %11333 = vmatpush1.msra.mxu1 %v11323_v36  ;;  %11304 = vmatprep.mubr.f32.mxu1 %v16413_v0 }
 0x67e   : > { %11430 = vmatprep.subr.mxu1 %v11419_v38  ;;  %v11776_v38 = vld [vmem:[%s19899_s7 + $0x20] sm:$0xff]  ;;  %15528 = vmatpush3.bf16.msra.mxu0 %v15527_v32 }
 0x67f   : > { %15529 = vmatprep.subr.bf16.mxu0 %v16455_v31 }
 0x680   : > { %13847 = vmatmul.mubr.msk.f32.gmra.mrb[56].mxu1 %vm9192_vm1, %v13845_v41  ;;  %v11777_v41 = vld [vmem:[%s19899_s7 + $0x28] sm:$0xff] }
 0x681   : > { %11396 = vmatprep.mubr.f32.mxu1 %v16413_v0 }
 0x684   : > { %13850 = vmatmul.mubr.msk.f32.vlgmr.msra.gmra.mrb[54].mxu1 %vm9192_vm1, %v13848_v45 }
 0x685   : > { %11431 = vmatpush1.msra.mxu1 %v11421_v3  ;;  %11402 = vmatprep.mubr.f32.mxu1 %v16413_v0 }
 0x686   : > { %11528 = vmatprep.subr.mxu1 %v11517_v46 }
 0x688   : > { %13851 = vmatmul.mubr.msk.f32.gmra.mrb[56].mxu1 %vm9192_vm1, %v13849_v10  ;;  %v15530_v10 = vpack.c.bf16 %v11777_v41, %v11776_v38  ;;  %v13882_v38 = vld [vmem:[%s19899_s7 + $0x118] sm:$0xff] }
 0x689   : > { %11494 = vmatprep.mubr.f32.mxu1 %v16413_v0 }
 0x68a   : > { %15531 = vmatpush3.bf16.msra.mxu0 %v15530_v10  ;;  %v13886_v10 = vld [vmem:[%s19899_s7 + $0x138] sm:$0xff] }
 0x68b   : > { %15532 = vmatprep.subr.bf16.mxu0 %v16455_v31 }
 0x68c   : > { %13854 = vmatmul.mubr.msk.f32.vlgmr.msra.gmra.mrb[54].mxu1 %vm9192_vm1, %v13852_v47  ;;  %v11778_v47 = vld [vmem:[%s19899_s7 + $0x30] sm:$0xff] }
 0x68d   : > { %11529 = vmatpush1.msra.mxu1 %v11519_v48  ;;  %11500 = vmatprep.mubr.f32.mxu1 %v16413_v0  ;;  %v11779_v48 = vld [vmem:[%s19899_s7 + $0x38] sm:$0xff] }
 0x68e   : > { %15490 = vmatprep.subr.bf16.mxu1 %v15489_v16 }
 0x690   : > { %13855 = vmatmul.mubr.msk.f32.gmra.mrb[56].mxu1 %vm9192_vm1, %v13853_v49  ;;  %v15533_v49 = vpack.c.bf16 %v11779_v48, %v11778_v47  ;;  %v13887_v47 = vld [vmem:[%s19899_s7 + $0x140] sm:$0xff]  ;;  %v13888_v48 = vld [vmem:[%s19899_s7 + $0x148] sm:$0xff] }
 0x691   : > { %11592 = vmatprep.mubr.f32.mxu1 %v16413_v0 }
 0x692   : > { %15534 = vmatpush3.bf16.msra.mxu0 %v15533_v49  ;;  %v15584_v49 = vpack.c.bf16 %v13888_v48, %v13887_v47  ;;  %v13926_v47 = vld [vmem:[%s19899_s7 + $0x278] sm:$0xff] }
 0x693   : > { %15535 = vmatprep.subr.bf16.mxu0 %v16455_v31 }
 0x694   : > { %13858 = vmatmul.mubr.msk.f32.vlgmr.msra.gmra.mrb[54].mxu1 %vm9192_vm1, %v13856_v53  ;;  %v11780_v53 = vld [vmem:[%s19899_s7 + $0x40] sm:$0xff] }
 0x695   : > { %11598 = vmatprep.mubr.f32.mxu1 %v16413_v0  ;;  %15492 = vmatpush3.bf16.msra.mxu1 %v15489_v16  ;;  %v11786_v16 = vld [vmem:[%s19899_s7 + $0x70] sm:$0xff] }
 0x696   : > { %15494 = vmatprep.subr.bf16.mxu1 %v15493_v21 }
 0x698   : > { %13859 = vmatmul.mubr.msk.f32.gmra.mrb[56].mxu1 %vm9192_vm1, %v13857_v6  ;;  %vm11692_vm1 = vcmask 1040384   ;;  %v11781_v6 = vld [vmem:[%s19899_s7 + $0x48] sm:$0xff] }
 0x699   : > { %15496 = vmatpush3.bf16.msra.mxu1 %v15493_v21  ;;  %vm15518_vm13 = vmpackc.low %vm11692_vm1, %vm16435_vm2 }
 0x69a   : > { %15498 = vmatprep.subr.bf16.mxu1 %v15497_v14 }
 0x69d   : > { %15500 = vmatpush3.bf16.msra.mxu1 %v15497_v14  ;;  %v13864_v14 = vld [vmem:[%s19899_s7 + $0x88] sm:$0xff] }
 0x69e   : > { %15502 = vmatprep.subr.bf16.mxu1 %v15501_v52 }
 0x6a1   : > { %15504 = vmatpush3.bf16.msra.mxu1 %v15501_v52 }
 0x6a2   : > { %15506 = vmatprep.subr.bf16.mxu1 %v15505_v61 }
 0x6a5   : > { %15508 = vmatpush3.bf16.msra.mxu1 %v15505_v61  ;;  %v15554_v61 = vpack.c.bf16 %v13868_v59, %v13867_v55  ;;  %v13906_v55 = vld [vmem:[%s19899_s7 + $0x1d8] sm:$0xff] }
 0x6a6   : > { %15510 = vmatprep.subr.bf16.mxu1 %v15509_v37 }
 0x6a9   : > { %15512 = vmatpush3.bf16.msra.mxu1 %v15509_v37  ;;  %v15557_v37 = vpack.c.bf16 %v13870_v9, %v13869_v62  ;;  %v13908_v62 = vld [vmem:[%s19899_s7 + $0x1e8] sm:$0xff] }
 0x6aa   : > { %15514 = vmatprep.subr.bf16.mxu1 %v15513_v22 }
 0x6ad   : > { %15516 = vmatpush3.bf16.msra.mxu1 %v15513_v22  ;;  %v15560_v22 = vpack.c.bf16 %v13872_v39, %v13871_v33  ;;  %v13910_v33 = vld [vmem:[%s19899_s7 + $0x1f8] sm:$0xff] }
 0x6ae   : > { %15519 = vmatprep.subr.msk.bf16.mxu1 %vm15518_vm13, %v15517_v7 }
 0x6b1   : > { %15522 = vmatpush3.bf16.msk.msra.mxu1 %vm15518_vm13, %v15517_v7  ;;  %v15563_v7 = vpack.c.bf16 %v13874_v40, %v13873_v30  ;;  %v13912_v30 = vld [vmem:[%s19899_s7 + $0x208] sm:$0xff] }
 0x6b2   : > { %15907 = vmatprep.subr.bf16.mxu1 %v16455_v31 }
 0x767   : > { %v11594_v56 = vpop.f32.mrb[54].mxu1 }
 0x768   : > { %v18713_v11 = vadd.f32 %v11614_v54, %v11594_v56  ;;  %v11596_v12 = vpop.f32.mrb[55].mxu1  ;;  %v11782_v56 = vld [vmem:[%s19899_s7 + $0x50] sm:$0xff] }
 0x769   : > { %v18718_v19 = vadd.f32 %v11614_v54, %v11596_v12  ;;  %v15536_v54 = vpack.c.bf16 %v11781_v6, %v11780_v53  ;;  %v15539_v34 = vpack.c.bf16 %v11783_v15, %v11782_v56  ;;  %v13889_v53 = vld [vmem:[%s19899_s7 + $0x150] sm:$0xff]  ;;  %v13890_v6 = vld [vmem:[%s19899_s7 + $0x158] sm:$0xff]  ;;  %v13891_v56 = vld [vmem:[%s19899_s7 + $0x160] sm:$0xff] }
 0x76a   : > { %v11625_v20 = vmax.f32 %v18713_v11, 0.0  ;;  %v11785_v11 = vld [vmem:[%s19899_s7 + $0x68] sm:$0xff] }
 0x76b   : > { %v11626_v25 = vmax.f32 %v18718_v19, 0.0  ;;  %v11600_v1 = vpop.f32.mrb[56].mxu1  ;;  %15537 = vmatpush3.bf16.msra.mxu0 %v15536_v54  ;;  %v15542_v12 = vpack.c.bf16 %v11785_v11, %v11784_v57  ;;  %v15545_v19 = vpack.c.bf16 %v11787_v17, %v11786_v16  ;;  %v15587_v54 = vpack.c.bf16 %v13890_v6, %v13889_v53  ;;  %v13892_v15 = vld [vmem:[%s19899_s7 + $0x168] sm:$0xff]  ;;  %v13893_v57 = vld [vmem:[%s19899_s7 + $0x170] sm:$0xff]  ;;  %v13894_v11 = vld [vmem:[%s19899_s7 + $0x178] sm:$0xff] }
 0x76c   : > { %v18728_v5 = vadd.f32 %v11619_v24, %v11600_v1  ;;  %11633 = vrot.lane.b32.xlu1 %v11625_v20, %s19929_s22  ;;  %v11602_v8 = vpop.f32.mrb[57].mxu1  ;;  %15538 = vmatprep.subr.bf16.mxu0 %v16455_v31  ;;  %v13895_v16 = vld [vmem:[%s19899_s7 + $0x180] sm:$0xff]  ;;  %v13896_v17 = vld [vmem:[%s19899_s7 + $0x188] sm:$0xff] }
 0x76d   : > { %v11624_v23 = vadd.f32 %v11619_v24, %v11602_v8  ;;  %11635 = vrot.lane.b32.xlu0 %v11626_v25, %s19929_s22  ;;  %v13863_v8 = vld [vmem:[%s19899_s7 + $0x80] sm:$0xff]  ;;  %v13928_v53 = vld [vmem:[%s19899_s7 + $0x288] sm:$0xff] }
 0x76e   : > { %v11627_v50 = vmax.f32 %v18728_v5, 0.0 }
 0x76f   : > { %v11628_v51 = vmax.f32 %v11624_v23, 0.0  ;;  %15540 = vmatpush3.bf16.msra.mxu0 %v15539_v34  ;;  %v15548_v23 = vpack.c.bf16 %v13864_v14, %v13863_v8  ;;  %v15590_v34 = vpack.c.bf16 %v13892_v15, %v13891_v56  ;;  %v13902_v8 = vld [vmem:[%s19899_s7 + $0x1b8] sm:$0xff]  ;;  %v13929_v56 = vld [vmem:[%s19899_s7 + $0x290] sm:$0xff] }
 0x770   : > { %11637 = vrot.lane.b32.xlu1 %v11627_v50, %s19929_s22  ;;  %15541 = vmatprep.subr.bf16.mxu0 %v16455_v31  ;;  %v13930_v15 = vld [vmem:[%s19899_s7 + $0x298] sm:$0xff] }
 0x771   : > { %11639 = vrot.lane.b32.xlu0 %v11628_v51, %s19929_s22  ;;  %s19850_s22 = scalar_lea.hbm %s19905_s13, %s14103_s1 }
 0x773   : > { %15543 = vmatpush3.bf16.msra.mxu0 %v15542_v12  ;;  %v15593_v12 = vpack.c.bf16 %v13894_v11, %v13893_v57  ;;  %v13931_v57 = vld [vmem:[%s19899_s7 + $0x2a0] sm:$0xff]  ;;  %v13932_v11 = vld [vmem:[%s19899_s7 + $0x2a8] sm:$0xff] }
 0x774   : > { %15544 = vmatprep.subr.bf16.mxu0 %v16455_v31 }
 0x777   : > { %15546 = vmatpush3.bf16.msra.mxu0 %v15545_v19  ;;  %v15596_v19 = vpack.c.bf16 %v13896_v17, %v13895_v16  ;;  %v13933_v16 = vld [vmem:[%s19899_s7 + $0x2b0] sm:$0xff]  ;;  %v13934_v17 = vld [vmem:[%s19899_s7 + $0x2b8] sm:$0xff] }
 0x778   : > { %15547 = vmatprep.subr.bf16.mxu0 %v16455_v31 }
 0x7de   : > { %v11634_v13 = vpop.permute.xlu1 %11633 }
 0x7df   : > { %v11636_v27 = vpop.permute.xlu0 %11635 }
 0x7e0   : > { %v11641_v28 = vsel %vm466_vm0, %v11634_v13, %v11636_v27  ;;  %v11648_v4 = vmax.f32 %v11626_v25, %v11636_v27  ;;  %v13877_v13 = vld [vmem:[%s19899_s7 + $0xf0] sm:$0xff]  ;;  %v13879_v27 = vld [vmem:[%s19899_s7 + $0x100] sm:$0xff] }
 0x7e1   : > { %v11647_v36 = vmax.f32 %v11625_v20, %v11641_v28  ;;  %v15569_v26 = vpack.c.bf16 %v13878_v60, %v13877_v13  ;;  %v13880_v28 = vld [vmem:[%s19899_s7 + $0x108] sm:$0xff]  ;;  %v13915_v13 = vld [vmem:[%s19899_s7 + $0x220] sm:$0xff] }
 0x7e2   : > { %v11638_v42 = vpop.permute.xlu1 %11637  ;;  %11657 = vrot.lane.b32.xlu0 %v11648_v4, %s16436_s17  ;;  %v15572_v4 = vpack.c.bf16 %v13880_v28, %v13879_v27  ;;  %v13916_v60 = vld [vmem:[%s19899_s7 + $0x228] sm:$0xff]  ;;  %v13917_v27 = vld [vmem:[%s19899_s7 + $0x230] sm:$0xff]  ;;  %v13918_v28 = vld [vmem:[%s19899_s7 + $0x238] sm:$0xff] }
 0x7e3   : > { %11655 = vrot.lane.b32.xlu1 %v11647_v36, %s16436_s17  ;;  %v11640_v45 = vpop.permute.xlu0 %11639 }
 0x7e4   : > { %v11642_v3 = vsel %vm466_vm0, %v11638_v42, %v11640_v45  ;;  %v11650_v46 = vmax.f32 %v11628_v51, %v11640_v45  ;;  %vm11685_vm0 = vcmask 990208   ;;  %v13883_v42 = vld [vmem:[%s19899_s7 + $0x120] sm:$0xff]  ;;  %v13884_v45 = vld [vmem:[%s19899_s7 + $0x128] sm:$0xff] }
 0x7e5   : > { %v11649_v58 = vmax.f32 %v11627_v50, %v11642_v3  ;;  %v13866_v50 = vld [vmem:[%s19899_s7 + $0x98] sm:$0xff]  ;;  %v15578_v3 = vpack.c.bf16 %v13884_v45, %v13883_v42 }
 0x7e6   : > { %11661 = vrot.lane.b32.xlu0 %v11650_v46, %s16436_s17  ;;  %v15551_v52 = vpack.c.bf16 %v13866_v50, %v13865_v44  ;;  %v13885_v46 = vld [vmem:[%s19899_s7 + $0x130] sm:$0xff]  ;;  %v13904_v44 = vld [vmem:[%s19899_s7 + $0x1c8] sm:$0xff]  ;;  %v13922_v42 = vld [vmem:[%s19899_s7 + $0x258] sm:$0xff] }
 0x7e7   : > { %11659 = vrot.lane.b32.xlu1 %v11649_v58, %s16436_s17 }
 0x854   : > { %v11658_v21 = vpop.permute.xlu0 %11657 }
 0x855   : > { %v11656_v43 = vpop.permute.xlu1 %11655 }
 0x856   : > { %v11663_v2 = vsel %vm9657_vm4, %v11656_v43, %v11658_v21  ;;  %v13897_v43 = vld [vmem:[%s19899_s7 + $0x190] sm:$0xff] }
 0x857   : > { %v11667_v20 = vmax.f32 %v11647_v36, %v11663_v2  ;;  %v13881_v36 = vld [vmem:[%s19899_s7 + $0x110] sm:$0xff]  ;;  %v13898_v2 = vld [vmem:[%s19899_s7 + $0x198] sm:$0xff] }
 0x858   : > { %v11662_v24 = vpop.permute.xlu0 %11661  ;;  %v15575_v41 = vpack.c.bf16 %v13882_v38, %v13881_v36  ;;  %v13920_v36 = vld [vmem:[%s19899_s7 + $0x248] sm:$0xff] }
 0x859   : > { %v11660_v25 = vpop.permute.xlu1 %11659  ;;  %14638 = vmatprep.mubr.msk.f32.mxu1 %vm11685_vm0, %v11667_v20  ;;  %v15599_v20 = vpack.c.bf16 %v13898_v2, %v13897_v43  ;;  %v13936_v43 = vld [vmem:[%s19899_s7 + $0x2c8] sm:$0xff] }
 0x85a   : > { %v11664_v1 = vsel %vm9657_vm4, %v11660_v25, %v11662_v24  ;;  %v13899_v24 = vld [vmem:[%s19899_s7 + $0x1a0] sm:$0xff]  ;;  %v13900_v25 = vld [vmem:[%s19899_s7 + $0x1a8] sm:$0xff] }
 0x85b   : > { %v11668_v5 = vmax.f32 %v11649_v58, %v11664_v1  ;;  %v15581_v58 = vpack.c.bf16 %v13886_v10, %v13885_v46  ;;  %v15602_v1 = vpack.c.bf16 %v13900_v25, %v13899_v24  ;;  %v13924_v46 = vld [vmem:[%s19899_s7 + $0x268] sm:$0xff]  ;;  %v13938_v24 = vld [vmem:[%s19899_s7 + $0x2d8] sm:$0xff] }
 0x85d   : > { %14639 = vmatmul.mubr.msk.f32.vlgmr.msra.gmra.mrb[58].mxu1 %vm11685_vm0, %v11668_v5  ;;  %v13901_v5 = vld [vmem:[%s19899_s7 + $0x1b0] sm:$0xff] }
 0x85e   : > { %15233 = vmatprep.mubr.msk.f32.mxu1 %vm16423_vm3, %v16413_v0  ;;  %v15605_v14 = vpack.c.bf16 %v13902_v8, %v13901_v5  ;;  %v13940_v5 = vld [vmem:[%s19899_s7 + $0x2e8] sm:$0xff] }
 0x930   : > { %v18840_v35 = vpop.f32.mrb[58].mxu1 }
 0x931   : > { %v18848_v51 = vpop.f32.mrb[59].mxu1 }
 0x932   : > { %14674 = vmatmul.mubr.f32.vlgmr.msra.gmra.mrb[4].mxu0 %v18848_v51  ;;  %v11877_v32 = vrot.slane %v18848_v51, 1  ;;  %v11967_v21 = vrot.slane %v18848_v51, 2 }
 0x933   : > { %15549 = vmatpush3.bf16.msra.mxu0 %v15548_v23  ;;  %14708 = vmatprep.mubr.msk.f32.mxu0 %vm16423_vm3, %v16413_v0  ;;  %v13903_v23 = vld [vmem:[%s19899_s7 + $0x1c0] sm:$0xff] }
 0x934   : > { %15550 = vmatprep.subr.bf16.mxu0 %v16455_v31  ;;  %v15608_v50 = vpack.c.bf16 %v13904_v44, %v13903_v23  ;;  %v13942_v23 = vld [vmem:[%s19899_s7 + $0x2f8] sm:$0xff] }
 0x937   : > { %15552 = vmatpush3.bf16.msra.mxu0 %v15551_v52  ;;  %v13905_v52 = vld [vmem:[%s19899_s7 + $0x1d0] sm:$0xff] }
 0x938   : > { %15553 = vmatprep.subr.bf16.mxu0 %v16455_v31  ;;  %v15611_v59 = vpack.c.bf16 %v13906_v55, %v13905_v52  ;;  %v13944_v52 = vld [vmem:[%s19899_s7 + $0x308] sm:$0xff] }
 0x93b   : > { %15555 = vmatpush3.bf16.msra.mxu0 %v15554_v61  ;;  %v13907_v61 = vld [vmem:[%s19899_s7 + $0x1e0] sm:$0xff] }
 0x93c   : > { %15556 = vmatprep.subr.bf16.mxu0 %v16455_v31  ;;  %v15614_v9 = vpack.c.bf16 %v13908_v62, %v13907_v61  ;;  %v13945_v61 = vld [vmem:[%s19899_s7 + $0x310] sm:$0xff]  ;;  %v13946_v62 = vld [vmem:[%s19899_s7 + $0x318] sm:$0xff] }
 0x93f   : > { %15558 = vmatpush3.bf16.msra.mxu0 %v15557_v37  ;;  %v13909_v37 = vld [vmem:[%s19899_s7 + $0x1f0] sm:$0xff] }
 0x940   : > { %15559 = vmatprep.subr.bf16.mxu0 %v16455_v31  ;;  %v15617_v39 = vpack.c.bf16 %v13910_v33, %v13909_v37  ;;  %v13947_v37 = vld [vmem:[%s19899_s7 + $0x320] sm:$0xff]  ;;  %v13948_v33 = vld [vmem:[%s19899_s7 + $0x328] sm:$0xff] }
 0x943   : > { %15561 = vmatpush3.bf16.msra.mxu0 %v15560_v22  ;;  %v13911_v22 = vld [vmem:[%s19899_s7 + $0x200] sm:$0xff] }
 0x944   : > { %15562 = vmatprep.subr.bf16.mxu0 %v16455_v31  ;;  %v15620_v40 = vpack.c.bf16 %v13912_v30, %v13911_v22  ;;  %v13949_v22 = vld [vmem:[%s19899_s7 + $0x330] sm:$0xff]  ;;  %v13950_v30 = vld [vmem:[%s19899_s7 + $0x338] sm:$0xff] }
 0x947   : > { %15564 = vmatpush3.bf16.msra.mxu0 %v15563_v7  ;;  %v12057_v7 = vrot.slane %v18848_v51, 3 }
 0x948   : > { %15565 = vmatprep.subr.bf16.mxu0 %v16455_v31 }
 0x94b   : > { %15567 = vmatpush3.bf16.msra.mxu0 %v15566_v18  ;;  %v15623_v18 = vpack.c.bf16 %v13914_v63, %v13913_v29  ;;  %v13952_v29 = vld [vmem:[%s19899_s7 + $0x348] sm:$0xff] }
 0x94c   : > { %15568 = vmatprep.subr.bf16.mxu0 %v16455_v31 }
 0x94f   : > { %15570 = vmatpush3.bf16.msra.mxu0 %v15569_v26  ;;  %v15626_v26 = vpack.c.bf16 %v13916_v60, %v13915_v13  ;;  %v13954_v13 = vld [vmem:[%s19899_s7 + $0x358] sm:$0xff] }
 0x950   : > { %15571 = vmatprep.subr.bf16.mxu0 %v16455_v31 }
 0x952   : > { %14709 = vmatmul.mubr.f32.vlgmr.msra.gmra.mrb[4].mxu0 %v11877_v32  ;;  %v13919_v32 = vld [vmem:[%s19899_s7 + $0x240] sm:$0xff] }
 0x953   : > { %15573 = vmatpush3.bf16.msra.mxu0 %v15572_v4  ;;  %14743 = vmatprep.mubr.msk.f32.mxu0 %vm16423_vm3, %v16413_v0  ;;  %v15629_v4 = vpack.c.bf16 %v13918_v28, %v13917_v27  ;;  %v15632_v38 = vpack.c.bf16 %v13920_v36, %v13919_v32  ;;  %v13956_v27 = vld [vmem:[%s19899_s7 + $0x368] sm:$0xff]  ;;  %v13958_v32 = vld [vmem:[%s19899_s7 + $0x378] sm:$0xff] }
 0x954   : > { %15574 = vmatprep.subr.bf16.mxu0 %v16455_v31 }
 0x957   : > { %15576 = vmatpush3.bf16.msra.mxu0 %v15575_v41  ;;  %v13921_v41 = vld [vmem:[%s19899_s7 + $0x250] sm:$0xff] }
 0x958   : > { %15577 = vmatprep.subr.bf16.mxu0 %v16455_v31  ;;  %v15635_v45 = vpack.c.bf16 %v13922_v42, %v13921_v41  ;;  %v13960_v41 = vld [vmem:[%s19899_s7 + $0x388] sm:$0xff] }
 0x95b   : > { %15579 = vmatpush3.bf16.msra.mxu0 %v15578_v3  ;;  %v13923_v3 = vld [vmem:[%s19899_s7 + $0x260] sm:$0xff] }
 0x95c   : > { %15580 = vmatprep.subr.bf16.mxu0 %v16455_v31  ;;  %v15638_v10 = vpack.c.bf16 %v13924_v46, %v13923_v3  ;;  %v13961_v3 = vld [vmem:[%s19899_s7 + $0x390] sm:$0xff]  ;;  %v13962_v46 = vld [vmem:[%s19899_s7 + $0x398] sm:$0xff] }
 0x95f   : > { %15582 = vmatpush3.bf16.msra.mxu0 %v15581_v58  ;;  %v13925_v58 = vld [vmem:[%s19899_s7 + $0x270] sm:$0xff] }
 0x960   : > { %15583 = vmatprep.subr.bf16.mxu0 %v16455_v31  ;;  %v15641_v48 = vpack.c.bf16 %v13926_v47, %v13925_v58  ;;  %v13963_v58 = vld [vmem:[%s19899_s7 + $0x3a0] sm:$0xff]  ;;  %v13964_v47 = vld [vmem:[%s19899_s7 + $0x3a8] sm:$0xff] }
 0x963   : > { %15585 = vmatpush3.bf16.msra.mxu0 %v15584_v49  ;;  %v13927_v49 = vld [vmem:[%s19899_s7 + $0x280] sm:$0xff] }
 0x964   : > { %15586 = vmatprep.subr.bf16.mxu0 %v16455_v31  ;;  %v15644_v6 = vpack.c.bf16 %v13928_v53, %v13927_v49  ;;  %v13965_v49 = vld [vmem:[%s19899_s7 + $0x3b0] sm:$0xff]  ;;  %v13966_v53 = vld [vmem:[%s19899_s7 + $0x3b8] sm:$0xff] }
 0x967   : > { %15588 = vmatpush3.bf16.msra.mxu0 %v15587_v54  ;;  %v12147_v54 = vrot.slane %v18848_v51, 4 }
 0x968   : > { %15589 = vmatprep.subr.bf16.mxu0 %v16455_v31 }
 0x96b   : > { %15591 = vmatpush3.bf16.msra.mxu0 %v15590_v34  ;;  %v15647_v34 = vpack.c.bf16 %v13930_v15, %v13929_v56  ;;  %v13968_v56 = vld [vmem:[%s19899_s7 + $0x3c8] sm:$0xff] }
 0x96c   : > { %15592 = vmatprep.subr.bf16.mxu0 %v16455_v31 }
 0x96f   : > { %15594 = vmatpush3.bf16.msra.mxu0 %v15593_v12  ;;  %v15650_v12 = vpack.c.bf16 %v13932_v11, %v13931_v57  ;;  %v13970_v57 = vld [vmem:[%s19899_s7 + $0x3d8] sm:$0xff] }
 0x970   : > { %15595 = vmatprep.subr.bf16.mxu0 %v16455_v31 }
 0x972   : > { %14744 = vmatmul.mubr.f32.vlgmr.msra.gmra.mrb[4].mxu0 %v11967_v21  ;;  %v13935_v21 = vld [vmem:[%s19899_s7 + $0x2c0] sm:$0xff] }
 0x973   : > { %15597 = vmatpush3.bf16.msra.mxu0 %v15596_v19  ;;  %14778 = vmatprep.mubr.msk.f32.mxu0 %vm16423_vm3, %v16413_v0  ;;  %v15653_v19 = vpack.c.bf16 %v13934_v17, %v13933_v16  ;;  %v15656_v2 = vpack.c.bf16 %v13936_v43, %v13935_v21  ;;  %v13972_v16 = vld [vmem:[%s19899_s7 + $0x3e8] sm:$0xff]  ;;  %v13974_v21 = vld [vmem:[%s19899_s7 + $0x3f8] sm:$0xff] }
 0x974   : > { %15598 = vmatprep.subr.bf16.mxu0 %v16455_v31 }
 0x977   : > { %15600 = vmatpush3.bf16.msra.mxu0 %v15599_v20  ;;  %v13937_v20 = vld [vmem:[%s19899_s7 + $0x2d0] sm:$0xff] }
 0x978   : > { %15601 = vmatprep.subr.bf16.mxu0 %v16455_v31  ;;  %v15659_v25 = vpack.c.bf16 %v13938_v24, %v13937_v20  ;;  %v13976_v20 = vld [vmem:[%s19899_s7 + $0x408] sm:$0xff] }
 0x97b   : > { %15603 = vmatpush3.bf16.msra.mxu0 %v15602_v1  ;;  %v13939_v1 = vld [vmem:[%s19899_s7 + $0x2e0] sm:$0xff] }
 0x97c   : > { %15604 = vmatprep.subr.bf16.mxu0 %v16455_v31  ;;  %v15662_v8 = vpack.c.bf16 %v13940_v5, %v13939_v1  ;;  %v13977_v1 = vld [vmem:[%s19899_s7 + $0x410] sm:$0xff]  ;;  %v13978_v5 = vld [vmem:[%s19899_s7 + $0x418] sm:$0xff] }
 0x97f   : > { %15606 = vmatpush3.bf16.msra.mxu0 %v15605_v14  ;;  %v13941_v14 = vld [vmem:[%s19899_s7 + $0x2f0] sm:$0xff] }
 0x980   : > { %15607 = vmatprep.subr.bf16.mxu0 %v16455_v31  ;;  %v15665_v44 = vpack.c.bf16 %v13942_v23, %v13941_v14  ;;  %v13980_v14 = vld [vmem:[%s19899_s7 + $0x428] sm:$0xff] }
 0x983   : > { %15609 = vmatpush3.bf16.msra.mxu0 %v15608_v50  ;;  %v13943_v50 = vld [vmem:[%s19899_s7 + $0x300] sm:$0xff] }
 0x984   : > { %15610 = vmatprep.subr.bf16.mxu0 %v16455_v31  ;;  %v15668_v55 = vpack.c.bf16 %v13944_v52, %v13943_v50  ;;  %v13982_v50 = vld [vmem:[%s19899_s7 + $0x438] sm:$0xff] }
 0x987   : > { %15612 = vmatpush3.bf16.msra.mxu0 %v15611_v59  ;;  %v12237_v59 = vrot.slane %v18848_v51, 5 }
 0x988   : > { %15613 = vmatprep.subr.bf16.mxu0 %v16455_v31 }
 0x98b   : > { %15615 = vmatpush3.bf16.msra.mxu0 %v15614_v9  ;;  %v15671_v9 = vpack.c.bf16 %v13946_v62, %v13945_v61  ;;  %v13985_v62 = vld [vmem:[%s19899_s7 + $0x450] sm:$0xff] }
 0x98c   : > { %15616 = vmatprep.subr.bf16.mxu0 %v16455_v31 }
 0x98f   : > { %15618 = vmatpush3.bf16.msra.mxu0 %v15617_v39  ;;  %v15674_v39 = vpack.c.bf16 %v13948_v33, %v13947_v37  ;;  %v13987_v33 = vld [vmem:[%s19899_s7 + $0x460] sm:$0xff] }
 0x990   : > { %15619 = vmatprep.subr.bf16.mxu0 %v16455_v31 }
 0x992   : > { %14779 = vmatmul.mubr.f32.vlgmr.msra.gmra.mrb[4].mxu0 %v12057_v7  ;;  %v13951_v7 = vld [vmem:[%s19899_s7 + $0x340] sm:$0xff] }
 0x993   : > { %15621 = vmatpush3.bf16.msra.mxu0 %v15620_v40  ;;  %14813 = vmatprep.mubr.msk.f32.mxu0 %vm16423_vm3, %v16413_v0  ;;  %v15677_v40 = vpack.c.bf16 %v13950_v30, %v13949_v22  ;;  %v15680_v63 = vpack.c.bf16 %v13952_v29, %v13951_v7  ;;  %v13989_v30 = vld [vmem:[%s19899_s7 + $0x470] sm:$0xff]  ;;  %v13991_v29 = vld [vmem:[%s19899_s7 + $0x480] sm:$0xff] }
 0x994   : > { %15622 = vmatprep.subr.bf16.mxu0 %v16455_v31 }
 0x997   : > { %15624 = vmatpush3.bf16.msra.mxu0 %v15623_v18  ;;  %v13953_v18 = vld [vmem:[%s19899_s7 + $0x350] sm:$0xff] }
 0x998   : > { %15625 = vmatprep.subr.bf16.mxu0 %v16455_v31  ;;  %v15683_v60 = vpack.c.bf16 %v13954_v13, %v13953_v18  ;;  %v13993_v13 = vld [vmem:[%s19899_s7 + $0x490] sm:$0xff] }
 0x99b   : > { %15627 = vmatpush3.bf16.msra.mxu0 %v15626_v26  ;;  %v13955_v26 = vld [vmem:[%s19899_s7 + $0x360] sm:$0xff] }
 0x99c   : > { %15628 = vmatprep.subr.bf16.mxu0 %v16455_v31  ;;  %v15686_v28 = vpack.c.bf16 %v13956_v27, %v13955_v26  ;;  %v13995_v27 = vld [vmem:[%s19899_s7 + $0x4a0] sm:$0xff] }
 0x99f   : > { %15630 = vmatpush3.bf16.msra.mxu0 %v15629_v4  ;;  %v13957_v4 = vld [vmem:[%s19899_s7 + $0x370] sm:$0xff] }
 0x9a0   : > { %15631 = vmatprep.subr.bf16.mxu0 %v16455_v31  ;;  %v15689_v36 = vpack.c.bf16 %v13958_v32, %v13957_v4  ;;  %v13997_v32 = vld [vmem:[%s19899_s7 + $0x4b0] sm:$0xff] }
 0x9a3   : > { %15633 = vmatpush3.bf16.msra.mxu0 %v15632_v38  ;;  %v13959_v38 = vld [vmem:[%s19899_s7 + $0x380] sm:$0xff] }
 0x9a4   : > { %15634 = vmatprep.subr.bf16.mxu0 %v16455_v31  ;;  %v15692_v42 = vpack.c.bf16 %v13960_v41, %v13959_v38  ;;  %v13999_v41 = vld [vmem:[%s19899_s7 + $0x4c0] sm:$0xff] }
 0x9a7   : > { %15636 = vmatpush3.bf16.msra.mxu0 %v15635_v45  ;;  %v12327_v45 = vrot.slane %v18848_v51, 6 }
 0x9a8   : > { %15637 = vmatprep.subr.bf16.mxu0 %v16455_v31 }
 0x9ab   : > { %15639 = vmatpush3.bf16.msra.mxu0 %v15638_v10  ;;  %v15695_v10 = vpack.c.bf16 %v13962_v46, %v13961_v3  ;;  %v14001_v3 = vld [vmem:[%s19899_s7 + $0x4d0] sm:$0xff]  ;;  %v14002_v46 = vld [vmem:[%s19899_s7 + $0x4d8] sm:$0xff] }
 0x9ac   : > { %15640 = vmatprep.subr.bf16.mxu0 %v16455_v31 }
 0x9af   : > { %15642 = vmatpush3.bf16.msra.mxu0 %v15641_v48  ;;  %v15698_v48 = vpack.c.bf16 %v13964_v47, %v13963_v58  ;;  %v14003_v58 = vld [vmem:[%s19899_s7 + $0x4e0] sm:$0xff]  ;;  %v14004_v47 = vld [vmem:[%s19899_s7 + $0x4e8] sm:$0xff] }
 0x9b0   : > { %15643 = vmatprep.subr.bf16.mxu0 %v16455_v31 }
 0x9b2   : > { %14814 = vmatmul.mubr.f32.vlgmr.msra.gmra.mrb[4].mxu0 %v12147_v54  ;;  %v13967_v54 = vld [vmem:[%s19899_s7 + $0x3c0] sm:$0xff] }
 0x9b3   : > { %15645 = vmatpush3.bf16.msra.mxu0 %v15644_v6  ;;  %14848 = vmatprep.mubr.msk.f32.mxu0 %vm16423_vm3, %v16413_v0  ;;  %v15701_v6 = vpack.c.bf16 %v13966_v53, %v13965_v49  ;;  %v15704_v15 = vpack.c.bf16 %v13968_v56, %v13967_v54  ;;  %v14005_v49 = vld [vmem:[%s19899_s7 + $0x4f0] sm:$0xff]  ;;  %v14006_v53 = vld [vmem:[%s19899_s7 + $0x4f8] sm:$0xff]  ;;  %v14007_v54 = vld [vmem:[%s19899_s7 + $0x500] sm:$0xff] }
 0x9b4   : > { %15646 = vmatprep.subr.bf16.mxu0 %v16455_v31  ;;  %v14008_v56 = vld [vmem:[%s19899_s7 + $0x508] sm:$0xff] }
 0x9b7   : > { %15648 = vmatpush3.bf16.msra.mxu0 %v15647_v34  ;;  %v13969_v34 = vld [vmem:[%s19899_s7 + $0x3d0] sm:$0xff] }
 0x9b8   : > { %15649 = vmatprep.subr.bf16.mxu0 %v16455_v31  ;;  %v15707_v11 = vpack.c.bf16 %v13970_v57, %v13969_v34  ;;  %v12596_v34 = vrot.slane %v18840_v35, 1  ;;  %v14009_v57 = vld [vmem:[%s19899_s7 + $0x510] sm:$0xff] }
 0x9bb   : > { %15651 = vmatpush3.bf16.msra.mxu0 %v15650_v12  ;;  %v13971_v12 = vld [vmem:[%s19899_s7 + $0x3e0] sm:$0xff] }
 0x9bc   : > { %15652 = vmatprep.subr.bf16.mxu0 %v16455_v31  ;;  %v15710_v17 = vpack.c.bf16 %v13972_v16, %v13971_v12  ;;  %v14011_v16 = vld [vmem:[%s19899_s7 + $0x520] sm:$0xff] }
 0x9bf   : > { %15654 = vmatpush3.bf16.msra.mxu0 %v15653_v19  ;;  %v13973_v19 = vld [vmem:[%s19899_s7 + $0x3f0] sm:$0xff] }
 0x9c0   : > { %15655 = vmatprep.subr.bf16.mxu0 %v16455_v31  ;;  %v15713_v43 = vpack.c.bf16 %v13974_v21, %v13973_v19  ;;  %v14013_v21 = vld [vmem:[%s19899_s7 + $0x530] sm:$0xff] }
 0x9c3   : > { %15657 = vmatpush3.bf16.msra.mxu0 %v15656_v2  ;;  %v13975_v2 = vld [vmem:[%s19899_s7 + $0x400] sm:$0xff] }
 0x9c4   : > { %15658 = vmatprep.subr.bf16.mxu0 %v16455_v31  ;;  %v15716_v24 = vpack.c.bf16 %v13976_v20, %v13975_v2  ;;  %v14015_v20 = vld [vmem:[%s19899_s7 + $0x540] sm:$0xff] }
 0x9c7   : > { %15660 = vmatpush3.bf16.msra.mxu0 %v15659_v25  ;;  %v12417_v25 = vrot.slane %v18848_v51, 7  ;;  %v13979_v51 = vld [vmem:[%s19899_s7 + $0x420] sm:$0xff] }
 0x9c8   : > { %15661 = vmatprep.subr.bf16.mxu0 %v16455_v31  ;;  %v15722_v23 = vpack.c.bf16 %v13980_v14, %v13979_v51  ;;  %v14019_v51 = vld [vmem:[%s19899_s7 + $0x560] sm:$0xff]  ;;  %v14020_v14 = vld [vmem:[%s19899_s7 + $0x568] sm:$0xff] }
 0x9cb   : > { %15663 = vmatpush3.bf16.msra.mxu0 %v15662_v8  ;;  %v15719_v8 = vpack.c.bf16 %v13978_v5, %v13977_v1  ;;  %v14017_v1 = vld [vmem:[%s19899_s7 + $0x550] sm:$0xff]  ;;  %v14018_v5 = vld [vmem:[%s19899_s7 + $0x558] sm:$0xff] }
 0x9cc   : > { %15664 = vmatprep.subr.bf16.mxu0 %v16455_v31 }
 0x9cf   : > { %15666 = vmatpush3.bf16.msra.mxu0 %v15665_v44  ;;  %v13981_v44 = vld [vmem:[%s19899_s7 + $0x430] sm:$0xff] }
 0x9d0   : > { %15667 = vmatprep.subr.bf16.mxu0 %v16455_v31  ;;  %v15725_v52 = vpack.c.bf16 %v13982_v50, %v13981_v44  ;;  %v14021_v44 = vld [vmem:[%s19899_s7 + $0x570] sm:$0xff]  ;;  %v14022_v50 = vld [vmem:[%s19899_s7 + $0x578] sm:$0xff] }
 0x9d2   : > { %14849 = vmatmul.mubr.f32.vlgmr.msra.gmra.mrb[4].mxu0 %v12237_v59  ;;  %v13984_v59 = vld [vmem:[%s19899_s7 + $0x448] sm:$0xff] }
 0x9d3   : > { %15669 = vmatpush3.bf16.msra.mxu0 %v15668_v55  ;;  %14883 = vmatprep.mubr.msk.f32.mxu0 %vm16423_vm3, %v16413_v0  ;;  %v13983_v55 = vld [vmem:[%s19899_s7 + $0x440] sm:$0xff] }
 0x9d4   : > { %15670 = vmatprep.subr.bf16.mxu0 %v16455_v31  ;;  %v15728_v61 = vpack.c.bf16 %v13984_v59, %v13983_v55  ;;  %v14023_v55 = vld [vmem:[%s19899_s7 + $0x580] sm:$0xff]  ;;  %v14024_v59 = vld [vmem:[%s19899_s7 + $0x588] sm:$0xff] }
 0x9d7   : > { %15672 = vmatpush3.bf16.msra.mxu0 %v15671_v9  ;;  %v13986_v9 = vld [vmem:[%s19899_s7 + $0x458] sm:$0xff] }
 0x9d8   : > { %15673 = vmatprep.subr.bf16.mxu0 %v16455_v31  ;;  %v15731_v37 = vpack.c.bf16 %v13986_v9, %v13985_v62  ;;  %v12686_v62 = vrot.slane %v18840_v35, 2  ;;  %v14025_v9 = vld [vmem:[%s19899_s7 + $0x590] sm:$0xff] }
 0x9db   : > { %15675 = vmatpush3.bf16.msra.mxu0 %v15674_v39  ;;  %v13988_v39 = vld [vmem:[%s19899_s7 + $0x468] sm:$0xff] }
 0x9dc   : > { %15676 = vmatprep.subr.bf16.mxu0 %v16455_v31  ;;  %v15734_v22 = vpack.c.bf16 %v13988_v39, %v13987_v33  ;;  %v14027_v39 = vld [vmem:[%s19899_s7 + $0x5a0] sm:$0xff] }
 0x9df   : > { %15678 = vmatpush3.bf16.msra.mxu0 %v15677_v40  ;;  %v13990_v40 = vld [vmem:[%s19899_s7 + $0x478] sm:$0xff] }
 0x9e0   : > { %15679 = vmatprep.subr.bf16.mxu0 %v16455_v31  ;;  %v15737_v7 = vpack.c.bf16 %v13990_v40, %v13989_v30  ;;  %v14029_v40 = vld [vmem:[%s19899_s7 + $0x5b0] sm:$0xff] }
 0x9e3   : > { %15681 = vmatpush3.bf16.msra.mxu0 %v15680_v63  ;;  %v13992_v63 = vld [vmem:[%s19899_s7 + $0x488] sm:$0xff] }
 0x9e4   : > { %15682 = vmatprep.subr.bf16.mxu0 %v16455_v31  ;;  %v15740_v18 = vpack.c.bf16 %v13992_v63, %v13991_v29  ;;  %v14031_v63 = vld [vmem:[%s19899_s7 + $0x5c0] sm:$0xff] }
 0x9e7   : > { %15684 = vmatpush3.bf16.msra.mxu0 %v15683_v60  ;;  %v13994_v60 = vld [vmem:[%s19899_s7 + $0x498] sm:$0xff] }
 0x9e8   : > { %15685 = vmatprep.subr.bf16.mxu0 %v16455_v31  ;;  %v15743_v26 = vpack.c.bf16 %v13994_v60, %v13993_v13  ;;  %v14033_v60 = vld [vmem:[%s19899_s7 + $0x5d0] sm:$0xff] }
 0x9eb   : > { %15687 = vmatpush3.bf16.msra.mxu0 %v15686_v28  ;;  %v13996_v28 = vld [vmem:[%s19899_s7 + $0x4a8] sm:$0xff] }
 0x9ec   : > { %15688 = vmatprep.subr.bf16.mxu0 %v16455_v31  ;;  %v15746_v4 = vpack.c.bf16 %v13996_v28, %v13995_v27  ;;  %v14035_v28 = vld [vmem:[%s19899_s7 + $0x5e0] sm:$0xff] }
 0x9ef   : > { %15690 = vmatpush3.bf16.msra.mxu0 %v15689_v36  ;;  %v13998_v36 = vld [vmem:[%s19899_s7 + $0x4b8] sm:$0xff] }
 0x9f0   : > { %15691 = vmatprep.subr.bf16.mxu0 %v16455_v31  ;;  %v15749_v38 = vpack.c.bf16 %v13998_v36, %v13997_v32  ;;  %v14037_v36 = vld [vmem:[%s19899_s7 + $0x5f0] sm:$0xff] }
 0x9f2   : > { %14884 = vmatmul.mubr.f32.vlgmr.msra.gmra.mrb[4].mxu0 %v12327_v45 }
 0x9f3   : > { %15693 = vmatpush3.bf16.msra.mxu0 %v15692_v42  ;;  %14918 = vmatprep.mubr.msk.f32.mxu0 %vm16423_vm3, %v16413_v0  ;;  %v14000_v42 = vld [vmem:[%s19899_s7 + $0x4c8] sm:$0xff] }
 0x9f4   : > { %15694 = vmatprep.subr.bf16.mxu0 %v16455_v31  ;;  %v15752_v45 = vpack.c.bf16 %v14000_v42, %v13999_v41  ;;  %v14039_v42 = vld [vmem:[%s19899_s7 + $0x600] sm:$0xff] }
 0x9f7   : > { %15696 = vmatpush3.bf16.msra.mxu0 %v15695_v10  ;;  %v15755_v10 = vpack.c.bf16 %v14002_v46, %v14001_v3  ;;  %v12776_v46 = vrot.slane %v18840_v35, 3 }
 0x9f8   : > { %15697 = vmatprep.subr.bf16.mxu0 %v16455_v31 }
 0x9fb   : > { %15699 = vmatpush3.bf16.msra.mxu0 %v15698_v48  ;;  %v15758_v48 = vpack.c.bf16 %v14004_v47, %v14003_v58  ;;  %v14042_v58 = vld [vmem:[%s19899_s7 + $0x618] sm:$0xff]  ;;  %v13210_v47 = vld [vmem:[%s19901_s9] sm:$0xff] }
 0x9fc   : > { %15700 = vmatprep.subr.bf16.mxu0 %v16455_v31 }
 0x9ff   : > { %15702 = vmatpush3.bf16.msra.mxu0 %v15701_v6  ;;  %v15761_v6 = vpack.c.bf16 %v14006_v53, %v14005_v49  ;;  %v13212_v49 = vld [vmem:[%s19901_s9 + $0x10] sm:$0xff] }
 0xa00   : > { %15703 = vmatprep.subr.bf16.mxu0 %v16455_v31 }
 0xa03   : > { %15705 = vmatpush3.bf16.msra.mxu0 %v15704_v15  ;;  %v15764_v15 = vpack.c.bf16 %v14008_v56, %v14007_v54  ;;  %v13213_v54 = vld [vmem:[%s19901_s9 + $0x18] sm:$0xff]  ;;  %v14043_v56 = vld [vmem:[%s19899_s7 + $0x620] sm:$0xff] }
 0xa04   : > { %15706 = vmatprep.subr.bf16.mxu0 %v16455_v31 }
 0xa07   : > { %15708 = vmatpush3.bf16.msra.mxu0 %v15707_v11  ;;  %v14010_v11 = vld [vmem:[%s19899_s7 + $0x518] sm:$0xff] }
 0xa08   : > { %15709 = vmatprep.subr.bf16.mxu0 %v16455_v31  ;;  %v15767_v12 = vpack.c.bf16 %v14010_v11, %v14009_v57  ;;  %v13214_v57 = vld [vmem:[%s19901_s9 + $0x20] sm:$0xff]  ;;  %v13215_v11 = vld [vmem:[%s19901_s9 + $0x28] sm:$0xff] }
 0xa0b   : > { %15711 = vmatpush3.bf16.msra.mxu0 %v15710_v17  ;;  %v14012_v17 = vld [vmem:[%s19899_s7 + $0x528] sm:$0xff] }
 0xa0c   : > { %15712 = vmatprep.subr.bf16.mxu0 %v16455_v31  ;;  %v15770_v19 = vpack.c.bf16 %v14012_v17, %v14011_v16  ;;  %v14045_v16 = vld [vmem:[%s19899_s7 + $0x630] sm:$0xff]  ;;  %v14046_v17 = vld [vmem:[%s19899_s7 + $0x638] sm:$0xff] }
 0xa0f   : > { %15714 = vmatpush3.bf16.msra.mxu0 %v15713_v43  ;;  %v14014_v43 = vld [vmem:[%s19899_s7 + $0x538] sm:$0xff] }
 0xa10   : > { %15715 = vmatprep.subr.bf16.mxu0 %v16455_v31  ;;  %v15773_v2 = vpack.c.bf16 %v14014_v43, %v14013_v21  ;;  %v13216_v21 = vld [vmem:[%s19901_s9 + $0x30] sm:$0xff]  ;;  %v13217_v43 = vld [vmem:[%s19901_s9 + $0x38] sm:$0xff] }
 0xa12   : > { %14919 = vmatmul.mubr.f32.vlgmr.msra.gmra.mrb[4].mxu0 %v12417_v25 }
 0xa13   : > { %15717 = vmatpush3.bf16.msra.mxu0 %v15716_v24  ;;  %14953 = vmatprep.mubr.msk.f32.mxu0 %vm16423_vm3, %v16413_v0  ;;  %v14016_v24 = vld [vmem:[%s19899_s7 + $0x548] sm:$0xff] }
 0xa14   : > { %15718 = vmatprep.subr.bf16.mxu0 %v16455_v31  ;;  %v15776_v25 = vpack.c.bf16 %v14016_v24, %v14015_v20  ;;  %v14047_v20 = vld [vmem:[%s19899_s7 + $0x640] sm:$0xff]  ;;  %v14048_v24 = vld [vmem:[%s19899_s7 + $0x648] sm:$0xff] }
 0xa17   : > { %15720 = vmatpush3.bf16.msra.mxu0 %v15719_v8  ;;  %v15779_v8 = vpack.c.bf16 %v14018_v5, %v14017_v1  ;;  %v13218_v1 = vld [vmem:[%s19901_s9 + $0x40] sm:$0xff]  ;;  %v13219_v5 = vld [vmem:[%s19901_s9 + $0x48] sm:$0xff] }
 0xa18   : > { %15721 = vmatprep.subr.bf16.mxu0 %v16455_v31 }
 0xa1b   : > { %15723 = vmatpush3.bf16.msra.mxu0 %v15722_v23  ;;  %v15782_v23 = vpack.c.bf16 %v14020_v14, %v14019_v51  ;;  %v14049_v51 = vld [vmem:[%s19899_s7 + $0x650] sm:$0xff]  ;;  %v14050_v14 = vld [vmem:[%s19899_s7 + $0x658] sm:$0xff] }
 0xa1c   : > { %15724 = vmatprep.subr.bf16.mxu0 %v16455_v31 }
 0xa1f   : > { %15726 = vmatpush3.bf16.msra.mxu0 %v15725_v52  ;;  %v15785_v52 = vpack.c.bf16 %v14022_v50, %v14021_v44  ;;  %v13220_v44 = vld [vmem:[%s19901_s9 + $0x50] sm:$0xff]  ;;  %v13221_v50 = vld [vmem:[%s19901_s9 + $0x58] sm:$0xff] }
 0xa20   : > { %15727 = vmatprep.subr.bf16.mxu0 %v16455_v31 }
 0xa23   : > { %15729 = vmatpush3.bf16.msra.mxu0 %v15728_v61  ;;  %v15788_v61 = vpack.c.bf16 %v14024_v59, %v14023_v55  ;;  %v14051_v55 = vld [vmem:[%s19899_s7 + $0x660] sm:$0xff]  ;;  %v14052_v59 = vld [vmem:[%s19899_s7 + $0x668] sm:$0xff] }
 0xa24   : > { %15730 = vmatprep.subr.bf16.mxu0 %v16455_v31 }
 0xa27   : > { %15732 = vmatpush3.bf16.msra.mxu0 %v15731_v37  ;;  %v14026_v37 = vld [vmem:[%s19899_s7 + $0x598] sm:$0xff] }
 0xa28   : > { %15733 = vmatprep.subr.bf16.mxu0 %v16455_v31  ;;  %v15791_v33 = vpack.c.bf16 %v14026_v37, %v14025_v9  ;;  %v13223_v9 = vld [vmem:[%s19901_s9 + $0x68] sm:$0xff]  ;;  %v15830_v37 = vpack.c.bf16 %v14052_v59, %v14051_v55 }
 0xa29   : > { %v14088_v55 = vld [vmem:[%s19899_s7 + $0x788] sm:$0xff] }
 0xa2b   : > { %15735 = vmatpush3.bf16.msra.mxu0 %v15734_v22  ;;  %v14028_v22 = vld [vmem:[%s19899_s7 + $0x5a8] sm:$0xff] }
 0xa2c   : > { %15736 = vmatprep.subr.bf16.mxu0 %v16455_v31  ;;  %v15794_v30 = vpack.c.bf16 %v14028_v22, %v14027_v39  ;;  %v14054_v39 = vld [vmem:[%s19899_s7 + $0x678] sm:$0xff] }
 0xa2f   : > { %15738 = vmatpush3.bf16.msra.mxu0 %v15737_v7  ;;  %v14030_v7 = vld [vmem:[%s19899_s7 + $0x5b8] sm:$0xff] }
 0xa30   : > { %15739 = vmatprep.subr.bf16.mxu0 %v16455_v31  ;;  %v15797_v29 = vpack.c.bf16 %v14030_v7, %v14029_v40  ;;  %v14055_v40 = vld [vmem:[%s19899_s7 + $0x680] sm:$0xff]  ;;  %v14056_v7 = vld [vmem:[%s19899_s7 + $0x688] sm:$0xff] }
 0xa32   : > { %14954 = vmatmul.mubr.f32.vlgmr.msra.gmra.mrb[4].mxu0 %v18840_v35 }
 0xa33   : > { %15741 = vmatpush3.bf16.msra.mxu0 %v15740_v18  ;;  %14988 = vmatprep.mubr.msk.f32.mxu0 %vm16423_vm3, %v16413_v0  ;;  %v14032_v18 = vld [vmem:[%s19899_s7 + $0x5c8] sm:$0xff] }
 0xa34   : > { %15742 = vmatprep.subr.bf16.mxu0 %v16455_v31  ;;  %v15800_v13 = vpack.c.bf16 %v14032_v18, %v14031_v63  ;;  %v12866_v63 = vrot.slane %v18840_v35, 4  ;;  %v14057_v18 = vld [vmem:[%s19899_s7 + $0x690] sm:$0xff] }
 0xa37   : > { %15744 = vmatpush3.bf16.msra.mxu0 %v15743_v26  ;;  %v14034_v26 = vld [vmem:[%s19899_s7 + $0x5d8] sm:$0xff] }
 0xa38   : > { %15745 = vmatprep.subr.bf16.mxu0 %v16455_v31  ;;  %v15803_v27 = vpack.c.bf16 %v14034_v26, %v14033_v60  ;;  %v14059_v26 = vld [vmem:[%s19899_s7 + $0x6a0] sm:$0xff] }
 0xa3b   : > { %15747 = vmatpush3.bf16.msra.mxu0 %v15746_v4  ;;  %v14036_v4 = vld [vmem:[%s19899_s7 + $0x5e8] sm:$0xff] }
 0xa3c   : > { %15748 = vmatprep.subr.bf16.mxu0 %v16455_v31  ;;  %v15806_v32 = vpack.c.bf16 %v14036_v4, %v14035_v28  ;;  %v14061_v4 = vld [vmem:[%s19899_s7 + $0x6b0] sm:$0xff] }
 0xa3f   : > { %15750 = vmatpush3.bf16.msra.mxu0 %v15749_v38  ;;  %v14038_v38 = vld [vmem:[%s19899_s7 + $0x5f8] sm:$0xff] }
 0xa40   : > { %15751 = vmatprep.subr.bf16.mxu0 %v16455_v31  ;;  %v15809_v41 = vpack.c.bf16 %v14038_v38, %v14037_v36  ;;  %v14063_v38 = vld [vmem:[%s19899_s7 + $0x6c0] sm:$0xff] }
 0xa43   : > { %15753 = vmatpush3.bf16.msra.mxu0 %v15752_v45  ;;  %v14040_v45 = vld [vmem:[%s19899_s7 + $0x608] sm:$0xff] }
 0xa44   : > { %15754 = vmatprep.subr.bf16.mxu0 %v16455_v31  ;;  %v15812_v3 = vpack.c.bf16 %v14040_v45, %v14039_v42  ;;  %v14065_v45 = vld [vmem:[%s19899_s7 + $0x6d0] sm:$0xff] }
 0xa47   : > { %15756 = vmatpush3.bf16.msra.mxu0 %v15755_v10  ;;  %v14041_v10 = vld [vmem:[%s19899_s7 + $0x610] sm:$0xff] }
 0xa48   : > { %15757 = vmatprep.subr.bf16.mxu0 %v16455_v31  ;;  %v15815_v53 = vpack.c.bf16 %v14042_v58, %v14041_v10  ;;  %v14067_v10 = vld [vmem:[%s19899_s7 + $0x6e0] sm:$0xff]  ;;  %v14068_v58 = vld [vmem:[%s19899_s7 + $0x6e8] sm:$0xff] }
 0xa4b   : > { %15759 = vmatpush3.bf16.msra.mxu0 %v15758_v48  ;;  %v13211_v48 = vld [vmem:[%s19901_s9 + $0x8] sm:$0xff] }
 0xa4c   : > { %15760 = vmatprep.subr.bf16.mxu0 %v16455_v31 }
 0xa4f   : > { %15762 = vmatpush3.bf16.msra.mxu0 %v15761_v6  ;;  %v15908_v6 = vpack.c.bf16 %v13211_v48, %v13210_v47  ;;  %v15854_v47 = vpack.c.bf16 %v14068_v58, %v14067_v10  ;;  %v14069_v48 = vld [vmem:[%s19899_s7 + $0x6f0] sm:$0xff]  ;;  %v13299_v10 = vld [vmem:[%s19903_s11 + $0x8] sm:$0xff] }
 0xa50   : > { %15763 = vmatprep.subr.bf16.mxu0 %v16455_v31 }
 0xa51   : > { %15909 = vmatpush3.bf16.msra.mxu1 %v15908_v6  ;;  %v14071_v6 = vld [vmem:[%s19899_s7 + $0x700] sm:$0xff] }
 0xa52   : > { %14989 = vmatmul.mubr.f32.vlgmr.msra.gmra.mrb[4].mxu0 %v12596_v34  ;;  %v15911_v34 = vpack.c.bf16 %v13213_v54, %v13212_v49  ;;  %15910 = vmatprep.subr.bf16.mxu1 %v16455_v31  ;;  %v14070_v49 = vld [vmem:[%s19899_s7 + $0x6f8] sm:$0xff]  ;;  %v14072_v54 = vld [vmem:[%s19899_s7 + $0x708] sm:$0xff] }
 0xa53   : > { %15765 = vmatpush3.bf16.msra.mxu0 %v15764_v15  ;;  %15023 = vmatprep.mubr.msk.f32.mxu0 %vm16423_vm3, %v16413_v0  ;;  %v14044_v15 = vld [vmem:[%s19899_s7 + $0x628] sm:$0xff] }
 0xa54   : > { %15766 = vmatprep.subr.bf16.mxu0 %v16455_v31 }
 0xa55   : > { %15912 = vmatpush3.bf16.msra.mxu1 %v15911_v34  ;;  %v14073_v34 = vld [vmem:[%s19899_s7 + $0x710] sm:$0xff] }
 0xa56   : > { %15913 = vmatprep.subr.bf16.mxu1 %v16455_v31 }
 0xa57   : > { %15768 = vmatpush3.bf16.msra.mxu0 %v15767_v12  ;;  %v15818_v12 = vpack.c.bf16 %v14044_v15, %v14043_v56  ;;  %v15860_v56 = vpack.c.bf16 %v14072_v54, %v14071_v6  ;;  %v12956_v15 = vrot.slane %v18840_v35, 5  ;;  %v13300_v6 = vld [vmem:[%s19903_s11 + $0x10] sm:$0xff]  ;;  %v13301_v54 = vld [vmem:[%s19903_s11 + $0x18] sm:$0xff] }
 0xa58   : > { %15769 = vmatprep.subr.bf16.mxu0 %v16455_v31 }
 0xa5b   : > { %15771 = vmatpush3.bf16.msra.mxu0 %v15770_v19  ;;  %v15914_v19 = vpack.c.bf16 %v13215_v11, %v13214_v57  ;;  %v14074_v57 = vld [vmem:[%s19899_s7 + $0x718] sm:$0xff] }
 0xa5c   : > { %15772 = vmatprep.subr.bf16.mxu0 %v16455_v31  ;;  %v15863_v11 = vpack.c.bf16 %v14074_v57, %v14073_v34  ;;  %v13303_v34 = vld [vmem:[%s19903_s11 + $0x28] sm:$0xff] }
 0xa5d   : > { %15915 = vmatpush3.bf16.msra.mxu1 %v15914_v19  ;;  %v14077_v19 = vld [vmem:[%s19899_s7 + $0x730] sm:$0xff] }
 0xa5e   : > { %15916 = vmatprep.subr.bf16.mxu1 %v16455_v31 }
 0xa5f   : > { %15774 = vmatpush3.bf16.msra.mxu0 %v15773_v2  ;;  %v15821_v2 = vpack.c.bf16 %v14046_v17, %v14045_v16  ;;  %v14076_v16 = vld [vmem:[%s19899_s7 + $0x728] sm:$0xff] }
 0xa60   : > { %15775 = vmatprep.subr.bf16.mxu0 %v16455_v31 }
 0xa63   : > { %15777 = vmatpush3.bf16.msra.mxu0 %v15776_v25  ;;  %v15917_v25 = vpack.c.bf16 %v13217_v43, %v13216_v21  ;;  %v14078_v21 = vld [vmem:[%s19899_s7 + $0x738] sm:$0xff] }
 0xa64   : > { %15778 = vmatprep.subr.bf16.mxu0 %v16455_v31  ;;  %v15869_v43 = vpack.c.bf16 %v14078_v21, %v14077_v19  ;;  %v13308_v21 = vld [vmem:[%s19903_s11 + $0x50] sm:$0xff] }
 0xa65   : > { %15918 = vmatpush3.bf16.msra.mxu1 %v15917_v25  ;;  %v14081_v25 = vld [vmem:[%s19899_s7 + $0x750] sm:$0xff] }
 0xa66   : > { %15919 = vmatprep.subr.bf16.mxu1 %v16455_v31 }
 0xa67   : > { %15780 = vmatpush3.bf16.msra.mxu0 %v15779_v8  ;;  %v15824_v8 = vpack.c.bf16 %v14048_v24, %v14047_v20  ;;  %v14080_v20 = vld [vmem:[%s19899_s7 + $0x748] sm:$0xff] }
 0xa68   : > { %15781 = vmatprep.subr.bf16.mxu0 %v16455_v31 }
 0xa6b   : > { %15783 = vmatpush3.bf16.msra.mxu0 %v15782_v23  ;;  %v15920_v23 = vpack.c.bf16 %v13219_v5, %v13218_v1  ;;  %v14082_v1 = vld [vmem:[%s19899_s7 + $0x758] sm:$0xff] }
 0xa6c   : > { %15784 = vmatprep.subr.bf16.mxu0 %v16455_v31  ;;  %v15875_v5 = vpack.c.bf16 %v14082_v1, %v14081_v25  ;;  %v13312_v1 = vld [vmem:[%s19903_s11 + $0x70] sm:$0xff] }
 0xa6d   : > { %15921 = vmatpush3.bf16.msra.mxu1 %v15920_v23  ;;  %v14085_v23 = vld [vmem:[%s19899_s7 + $0x770] sm:$0xff] }
 0xa6e   : > { %15922 = vmatprep.subr.bf16.mxu1 %v16455_v31 }
 0xa6f   : > { %15786 = vmatpush3.bf16.msra.mxu0 %v15785_v52  ;;  %v15827_v52 = vpack.c.bf16 %v14050_v14, %v14049_v51  ;;  %v14084_v51 = vld [vmem:[%s19899_s7 + $0x768] sm:$0xff] }
 0xa70   : > { %15787 = vmatprep.subr.bf16.mxu0 %v16455_v31 }
 0xa72   : > { %15024 = vmatmul.mubr.f32.vlgmr.msra.gmra.mrb[4].mxu0 %v12686_v62  ;;  %v13222_v62 = vld [vmem:[%s19901_s9 + $0x60] sm:$0xff] }
 0xa73   : > { %15789 = vmatpush3.bf16.msra.mxu0 %v15788_v61  ;;  %15058 = vmatprep.mubr.msk.f32.mxu0 %vm16423_vm3, %v16413_v0  ;;  %v15923_v61 = vpack.c.bf16 %v13221_v50, %v13220_v44  ;;  %v15926_v22 = vpack.c.bf16 %v13223_v9, %v13222_v62  ;;  %v14086_v44 = vld [vmem:[%s19899_s7 + $0x778] sm:$0xff]  ;;  %v14089_v62 = vld [vmem:[%s19899_s7 + $0x790] sm:$0xff] }
 0xa74   : > { %15790 = vmatprep.subr.bf16.mxu0 %v16455_v31  ;;  %v15881_v50 = vpack.c.bf16 %v14086_v44, %v14085_v23  ;;  %v14090_v9 = vld [vmem:[%s19899_s7 + $0x798] sm:$0xff] }
 0xa75   : > { %15924 = vmatpush3.bf16.msra.mxu1 %v15923_v61  ;;  %v13046_v61 = vrot.slane %v18840_v35, 6 }
 0xa76   : > { %15925 = vmatprep.subr.bf16.mxu1 %v16455_v31 }
 0xa77   : > { %15792 = vmatpush3.bf16.msra.mxu0 %v15791_v33  ;;  %v14053_v33 = vld [vmem:[%s19899_s7 + $0x670] sm:$0xff] }
 0xa78   : > { %15793 = vmatprep.subr.bf16.mxu0 %v16455_v31 }
 0xa79   : > { %15927 = vmatpush3.bf16.msra.mxu1 %v15926_v22 }
 0xa7a   : > { %15928 = vmatprep.subr.bf16.mxu1 %v16455_v31 }
 0xa7b   : > { %15795 = vmatpush3.bf16.msra.mxu0 %v15794_v30  ;;  %v15833_v30 = vpack.c.bf16 %v14054_v39, %v14053_v33  ;;  %v14091_v33 = vld [vmem:[%s19899_s7 + $0x7a0] sm:$0xff]  ;;  %v14092_v39 = vld [vmem:[%s19899_s7 + $0x7a8] sm:$0xff] }
 0xa7c   : > { %15796 = vmatprep.subr.bf16.mxu0 %v16455_v31  ;;  %v15890_v22 = vpack.c.bf16 %v14092_v39, %v14091_v33 }
 0xa7f   : > { %15798 = vmatpush3.bf16.msra.mxu0 %v15797_v29  ;;  %v15836_v29 = vpack.c.bf16 %v14056_v7, %v14055_v40  ;;  %v14094_v40 = vld [vmem:[%s19899_s7 + $0x7b8] sm:$0xff] }
 0xa80   : > { %15799 = vmatprep.subr.bf16.mxu0 %v16455_v31 }
 0xa83   : > { %15801 = vmatpush3.bf16.msra.mxu0 %v15800_v13  ;;  %v14058_v13 = vld [vmem:[%s19899_s7 + $0x698] sm:$0xff] }
 0xa84   : > { %15802 = vmatprep.subr.bf16.mxu0 %v16455_v31  ;;  %v15839_v60 = vpack.c.bf16 %v14058_v13, %v14057_v18  ;;  %v14097_v13 = vld [vmem:[%s19899_s7 + $0x7d0] sm:$0xff] }
 0xa87   : > { %15804 = vmatpush3.bf16.msra.mxu0 %v15803_v27  ;;  %v14060_v27 = vld [vmem:[%s19899_s7 + $0x6a8] sm:$0xff] }
 0xa88   : > { %15805 = vmatprep.subr.bf16.mxu0 %v16455_v31  ;;  %v15842_v28 = vpack.c.bf16 %v14060_v27, %v14059_v26  ;;  %v14099_v27 = vld [vmem:[%s19899_s7 + $0x7e0] sm:$0xff] }
 0xa8b   : > { %15807 = vmatpush3.bf16.msra.mxu0 %v15806_v32  ;;  %v14062_v32 = vld [vmem:[%s19899_s7 + $0x6b8] sm:$0xff] }
 0xa8c   : > { %15808 = vmatprep.subr.bf16.mxu0 %v16455_v31  ;;  %v15845_v36 = vpack.c.bf16 %v14062_v32, %v14061_v4  ;;  %v14101_v32 = vld [vmem:[%s19899_s7 + $0x7f0] sm:$0xff] }
 0xa8f   : > { %15810 = vmatpush3.bf16.msra.mxu0 %v15809_v41  ;;  %v14064_v41 = vld [vmem:[%s19899_s7 + $0x6c8] sm:$0xff] }
 0xa90   : > { %15811 = vmatprep.subr.bf16.mxu0 %v16455_v31  ;;  %v15848_v42 = vpack.c.bf16 %v14064_v41, %v14063_v38  ;;  %v13136_v41 = vrot.slane %v18840_v35, 7  ;;  %v13298_v35 = vld [vmem:[%s19903_s11] sm:$0xff] }
 0xa92   : > { %15059 = vmatmul.mubr.f32.vlgmr.msra.gmra.mrb[4].mxu0 %v12776_v46 }
 0xa93   : > { %15813 = vmatpush3.bf16.msra.mxu0 %v15812_v3  ;;  %15093 = vmatprep.mubr.msk.f32.mxu0 %vm16423_vm3, %v16413_v0  ;;  %v14066_v3 = vld [vmem:[%s19899_s7 + $0x6d8] sm:$0xff] }
 0xa94   : > { %15814 = vmatprep.subr.bf16.mxu0 %v16455_v31  ;;  %v15851_v46 = vpack.c.bf16 %v14066_v3, %v14065_v45  ;;  %v13225_v45 = vld [vmem:[%s19901_s9 + $0x78] sm:$0xff] }
 0xa97   : > { %15816 = vmatpush3.bf16.msra.mxu0 %v15815_v53  ;;  %v15857_v53 = vpack.c.bf16 %v14070_v49, %v14069_v48  ;;  %v15932_v49 = vpack.c.bf16 %v13299_v10, %v13298_v35 }
 0xa98   : > { %15817 = vmatprep.subr.bf16.mxu0 %v16455_v31 }
 0xa9b   : > { %15819 = vmatpush3.bf16.msra.mxu0 %v15818_v12  ;;  %v14075_v12 = vld [vmem:[%s19899_s7 + $0x720] sm:$0xff] }
 0xa9c   : > { %15820 = vmatprep.subr.bf16.mxu0 %v16455_v31  ;;  %v15866_v17 = vpack.c.bf16 %v14076_v16, %v14075_v12  ;;  %v13306_v16 = vld [vmem:[%s19903_s11 + $0x40] sm:$0xff] }
 0xa9f   : > { %15822 = vmatpush3.bf16.msra.mxu0 %v15821_v2  ;;  %v14079_v2 = vld [vmem:[%s19899_s7 + $0x740] sm:$0xff] }
 0xaa0   : > { %15823 = vmatprep.subr.bf16.mxu0 %v16455_v31  ;;  %v15872_v24 = vpack.c.bf16 %v14080_v20, %v14079_v2  ;;  %v13310_v20 = vld [vmem:[%s19903_s11 + $0x60] sm:$0xff] }
 0xaa3   : > { %15825 = vmatpush3.bf16.msra.mxu0 %v15824_v8  ;;  %v14083_v8 = vld [vmem:[%s19899_s7 + $0x760] sm:$0xff] }
 0xaa4   : > { %15826 = vmatprep.subr.bf16.mxu0 %v16455_v31  ;;  %v15878_v14 = vpack.c.bf16 %v14084_v51, %v14083_v8  ;;  %v13226_v51 = vld [vmem:[%s19902_s10] sm:$0x1] }
 0xaa7   : > { %15828 = vmatpush3.bf16.msra.mxu0 %v15827_v52  ;;  %v14087_v52 = vld [vmem:[%s19899_s7 + $0x780] sm:$0xff] }
 0xaa8   : > { %15829 = vmatprep.subr.bf16.mxu0 %v16455_v31  ;;  %v15884_v59 = vpack.c.bf16 %v14088_v55, %v14087_v52 }
 0xaab   : > { %15831 = vmatpush3.bf16.msra.mxu0 %v15830_v37  ;;  %v15887_v37 = vpack.c.bf16 %v14090_v9, %v14089_v62 }
 0xaac   : > { %15832 = vmatprep.subr.bf16.mxu0 %v16455_v31 }
 0xaaf   : > { %15834 = vmatpush3.bf16.msra.mxu0 %v15833_v30  ;;  %v14093_v30 = vld [vmem:[%s19899_s7 + $0x7b0] sm:$0xff] }
 0xab0   : > { %15835 = vmatprep.subr.bf16.mxu0 %v16455_v31  ;;  %v15893_v7 = vpack.c.bf16 %v14094_v40, %v14093_v30 }
 0xab2   : > { %15094 = vmatmul.mubr.f32.vlgmr.msra.gmra.mrb[4].mxu0 %v12866_v63  ;;  %v14096_v63 = vld [vmem:[%s19899_s7 + $0x7c8] sm:$0xff] }
 0xab3   : > { %15837 = vmatpush3.bf16.msra.mxu0 %v15836_v29  ;;  %15128 = vmatprep.mubr.msk.f32.mxu0 %vm16423_vm3, %v16413_v0  ;;  %v14095_v29 = vld [vmem:[%s19899_s7 + $0x7c0] sm:$0xff] }
 0xab4   : > { %15838 = vmatprep.subr.bf16.mxu0 %v16455_v31  ;;  %v15896_v18 = vpack.c.bf16 %v14096_v63, %v14095_v29 }
 0xab7   : > { %15840 = vmatpush3.bf16.msra.mxu0 %v15839_v60  ;;  %v14098_v60 = vld [vmem:[%s19899_s7 + $0x7d8] sm:$0xff] }
 0xab8   : > { %15841 = vmatprep.subr.bf16.mxu0 %v16455_v31  ;;  %v15899_v26 = vpack.c.bf16 %v14098_v60, %v14097_v13 }
 0xabb   : > { %15843 = vmatpush3.bf16.msra.mxu0 %v15842_v28  ;;  %v14100_v28 = vld [vmem:[%s19899_s7 + $0x7e8] sm:$0xff] }
 0xabc   : > { %15844 = vmatprep.subr.bf16.mxu0 %v16455_v31  ;;  %v15902_v4 = vpack.c.bf16 %v14100_v28, %v14099_v27 }
 0xabf   : > { %15846 = vmatpush3.bf16.msra.mxu0 %v15845_v36  ;;  %v14102_v36 = vld [vmem:[%s19899_s7 + $0x7f8] sm:$0xff] }
 0xac0   : > { %15847 = vmatprep.subr.bf16.mxu0 %v16455_v31  ;;  %v15905_v38 = vpack.c.bf16 %v14102_v36, %v14101_v32 }
 0xac3   : > { %15849 = vmatpush3.bf16.msra.mxu0 %v15848_v42  ;;  %v13224_v42 = vld [vmem:[%s19901_s9 + $0x70] sm:$0xff] }
 0xac4   : > { %15850 = vmatprep.subr.bf16.mxu0 %v16455_v31  ;;  %v15929_v3 = vpack.c.bf16 %v13225_v45, %v13224_v42 }
 0xac6   : > { %15930 = vmatpush3.bf16.msra.mxu1 %v15929_v3 }
 0xac7   : > { %15852 = vmatpush3.bf16.msra.mxu0 %v15851_v46  ;;  %15931 = vmatprep.subr.bf16.mxu1 %v16455_v31  ;;  %v11771_v46 = vld [vmem:[%s19900_s8] sm:$0x1] }
 0xac8   : > { %15853 = vmatprep.subr.bf16.mxu0 %v16455_v31 }
 0xacb   : > { %15855 = vmatpush3.bf16.msra.mxu0 %v15854_v47 }
 0xacc   : > { %15856 = vmatprep.subr.bf16.mxu0 %v16455_v31 }
 0xacf   : > { %15858 = vmatpush3.bf16.msra.mxu0 %v15857_v53 }
 0xad0   : > { %15859 = vmatprep.subr.bf16.mxu0 %v16455_v31 }
 0xad2   : > { %15129 = vmatmul.mubr.f32.vlgmr.msra.gmra.mrb[4].mxu0 %v12956_v15  ;;  %v13302_v15 = vld [vmem:[%s19903_s11 + $0x20] sm:$0xff] }
 0xad3   : > { %15861 = vmatpush3.bf16.msra.mxu0 %v15860_v56  ;;  %15163 = vmatprep.mubr.msk.f32.mxu0 %vm16423_vm3, %v16413_v0  ;;  %v15935_v56 = vpack.c.bf16 %v13301_v54, %v13300_v6  ;;  %v15938_v57 = vpack.c.bf16 %v13303_v34, %v13302_v15 }
 0xad4   : > { %15862 = vmatprep.subr.bf16.mxu0 %v16455_v31 }
 0xad7   : > { %15864 = vmatpush3.bf16.msra.mxu0 %v15863_v11  ;;  %v13304_v11 = vld [vmem:[%s19903_s11 + $0x30] sm:$0xff] }
 0xad8   : > { %15865 = vmatprep.subr.bf16.mxu0 %v16455_v31 }
 0xadb   : > { %15867 = vmatpush3.bf16.msra.mxu0 %v15866_v17  ;;  %v13307_v17 = vld [vmem:[%s19903_s11 + $0x48] sm:$0xff] }
 0xadc   : > { %15868 = vmatprep.subr.bf16.mxu0 %v16455_v31  ;;  %v15944_v19 = vpack.c.bf16 %v13307_v17, %v13306_v16 }
 0xadf   : > { %15870 = vmatpush3.bf16.msra.mxu0 %v15869_v43  ;;  %v13309_v43 = vld [vmem:[%s19903_s11 + $0x58] sm:$0xff] }
 0xae0   : > { %15871 = vmatprep.subr.bf16.mxu0 %v16455_v31  ;;  %v15947_v2 = vpack.c.bf16 %v13309_v43, %v13308_v21 }
 0xae3   : > { %15873 = vmatpush3.bf16.msra.mxu0 %v15872_v24  ;;  %v13311_v24 = vld [vmem:[%s19903_s11 + $0x68] sm:$0xff] }
 0xae4   : > { %15874 = vmatprep.subr.bf16.mxu0 %v16455_v31  ;;  %v15950_v25 = vpack.c.bf16 %v13311_v24, %v13310_v20 }
 0xae7   : > { %15876 = vmatpush3.bf16.msra.mxu0 %v15875_v5  ;;  %v13313_v5 = vld [vmem:[%s19903_s11 + $0x78] sm:$0xff] }
 0xae8   : > { %15877 = vmatprep.subr.bf16.mxu0 %v16455_v31  ;;  %v15953_v8 = vpack.c.bf16 %v13313_v5, %v13312_v1 }
 0xaeb   : > { %15879 = vmatpush3.bf16.msra.mxu0 %v15878_v14 }
 0xaec   : > { %15880 = vmatprep.subr.bf16.mxu0 %v16455_v31 }
 0xaef   : > { %15882 = vmatpush3.bf16.msra.mxu0 %v15881_v50 }
 0xaf0   : > { %15883 = vmatprep.subr.bf16.mxu0 %v16455_v31 }
 0xaf2   : > { %15164 = vmatmul.mubr.f32.vlgmr.msra.gmra.mrb[4].mxu0 %v13046_v61 }
 0xaf3   : > { %15885 = vmatpush3.bf16.msra.mxu0 %v15884_v59  ;;  %15198 = vmatprep.mubr.msk.f32.mxu0 %vm16423_vm3, %v16413_v0 }
 0xaf4   : > { %15886 = vmatprep.subr.bf16.mxu0 %v16455_v31 }
 0xaf7   : > { %15888 = vmatpush3.bf16.msra.mxu0 %v15887_v37 }
 0xaf8   : > { %15889 = vmatprep.subr.bf16.mxu0 %v16455_v31 }
 0xafb   : > { %15891 = vmatpush3.bf16.msra.mxu0 %v15890_v22 }
 0xafc   : > { %15892 = vmatprep.subr.bf16.mxu0 %v16455_v31 }
 0xaff   : > { %15894 = vmatpush3.bf16.msra.mxu0 %v15893_v7 }
 0xb00   : > { %15895 = vmatprep.subr.bf16.mxu0 %v16455_v31 }
 0xb03   : > { %15897 = vmatpush3.bf16.msra.mxu0 %v15896_v18 }
 0xb04   : > { %15898 = vmatprep.subr.bf16.mxu0 %v16455_v31 }
 0xb07   : > { %15900 = vmatpush3.bf16.msra.mxu0 %v15899_v26 }
 0xb08   : > { %15901 = vmatprep.subr.bf16.mxu0 %v16455_v31 }
 0xb0b   : > { %15903 = vmatpush3.bf16.msra.mxu0 %v15902_v4 }
 0xb0c   : > { %15904 = vmatprep.subr.bf16.mxu0 %v16455_v31 }
 0xb0f   : > { %15906 = vmatpush3.bf16.msra.mxu0 %v15905_v38 }
 0xb12   : > { %15199 = vmatmul.mubr.f32.vlgmr.msra.gmra.mrb[4].mxu0 %v13136_v41 }
 0xbe5   : > { %v13204_v58 = vpop.f32.mrb[4].mxu0 }
 0xbe6   : > { %v15955_v47 = vadd.f32 %v13204_v58, %v11771_v46  ;;  %v15200_v48 = vpop.f32.mrb[5].mxu0 }
 0xbe8   : > { %v13209_v53 = vmax.f32 %v15955_v47, 0.0 }
 0xbea   : > { %15234 = vmatmul.mubr.f32.vlgmr.msra.gmra.mrb[60].mxu1 %v13209_v53 }
 0xbeb   : > { %15933 = vmatpush3.bf16.msra.mxu1 %v15932_v49  ;;  %15268 = vmatprep.mubr.msk.f32.mxu1 %vm16423_vm3, %v16413_v0  ;;  %v13305_v0 = vld [vmem:[%s19903_s11 + $0x38] sm:$0xff] }
 0xbec   : > { %15934 = vmatprep.subr.bf16.mxu1 %v16455_v31  ;;  %v15941_v12 = vpack.c.bf16 %v13305_v0, %v13304_v11 }
 0xbef   : > { %15936 = vmatpush3.bf16.msra.mxu1 %v15935_v56 }
 0xbf0   : > { %15937 = vmatprep.subr.bf16.mxu1 %v16455_v31 }
 0xbf3   : > { %15939 = vmatpush3.bf16.msra.mxu1 %v15938_v57 }
 0xbf4   : > { %15940 = vmatprep.subr.bf16.mxu1 %v16455_v31 }
 0xbf7   : > { %15942 = vmatpush3.bf16.msra.mxu1 %v15941_v12 }
 0xbf8   : > { %15943 = vmatprep.subr.bf16.mxu1 %v16455_v31 }
 0xbfb   : > { %15945 = vmatpush3.bf16.msra.mxu1 %v15944_v19 }
 0xbfc   : > { %15946 = vmatprep.subr.bf16.mxu1 %v16455_v31 }
 0xbff   : > { %15948 = vmatpush3.bf16.msra.mxu1 %v15947_v2 }
 0xc00   : > { %15949 = vmatprep.subr.bf16.mxu1 %v16455_v31 }
 0xc03   : > { %15951 = vmatpush3.bf16.msra.mxu1 %v15950_v25 }
 0xc04   : > { %15952 = vmatprep.subr.bf16.mxu1 %v16455_v31  ;;  %v13314_v31 = vld [vmem:[%s19904_s12] sm:$0x1] }
 0xc07   : > { %15954 = vmatpush3.bf16.msra.mxu1 %v15953_v8 }
 0xcbd   : > { %v13293_v14 = vpop.f32.mrb[60].mxu1 }
 0xcbe   : > { %v13294_v23 = vadd.f32 %v13293_v14, %v13226_v51  ;;  %v15235_v44 = vpop.f32.mrb[61].mxu1 }
 0xcc0   : > { %v13297_v50 = vmax.f32 %v13294_v23, 0.0 }
 0xcc2   : > { %15269 = vmatmul.mubr.f32.vlgmr.msra.gmra.mrb[62].mxu1 %v13297_v50 }
 0xd95   : > { %v13381_v52 = vpop.f32.mrb[62].mxu1 }
 0xd96   : > { %v13382_v55 = vadd.f32 %v13381_v52, %v13314_v31  ;;  %v15270_v59 = vpop.f32.mrb[63].mxu1 }
 0xd98   : > { %13385 = vst [vmem:[%s432_s30] sm:$0x1] %v13382_v55 }
 0xd99   : > { %16362 = shalt.err (!%p16359_p3)
}
 0xd9a   : > { %s16363_s0 = scalar_lea.hbm %s19850_s22, 16  ;;  %s16367_s1 = scalar_lea.hbm %s19905_s13, 32 }
 0xd9b   : > { %p16364_p4 = scmp.ne.s32.totalorder %s19850_s22, %s16363_s0  ;;  %p16368_p9 = scmp.lt.u32.totalorder %s19850_s22, %s19905_s13 }
 0xd9c   : > { %p16369_p10 = scmp.lt.u32.totalorder %s16367_s1, %s16363_s0  ;;  %p16371_p12 = scmp.lt.u32.totalorder %s16363_s0, %s19850_s22 }
 0xd9d   : > { %p16365_p7 = pnand %p16364_p4, %p16565_p5 }
 0xd9e   : > { %p16370_p11 = por %p16369_p10, %p16368_p9 }
 0xd9f   : > { %p16366_p8 = pneg %p16365_p7 }
 0xda0   : > { %p16372_p13 = por %p16371_p12, %p16370_p11 }
 0xda2   : > { %p16373_p0 = pnand %p16372_p13, %p16366_p8 }
 0xda4   : > { %16376 = shalt.err (!%p16373_p0)
}
 0xda5   : > { %16232 = dma.vmem_to_hbm [thread:$0]  (%p16565_p5), %s19852_s16, 16, %s19850_s22, %s13387_s21  }
 0xda6 PF: > { %p16238_p1 = scmp.ge.s32.totalorder %s16411_s28, 2  ;;  %s13411_s24 = sand.u32 1, %s16399_s25  }
 0xda7   : > { %s13412_s23 = scalar_lea.sflag [#allocation3], %s13411_s24 }
 0xda8   : > { %p16235_p2 = pnand %p16238_p1, %p16569_p6 }
 0xdaa   : > { %16394 = dma.done.wait (!%p16235_p2), %s13412_s23, 16  }
 0xdab   : > { %16396 = vsyncadd (!%p16235_p2), %s13412_s23, 4294967280  ;;  %s19932_s29 = sld [smem:[#allocation5_spill]]  ;;  %s19933_s27 = sld [smem:[#allocation6_spill]] }
 0xdac   : > { %p23_p3 = scmp.ge.s32.totalorder %s16552_s14, 4   ;;  %s19934_s25 = smov %s16403_s26 }
 0xdad   : > { %s19936_s28 = smov %s16552_s14 }
 0xdae   :  { %25 = sbr.rel (!%p23_p3) target bundleno = 7 (0x7), region = 170 }
 0xdb1   : > { %s19935_s26 = smov %s19932_s29 }
 0xdb5   :  { %13416 = vsyncpa [#allocation3], 1 }
 0xdb6   :  { %13418 = vsyncpa [#allocation3 + $0x1], 1 }

</bundles_post_ra>
